<compile_context>
chip_gen: v7x
topology: tpu7x:2x2x1
jax: 0.10.0
libtpu: 0.0.40
codegen_flags: <defaults>
</compile_context>

<pallas_src>
import numpy as np
import jax
import jax.numpy as jnp
from jax import lax
from jax.experimental import pallas as pl
from jax.experimental.pallas import tpu as pltpu

VOCAB_SIZE = 69
VOCAB_PAD = 128                       # one-hot width / table rows (lane width)
EMBED_DIM = 128
FILTER_SIZES = (10, 7, 5, 3)
NUM_FILTERS = (75, 75, 75, 75)
F_PAD = 128                           # conv out-channels padded 75 -> 128
NUM_CLASSES = 2
HIDDEN = 300
HIDDEN_PAD = 384                      # 300 -> 3*128 (lane-dense hidden)
FEAT_PAD = F_PAD * len(FILTER_SIZES)  # 512
MAX_NORM = 5.0


def _cnn_kernel(ids_ref, emb_ref,
                w10_ref, b10_ref, w7_ref, b7_ref,
                w5_ref, b5_ref, w3_ref, b3_ref,
                wh_ref, bh_ref, wo_ref, bo_ref,
                out_ref, feat_ref):
    """Embedding gather + Conv1d bank + time max-pool + 2 FC layers (one batch block).

    ids_ref : (B_blk*L, 1) int32     token ids of this batch block
    emb_ref : (VOCAB_PAD, D) bf16    renormalized, vocab-padded embedding table
    w*_ref  : (k, D, F_PAD) bf16     conv weights (tap-major); b*: (1, F_PAD) f32
    wh_ref  : (FEAT_PAD, HIDDEN_PAD) bf16 ; bh_ref: (1, HIDDEN_PAD) f32
    wo_ref  : (HIDDEN_PAD, 2) bf16   ; bo_ref: (1, 2) f32
    out_ref : (B_blk, 2) f32
    feat_ref: (B_blk, FEAT_PAD) f32  VMEM scratch, 128-aligned pooled features
    """
    BL = ids_ref.shape[0]
    B = out_ref.shape[0]
    L = BL // B
    V, D = emb_ref.shape

    # --- embedding lookup as a one-hot matmul on the MXU (exact bf16 gather) ---
    ids = ids_ref[...]                                          # (BL, 1) int32
    lane = lax.broadcasted_iota(jnp.int32, (BL, V), 1)
    onehot = (lane == ids).astype(jnp.bfloat16)                 # (BL, V)
    x_flat = jnp.dot(onehot, emb_ref[...],
                     preferred_element_type=jnp.float32)        # (BL, D) f32
    x_flat = x_flat.astype(jnp.bfloat16)

    # --- conv bank: one batched matmul per tap + shift-accumulate.
    #     The reference Net max-pools the raw conv output (no ReLU).        ---
    conv_groups = ((10, w10_ref, b10_ref), (7, w7_ref, b7_ref),
                   (5, w5_ref, b5_ref), (3, w3_ref, b3_ref))
    for idx, (k, w_ref, b_ref) in enumerate(conv_groups):
        l_out = L - k + 1
        f = w_ref.shape[-1]                                     # 128 (padded)
        acc = jnp.zeros((B, l_out, f), jnp.float32)
        for j in range(k):
            y = jnp.dot(x_flat, w_ref[j],
                        preferred_element_type=jnp.float32)     # (BL, F)
            acc = acc + y.reshape(B, L, f)[:, j:j + l_out, :]
        # Bias is constant over time, so add it once after the max-pool
        # (identical result, far fewer VPU ops).
        pooled = jnp.max(acc, axis=1) + b_ref[...]              # (B, F) f32
        feat_ref[:, idx * f:(idx + 1) * f] = pooled             # 128-aligned write

    # --- FC head (dropout is identity in eval mode) ---
    feat = feat_ref[...].astype(jnp.bfloat16)                   # (B, 512)
    h = jnp.dot(feat, wh_ref[...],
                preferred_element_type=jnp.float32) + bh_ref[...]
    h = jnp.maximum(h, 0.0)                                     # (B, 384) f32
    logits = (jnp.dot(h.astype(jnp.bfloat16), wo_ref[...],
                      preferred_element_type=jnp.float32) + bo_ref[...])
    out_ref[...] = logits.astype(out_ref.dtype)                 # (B, 2)


def init_params(key):
    """Synthetic parameters matching the torch module, pre-padded to the
    lane-dense kernel layout and cast to bf16 for the MXU operands."""
    keys = jax.random.split(key, 13)
    p = {}

    # Embedding (padding_idx=0, max_norm=5.0).  The max_norm renorm depends
    # only on the table, so it is applied once here, not per forward pass.
    # (torch additionally renormalizes accessed rows in place during training;
    # eval outputs are identical.)
    emb = 0.5 * jax.random.normal(keys[0], (VOCAB_SIZE, EMBED_DIM), jnp.float32)
    emb = emb.at[0].set(0.0)
    norms = jnp.linalg.norm(emb, axis=1, keepdims=True)
    emb = emb * jnp.minimum(1.0, MAX_NORM / jnp.maximum(norms, 1e-12))
    emb_pad = jnp.zeros((VOCAB_PAD, EMBED_DIM), jnp.float32).at[:VOCAB_SIZE].set(emb)
    p["embedding"] = emb_pad.astype(jnp.bfloat16)

    idx = 1
    for k, f in zip(FILTER_SIZES, NUM_FILTERS):
        bound = 1.0 / np.sqrt(EMBED_DIM * k)
        # torch Conv1d weight (F, D, k) -> stored (k, D, F_PAD), zero-padded F.
        w = jax.random.uniform(keys[idx], (f, EMBED_DIM, k), jnp.float32,
                               -bound, bound)
        b = jax.random.uniform(keys[idx + 1], (f,), jnp.float32, -bound, bound)
        w_kdf = jnp.transpose(w, (2, 1, 0))                      # (k, D, f)
        w_pad = jnp.zeros((k, EMBED_DIM, F_PAD), jnp.float32).at[:, :, :f].set(w_kdf)
        b_pad = jnp.zeros((F_PAD,), jnp.float32).at[:f].set(b)
        p[f"conv{k}_w"] = w_pad.astype(jnp.bfloat16)
        p[f"conv{k}_b"] = b_pad.reshape(1, F_PAD)
        idx += 2

    total_f = int(np.sum(NUM_FILTERS))                           # 300
    bound = 1.0 / np.sqrt(total_f)
    wh = jax.random.uniform(keys[idx], (total_f, HIDDEN), jnp.float32,
                            -bound, bound)
    bh = jax.random.uniform(keys[idx + 1], (HIDDEN,), jnp.float32, -bound, bound)
    # Scatter the (300, 300) weight into the padded (512, 384) layout:
    # real channel c of conv block i sits at feat lane i*F_PAD + c.
    wh_pad = jnp.zeros((FEAT_PAD, HIDDEN_PAD), jnp.float32)
    for i, f in enumerate(NUM_FILTERS):
        rows = wh[i * f:(i + 1) * f]                             # (75, 300)
        wh_pad = wh_pad.at[i * F_PAD:i * F_PAD + f, :HIDDEN].set(rows)
    p["fc_hidden_w"] = wh_pad.astype(jnp.bfloat16)
    p["fc_hidden_b"] = jnp.zeros((1, HIDDEN_PAD), jnp.float32).at[0, :HIDDEN].set(bh)
    idx += 2

    bound = 1.0 / np.sqrt(HIDDEN)
    wo = jax.random.uniform(keys[idx], (HIDDEN, NUM_CLASSES), jnp.float32,
                            -bound, bound)
    bo = jax.random.uniform(keys[idx + 1], (NUM_CLASSES,), jnp.float32,
                            -bound, bound)
    wo_pad = jnp.zeros((HIDDEN_PAD, NUM_CLASSES), jnp.float32).at[:HIDDEN].set(wo)
    p["fc_w"] = wo_pad.astype(jnp.bfloat16)
    p["fc_b"] = bo.reshape(1, NUM_CLASSES)
    return p


def net_forward(params, input_ids, *, batch_block=8):
    """Whole forward pass in one pallas_call; grid tiles over batch."""
    B, L = input_ids.shape
    if B <= batch_block:
        b_blk, b_pad = B, B
    else:
        b_blk = batch_block                 # multiple of 8 so out/ids blocks tile
        b_pad = pl.cdiv(B, b_blk) * b_blk
    grid = (b_pad // b_blk,)

    ids = input_ids.astype(jnp.int32)
    if b_pad != B:
        ids = jnp.pad(ids, ((0, b_pad - B), (0, 0)))   # pad rows with padding_idx=0
    ids2d = ids.reshape(b_pad * L, 1)

    def const2(shape):
        return pl.BlockSpec(shape, lambda i: (0, 0))

    args = [ids2d, params["embedding"]]
    in_specs = [pl.BlockSpec((b_blk * L, 1), lambda i: (i, 0)),
                const2(params["embedding"].shape)]
    for k in FILTER_SIZES:
        w = params[f"conv{k}_w"]
        b = params[f"conv{k}_b"]
        args += [w, b]
        in_specs += [pl.BlockSpec(w.shape, lambda i: (0, 0, 0)),
                     const2(b.shape)]
    for name in ("fc_hidden_w", "fc_hidden_b", "fc_w", "fc_b"):
        a = params[name]
        args.append(a)
        in_specs.append(const2(a.shape))

    out = pl.pallas_call(
        _cnn_kernel,
        out_shape=jax.ShapeDtypeStruct((b_pad, NUM_CLASSES), jnp.float32),
        grid=grid,
        in_specs=in_specs,
        out_specs=pl.BlockSpec((b_blk, NUM_CLASSES), lambda i: (i, 0)),
        scratch_shapes=[pltpu.VMEM((b_blk, FEAT_PAD), jnp.float32)],
        compiler_params=pltpu.CompilerParams(
            dimension_semantics=("parallel",)),
    )(*args)
    return out[:B]


if __name__ == "__main__":
    key = jax.random.PRNGKey(0)
    pkey, dkey = jax.random.split(key)
    params = init_params(pkey)
    # Small but valid sequence length (must be >= max filter size 10).
    input_ids = jax.random.randint(dkey, (2, 32), 0, VOCAB_SIZE, dtype=jnp.int32)

    logits = jax.jit(net_forward)(params, input_ids)
    logits = jax.block_until_ready(logits)
    assert logits.shape == (2, NUM_CLASSES) and logits.dtype == jnp.float32
    assert bool(jnp.all(jnp.isfinite(logits)))
    print("KERNEL_OK")
</pallas_src>

<mosaic_0001>
module attributes {stable_mosaic.version = 11 : i64} {
  func.func @_cnn_kernel(%arg0: i32, %arg1: memref<64x1xi32, #tpu.memory_space<vmem>>, %arg2: memref<128x128xbf16, #tpu.memory_space<vmem>>, %arg3: memref<10x128x128xbf16, #tpu.memory_space<vmem>>, %arg4: memref<1x128xf32, #tpu.memory_space<vmem>>, %arg5: memref<7x128x128xbf16, #tpu.memory_space<vmem>>, %arg6: memref<1x128xf32, #tpu.memory_space<vmem>>, %arg7: memref<5x128x128xbf16, #tpu.memory_space<vmem>>, %arg8: memref<1x128xf32, #tpu.memory_space<vmem>>, %arg9: memref<3x128x128xbf16, #tpu.memory_space<vmem>>, %arg10: memref<1x128xf32, #tpu.memory_space<vmem>>, %arg11: memref<512x384xbf16, #tpu.memory_space<vmem>>, %arg12: memref<1x384xf32, #tpu.memory_space<vmem>>, %arg13: memref<384x2xbf16, #tpu.memory_space<vmem>>, %arg14: memref<1x2xf32, #tpu.memory_space<vmem>>, %arg15: memref<2x2xf32, #tpu.memory_space<vmem>>, %arg16: memref<2x512xf32, #tpu.memory_space<vmem>>) attributes {dimension_semantics = [#tpu.dimension_semantics<parallel>], iteration_bounds = array<i64: 1>, scalar_prefetch = 0 : i64, scratch_operands = 1 : i64, tpu.core_type = #tpu.core_type<tc>, window_params = [{transform_indices = @transform_0, window_bounds = array<i64: 64, 1>}, {pipeline_mode = #tpu.pipeline_mode<synchronous>, transform_indices = @transform_1, window_bounds = array<i64: 128, 128>}, {pipeline_mode = #tpu.pipeline_mode<synchronous>, transform_indices = @transform_2, window_bounds = array<i64: 10, 128, 128>}, {pipeline_mode = #tpu.pipeline_mode<synchronous>, transform_indices = @transform_3, window_bounds = array<i64: 1, 128>}, {pipeline_mode = #tpu.pipeline_mode<synchronous>, transform_indices = @transform_4, window_bounds = array<i64: 7, 128, 128>}, {pipeline_mode = #tpu.pipeline_mode<synchronous>, transform_indices = @transform_5, window_bounds = array<i64: 1, 128>}, {pipeline_mode = #tpu.pipeline_mode<synchronous>, transform_indices = @transform_6, window_bounds = array<i64: 5, 128, 128>}, {pipeline_mode = #tpu.pipeline_mode<synchronous>, transform_indices = @transform_7, window_bounds = array<i64: 1, 128>}, {pipeline_mode = #tpu.pipeline_mode<synchronous>, transform_indices = @transform_8, window_bounds = array<i64: 3, 128, 128>}, {pipeline_mode = #tpu.pipeline_mode<synchronous>, transform_indices = @transform_9, window_bounds = array<i64: 1, 128>}, {pipeline_mode = #tpu.pipeline_mode<synchronous>, transform_indices = @transform_10, window_bounds = array<i64: 512, 384>}, {pipeline_mode = #tpu.pipeline_mode<synchronous>, transform_indices = @transform_11, window_bounds = array<i64: 1, 384>}, {pipeline_mode = #tpu.pipeline_mode<synchronous>, transform_indices = @transform_12, window_bounds = array<i64: 384, 2>}, {pipeline_mode = #tpu.pipeline_mode<synchronous>, transform_indices = @transform_13, window_bounds = array<i64: 1, 2>}, {transform_indices = @transform_14, window_bounds = array<i64: 2, 2>}]} {
    %c0 = arith.constant 0 : index
    %c0_0 = arith.constant 0 : index
    %0 = vector.load %arg1[%c0, %c0_0] : memref<64x1xi32, #tpu.memory_space<vmem>>, vector<64x1xi32>
    %1 = tpu.iota {dimensions = array<i32: 1>} : vector<64x128xi32>
    %2 = vector.broadcast %0 : vector<64x1xi32> to vector<64x128xi32>
    %3 = arith.cmpi eq, %1, %2 : vector<64x128xi32>
    %4 = arith.extui %3 : vector<64x128xi1> to vector<64x128xi32>
    %5 = arith.sitofp %4 : vector<64x128xi32> to vector<64x128xf32>
    %6 = arith.truncf %5 : vector<64x128xf32> to vector<64x128xbf16>
    %c0_1 = arith.constant 0 : index
    %c0_2 = arith.constant 0 : index
    %7 = vector.load %arg2[%c0_1, %c0_2] : memref<128x128xbf16, #tpu.memory_space<vmem>>, vector<128x128xbf16>
    %cst = arith.constant dense<0.000000e+00> : vector<64x128xf32>
    %8 = tpu.matmul %6, %7, %cst {dimension_numbers = #tpu.dot_dimension_numbers<[1], [0], [0], [1], [0, 0, 1, 1], [], []>} : vector<64x128xbf16>, vector<128x128xbf16>, vector<64x128xf32> -> vector<64x128xf32>
    %9 = arith.truncf %8 : vector<64x128xf32> to vector<64x128xbf16>
    %cst_3 = arith.constant 0.000000e+00 : f32
    %10 = vector.broadcast %cst_3 : f32 to vector<2x23x128xf32>
    %c0_4 = arith.constant 0 : index
    %c0_5 = arith.constant 0 : index
    %c0_6 = arith.constant 0 : index
    %11 = vector.load %arg3[%c0_4, %c0_5, %c0_6] : memref<10x128x128xbf16, #tpu.memory_space<vmem>>, vector<1x128x128xbf16>
    %12 = vector.shape_cast %11 : vector<1x128x128xbf16> to vector<128x128xbf16>
    %cst_7 = arith.constant dense<0.000000e+00> : vector<64x128xf32>
    %13 = tpu.matmul %9, %12, %cst_7 {dimension_numbers = #tpu.dot_dimension_numbers<[1], [0], [0], [1], [0, 0, 1, 1], [], []>} : vector<64x128xbf16>, vector<128x128xbf16>, vector<64x128xf32> -> vector<64x128xf32>
    %14 = vector.shape_cast %13 : vector<64x128xf32> to vector<2x32x128xf32>
    %15 = vector.extract_strided_slice %14 {offsets = [0, 0, 0], sizes = [2, 23, 128], strides = [1, 1, 1]} : vector<2x32x128xf32> to vector<2x23x128xf32>
    %16 = arith.addf %10, %15 : vector<2x23x128xf32>
    %c1 = arith.constant 1 : index
    %c0_8 = arith.constant 0 : index
    %c0_9 = arith.constant 0 : index
    %17 = vector.load %arg3[%c1, %c0_8, %c0_9] : memref<10x128x128xbf16, #tpu.memory_space<vmem>>, vector<1x128x128xbf16>
    %18 = vector.shape_cast %17 : vector<1x128x128xbf16> to vector<128x128xbf16>
    %cst_10 = arith.constant dense<0.000000e+00> : vector<64x128xf32>
    %19 = tpu.matmul %9, %18, %cst_10 {dimension_numbers = #tpu.dot_dimension_numbers<[1], [0], [0], [1], [0, 0, 1, 1], [], []>} : vector<64x128xbf16>, vector<128x128xbf16>, vector<64x128xf32> -> vector<64x128xf32>
    %20 = vector.shape_cast %19 : vector<64x128xf32> to vector<2x32x128xf32>
    %21 = vector.extract_strided_slice %20 {offsets = [0, 1, 0], sizes = [2, 23, 128], strides = [1, 1, 1]} : vector<2x32x128xf32> to vector<2x23x128xf32>
    %22 = arith.addf %16, %21 : vector<2x23x128xf32>
    %c2 = arith.constant 2 : index
    %c0_11 = arith.constant 0 : index
    %c0_12 = arith.constant 0 : index
    %23 = vector.load %arg3[%c2, %c0_11, %c0_12] : memref<10x128x128xbf16, #tpu.memory_space<vmem>>, vector<1x128x128xbf16>
    %24 = vector.shape_cast %23 : vector<1x128x128xbf16> to vector<128x128xbf16>
    %cst_13 = arith.constant dense<0.000000e+00> : vector<64x128xf32>
    %25 = tpu.matmul %9, %24, %cst_13 {dimension_numbers = #tpu.dot_dimension_numbers<[1], [0], [0], [1], [0, 0, 1, 1], [], []>} : vector<64x128xbf16>, vector<128x128xbf16>, vector<64x128xf32> -> vector<64x128xf32>
    %26 = vector.shape_cast %25 : vector<64x128xf32> to vector<2x32x128xf32>
    %27 = vector.extract_strided_slice %26 {offsets = [0, 2, 0], sizes = [2, 23, 128], strides = [1, 1, 1]} : vector<2x32x128xf32> to vector<2x23x128xf32>
    %28 = arith.addf %22, %27 : vector<2x23x128xf32>
    %c3 = arith.constant 3 : index
    %c0_14 = arith.constant 0 : index
    %c0_15 = arith.constant 0 : index
    %29 = vector.load %arg3[%c3, %c0_14, %c0_15] : memref<10x128x128xbf16, #tpu.memory_space<vmem>>, vector<1x128x128xbf16>
    %30 = vector.shape_cast %29 : vector<1x128x128xbf16> to vector<128x128xbf16>
    %cst_16 = arith.constant dense<0.000000e+00> : vector<64x128xf32>
    %31 = tpu.matmul %9, %30, %cst_16 {dimension_numbers = #tpu.dot_dimension_numbers<[1], [0], [0], [1], [0, 0, 1, 1], [], []>} : vector<64x128xbf16>, vector<128x128xbf16>, vector<64x128xf32> -> vector<64x128xf32>
    %32 = vector.shape_cast %31 : vector<64x128xf32> to vector<2x32x128xf32>
    %33 = vector.extract_strided_slice %32 {offsets = [0, 3, 0], sizes = [2, 23, 128], strides = [1, 1, 1]} : vector<2x32x128xf32> to vector<2x23x128xf32>
    %34 = arith.addf %28, %33 : vector<2x23x128xf32>
    %c4 = arith.constant 4 : index
    %c0_17 = arith.constant 0 : index
    %c0_18 = arith.constant 0 : index
    %35 = vector.load %arg3[%c4, %c0_17, %c0_18] : memref<10x128x128xbf16, #tpu.memory_space<vmem>>, vector<1x128x128xbf16>
    %36 = vector.shape_cast %35 : vector<1x128x128xbf16> to vector<128x128xbf16>
    %cst_19 = arith.constant dense<0.000000e+00> : vector<64x128xf32>
    %37 = tpu.matmul %9, %36, %cst_19 {dimension_numbers = #tpu.dot_dimension_numbers<[1], [0], [0], [1], [0, 0, 1, 1], [], []>} : vector<64x128xbf16>, vector<128x128xbf16>, vector<64x128xf32> -> vector<64x128xf32>
    %38 = vector.shape_cast %37 : vector<64x128xf32> to vector<2x32x128xf32>
    %39 = vector.extract_strided_slice %38 {offsets = [0, 4, 0], sizes = [2, 23, 128], strides = [1, 1, 1]} : vector<2x32x128xf32> to vector<2x23x128xf32>
    %40 = arith.addf %34, %39 : vector<2x23x128xf32>
    %c5 = arith.constant 5 : index
    %c0_20 = arith.constant 0 : index
    %c0_21 = arith.constant 0 : index
    %41 = vector.load %arg3[%c5, %c0_20, %c0_21] : memref<10x128x128xbf16, #tpu.memory_space<vmem>>, vector<1x128x128xbf16>
    %42 = vector.shape_cast %41 : vector<1x128x128xbf16> to vector<128x128xbf16>
    %cst_22 = arith.constant dense<0.000000e+00> : vector<64x128xf32>
    %43 = tpu.matmul %9, %42, %cst_22 {dimension_numbers = #tpu.dot_dimension_numbers<[1], [0], [0], [1], [0, 0, 1, 1], [], []>} : vector<64x128xbf16>, vector<128x128xbf16>, vector<64x128xf32> -> vector<64x128xf32>
    %44 = vector.shape_cast %43 : vector<64x128xf32> to vector<2x32x128xf32>
    %45 = vector.extract_strided_slice %44 {offsets = [0, 5, 0], sizes = [2, 23, 128], strides = [1, 1, 1]} : vector<2x32x128xf32> to vector<2x23x128xf32>
    %46 = arith.addf %40, %45 : vector<2x23x128xf32>
    %c6 = arith.constant 6 : index
    %c0_23 = arith.constant 0 : index
    %c0_24 = arith.constant 0 : index
    %47 = vector.load %arg3[%c6, %c0_23, %c0_24] : memref<10x128x128xbf16, #tpu.memory_space<vmem>>, vector<1x128x128xbf16>
    %48 = vector.shape_cast %47 : vector<1x128x128xbf16> to vector<128x128xbf16>
    %cst_25 = arith.constant dense<0.000000e+00> : vector<64x128xf32>
    %49 = tpu.matmul %9, %48, %cst_25 {dimension_numbers = #tpu.dot_dimension_numbers<[1], [0], [0], [1], [0, 0, 1, 1], [], []>} : vector<64x128xbf16>, vector<128x128xbf16>, vector<64x128xf32> -> vector<64x128xf32>
    %50 = vector.shape_cast %49 : vector<64x128xf32> to vector<2x32x128xf32>
    %51 = vector.extract_strided_slice %50 {offsets = [0, 6, 0], sizes = [2, 23, 128], strides = [1, 1, 1]} : vector<2x32x128xf32> to vector<2x23x128xf32>
    %52 = arith.addf %46, %51 : vector<2x23x128xf32>
    %c7 = arith.constant 7 : index
    %c0_26 = arith.constant 0 : index
    %c0_27 = arith.constant 0 : index
    %53 = vector.load %arg3[%c7, %c0_26, %c0_27] : memref<10x128x128xbf16, #tpu.memory_space<vmem>>, vector<1x128x128xbf16>
    %54 = vector.shape_cast %53 : vector<1x128x128xbf16> to vector<128x128xbf16>
    %cst_28 = arith.constant dense<0.000000e+00> : vector<64x128xf32>
    %55 = tpu.matmul %9, %54, %cst_28 {dimension_numbers = #tpu.dot_dimension_numbers<[1], [0], [0], [1], [0, 0, 1, 1], [], []>} : vector<64x128xbf16>, vector<128x128xbf16>, vector<64x128xf32> -> vector<64x128xf32>
    %56 = vector.shape_cast %55 : vector<64x128xf32> to vector<2x32x128xf32>
    %57 = vector.extract_strided_slice %56 {offsets = [0, 7, 0], sizes = [2, 23, 128], strides = [1, 1, 1]} : vector<2x32x128xf32> to vector<2x23x128xf32>
    %58 = arith.addf %52, %57 : vector<2x23x128xf32>
    %c8 = arith.constant 8 : index
    %c0_29 = arith.constant 0 : index
    %c0_30 = arith.constant 0 : index
    %59 = vector.load %arg3[%c8, %c0_29, %c0_30] : memref<10x128x128xbf16, #tpu.memory_space<vmem>>, vector<1x128x128xbf16>
    %60 = vector.shape_cast %59 : vector<1x128x128xbf16> to vector<128x128xbf16>
    %cst_31 = arith.constant dense<0.000000e+00> : vector<64x128xf32>
    %61 = tpu.matmul %9, %60, %cst_31 {dimension_numbers = #tpu.dot_dimension_numbers<[1], [0], [0], [1], [0, 0, 1, 1], [], []>} : vector<64x128xbf16>, vector<128x128xbf16>, vector<64x128xf32> -> vector<64x128xf32>
    %62 = vector.shape_cast %61 : vector<64x128xf32> to vector<2x32x128xf32>
    %63 = vector.extract_strided_slice %62 {offsets = [0, 8, 0], sizes = [2, 23, 128], strides = [1, 1, 1]} : vector<2x32x128xf32> to vector<2x23x128xf32>
    %64 = arith.addf %58, %63 : vector<2x23x128xf32>
    %c9 = arith.constant 9 : index
    %c0_32 = arith.constant 0 : index
    %c0_33 = arith.constant 0 : index
    %65 = vector.load %arg3[%c9, %c0_32, %c0_33] : memref<10x128x128xbf16, #tpu.memory_space<vmem>>, vector<1x128x128xbf16>
    %66 = vector.shape_cast %65 : vector<1x128x128xbf16> to vector<128x128xbf16>
    %cst_34 = arith.constant dense<0.000000e+00> : vector<64x128xf32>
    %67 = tpu.matmul %9, %66, %cst_34 {dimension_numbers = #tpu.dot_dimension_numbers<[1], [0], [0], [1], [0, 0, 1, 1], [], []>} : vector<64x128xbf16>, vector<128x128xbf16>, vector<64x128xf32> -> vector<64x128xf32>
    %68 = vector.shape_cast %67 : vector<64x128xf32> to vector<2x32x128xf32>
    %69 = vector.extract_strided_slice %68 {offsets = [0, 9, 0], sizes = [2, 23, 128], strides = [1, 1, 1]} : vector<2x32x128xf32> to vector<2x23x128xf32>
    %70 = arith.addf %64, %69 : vector<2x23x128xf32>
    %cst_35 = arith.constant dense<0xFF800000> : vector<2x128xf32>
    %71 = vector.multi_reduction <maximumf>, %70, %cst_35 [1] : vector<2x23x128xf32> to vector<2x128xf32>
    %c0_36 = arith.constant 0 : index
    %c0_37 = arith.constant 0 : index
    %72 = vector.load %arg4[%c0_36, %c0_37] : memref<1x128xf32, #tpu.memory_space<vmem>>, vector<1x128xf32>
    %73 = vector.broadcast %72 : vector<1x128xf32> to vector<2x128xf32>
    %74 = arith.addf %71, %73 : vector<2x128xf32>
    %c0_38 = arith.constant 0 : index
    %c0_39 = arith.constant 0 : index
    %75 = vector.load %arg16[%c0_38, %c0_39] : memref<2x512xf32, #tpu.memory_space<vmem>>, vector<2x128xf32>
    tpu.vector_store %arg16[%c0_38, %c0_39], %74 {strides = array<i32>} : memref<2x512xf32, #tpu.memory_space<vmem>>, vector<2x128xf32>,
    %cst_40 = arith.constant 0.000000e+00 : f32
    %76 = vector.broadcast %cst_40 : f32 to vector<2x26x128xf32>
    %c0_41 = arith.constant 0 : index
    %c0_42 = arith.constant 0 : index
    %c0_43 = arith.constant 0 : index
    %77 = vector.load %arg5[%c0_41, %c0_42, %c0_43] : memref<7x128x128xbf16, #tpu.memory_space<vmem>>, vector<1x128x128xbf16>
    %78 = vector.shape_cast %77 : vector<1x128x128xbf16> to vector<128x128xbf16>
    %cst_44 = arith.constant dense<0.000000e+00> : vector<64x128xf32>
    %79 = tpu.matmul %9, %78, %cst_44 {dimension_numbers = #tpu.dot_dimension_numbers<[1], [0], [0], [1], [0, 0, 1, 1], [], []>} : vector<64x128xbf16>, vector<128x128xbf16>, vector<64x128xf32> -> vector<64x128xf32>
    %80 = vector.shape_cast %79 : vector<64x128xf32> to vector<2x32x128xf32>
    %81 = vector.extract_strided_slice %80 {offsets = [0, 0, 0], sizes = [2, 26, 128], strides = [1, 1, 1]} : vector<2x32x128xf32> to vector<2x26x128xf32>
    %82 = arith.addf %76, %81 : vector<2x26x128xf32>
    %c1_45 = arith.constant 1 : index
    %c0_46 = arith.constant 0 : index
    %c0_47 = arith.constant 0 : index
    %83 = vector.load %arg5[%c1_45, %c0_46, %c0_47] : memref<7x128x128xbf16, #tpu.memory_space<vmem>>, vector<1x128x128xbf16>
    %84 = vector.shape_cast %83 : vector<1x128x128xbf16> to vector<128x128xbf16>
    %cst_48 = arith.constant dense<0.000000e+00> : vector<64x128xf32>
    %85 = tpu.matmul %9, %84, %cst_48 {dimension_numbers = #tpu.dot_dimension_numbers<[1], [0], [0], [1], [0, 0, 1, 1], [], []>} : vector<64x128xbf16>, vector<128x128xbf16>, vector<64x128xf32> -> vector<64x128xf32>
    %86 = vector.shape_cast %85 : vector<64x128xf32> to vector<2x32x128xf32>
    %87 = vector.extract_strided_slice %86 {offsets = [0, 1, 0], sizes = [2, 26, 128], strides = [1, 1, 1]} : vector<2x32x128xf32> to vector<2x26x128xf32>
    %88 = arith.addf %82, %87 : vector<2x26x128xf32>
    %c2_49 = arith.constant 2 : index
    %c0_50 = arith.constant 0 : index
    %c0_51 = arith.constant 0 : index
    %89 = vector.load %arg5[%c2_49, %c0_50, %c0_51] : memref<7x128x128xbf16, #tpu.memory_space<vmem>>, vector<1x128x128xbf16>
    %90 = vector.shape_cast %89 : vector<1x128x128xbf16> to vector<128x128xbf16>
    %cst_52 = arith.constant dense<0.000000e+00> : vector<64x128xf32>
    %91 = tpu.matmul %9, %90, %cst_52 {dimension_numbers = #tpu.dot_dimension_numbers<[1], [0], [0], [1], [0, 0, 1, 1], [], []>} : vector<64x128xbf16>, vector<128x128xbf16>, vector<64x128xf32> -> vector<64x128xf32>
    %92 = vector.shape_cast %91 : vector<64x128xf32> to vector<2x32x128xf32>
    %93 = vector.extract_strided_slice %92 {offsets = [0, 2, 0], sizes = [2, 26, 128], strides = [1, 1, 1]} : vector<2x32x128xf32> to vector<2x26x128xf32>
    %94 = arith.addf %88, %93 : vector<2x26x128xf32>
    %c3_53 = arith.constant 3 : index
    %c0_54 = arith.constant 0 : index
    %c0_55 = arith.constant 0 : index
    %95 = vector.load %arg5[%c3_53, %c0_54, %c0_55] : memref<7x128x128xbf16, #tpu.memory_space<vmem>>, vector<1x128x128xbf16>
    %96 = vector.shape_cast %95 : vector<1x128x128xbf16> to vector<128x128xbf16>
    %cst_56 = arith.constant dense<0.000000e+00> : vector<64x128xf32>
    %97 = tpu.matmul %9, %96, %cst_56 {dimension_numbers = #tpu.dot_dimension_numbers<[1], [0], [0], [1], [0, 0, 1, 1], [], []>} : vector<64x128xbf16>, vector<128x128xbf16>, vector<64x128xf32> -> vector<64x128xf32>
    %98 = vector.shape_cast %97 : vector<64x128xf32> to vector<2x32x128xf32>
    %99 = vector.extract_strided_slice %98 {offsets = [0, 3, 0], sizes = [2, 26, 128], strides = [1, 1, 1]} : vector<2x32x128xf32> to vector<2x26x128xf32>
    %100 = arith.addf %94, %99 : vector<2x26x128xf32>
    %c4_57 = arith.constant 4 : index
    %c0_58 = arith.constant 0 : index
    %c0_59 = arith.constant 0 : index
    %101 = vector.load %arg5[%c4_57, %c0_58, %c0_59] : memref<7x128x128xbf16, #tpu.memory_space<vmem>>, vector<1x128x128xbf16>
    %102 = vector.shape_cast %101 : vector<1x128x128xbf16> to vector<128x128xbf16>
    %cst_60 = arith.constant dense<0.000000e+00> : vector<64x128xf32>
    %103 = tpu.matmul %9, %102, %cst_60 {dimension_numbers = #tpu.dot_dimension_numbers<[1], [0], [0], [1], [0, 0, 1, 1], [], []>} : vector<64x128xbf16>, vector<128x128xbf16>, vector<64x128xf32> -> vector<64x128xf32>
    %104 = vector.shape_cast %103 : vector<64x128xf32> to vector<2x32x128xf32>
    %105 = vector.extract_strided_slice %104 {offsets = [0, 4, 0], sizes = [2, 26, 128], strides = [1, 1, 1]} : vector<2x32x128xf32> to vector<2x26x128xf32>
    %106 = arith.addf %100, %105 : vector<2x26x128xf32>
    %c5_61 = arith.constant 5 : index
    %c0_62 = arith.constant 0 : index
    %c0_63 = arith.constant 0 : index
    %107 = vector.load %arg5[%c5_61, %c0_62, %c0_63] : memref<7x128x128xbf16, #tpu.memory_space<vmem>>, vector<1x128x128xbf16>
    %108 = vector.shape_cast %107 : vector<1x128x128xbf16> to vector<128x128xbf16>
    %cst_64 = arith.constant dense<0.000000e+00> : vector<64x128xf32>
    %109 = tpu.matmul %9, %108, %cst_64 {dimension_numbers = #tpu.dot_dimension_numbers<[1], [0], [0], [1], [0, 0, 1, 1], [], []>} : vector<64x128xbf16>, vector<128x128xbf16>, vector<64x128xf32> -> vector<64x128xf32>
    %110 = vector.shape_cast %109 : vector<64x128xf32> to vector<2x32x128xf32>
    %111 = vector.extract_strided_slice %110 {offsets = [0, 5, 0], sizes = [2, 26, 128], strides = [1, 1, 1]} : vector<2x32x128xf32> to vector<2x26x128xf32>
    %112 = arith.addf %106, %111 : vector<2x26x128xf32>
    %c6_65 = arith.constant 6 : index
    %c0_66 = arith.constant 0 : index
    %c0_67 = arith.constant 0 : index
    %113 = vector.load %arg5[%c6_65, %c0_66, %c0_67] : memref<7x128x128xbf16, #tpu.memory_space<vmem>>, vector<1x128x128xbf16>
    %114 = vector.shape_cast %113 : vector<1x128x128xbf16> to vector<128x128xbf16>
    %cst_68 = arith.constant dense<0.000000e+00> : vector<64x128xf32>
    %115 = tpu.matmul %9, %114, %cst_68 {dimension_numbers = #tpu.dot_dimension_numbers<[1], [0], [0], [1], [0, 0, 1, 1], [], []>} : vector<64x128xbf16>, vector<128x128xbf16>, vector<64x128xf32> -> vector<64x128xf32>
    %116 = vector.shape_cast %115 : vector<64x128xf32> to vector<2x32x128xf32>
    %117 = vector.extract_strided_slice %116 {offsets = [0, 6, 0], sizes = [2, 26, 128], strides = [1, 1, 1]} : vector<2x32x128xf32> to vector<2x26x128xf32>
    %118 = arith.addf %112, %117 : vector<2x26x128xf32>
    %cst_69 = arith.constant dense<0xFF800000> : vector<2x128xf32>
    %119 = vector.multi_reduction <maximumf>, %118, %cst_69 [1] : vector<2x26x128xf32> to vector<2x128xf32>
    %c0_70 = arith.constant 0 : index
    %c0_71 = arith.constant 0 : index
    %120 = vector.load %arg6[%c0_70, %c0_71] : memref<1x128xf32, #tpu.memory_space<vmem>>, vector<1x128xf32>
    %121 = vector.broadcast %120 : vector<1x128xf32> to vector<2x128xf32>
    %122 = arith.addf %119, %121 : vector<2x128xf32>
    %c0_72 = arith.constant 0 : index
    %c128 = arith.constant 128 : index
    %123 = vector.load %arg16[%c0_72, %c128] : memref<2x512xf32, #tpu.memory_space<vmem>>, vector<2x128xf32>
    tpu.vector_store %arg16[%c0_72, %c128], %122 {strides = array<i32>} : memref<2x512xf32, #tpu.memory_space<vmem>>, vector<2x128xf32>,
    %cst_73 = arith.constant 0.000000e+00 : f32
    %124 = vector.broadcast %cst_73 : f32 to vector<2x28x128xf32>
    %c0_74 = arith.constant 0 : index
    %c0_75 = arith.constant 0 : index
    %c0_76 = arith.constant 0 : index
    %125 = vector.load %arg7[%c0_74, %c0_75, %c0_76] : memref<5x128x128xbf16, #tpu.memory_space<vmem>>, vector<1x128x128xbf16>
    %126 = vector.shape_cast %125 : vector<1x128x128xbf16> to vector<128x128xbf16>
    %cst_77 = arith.constant dense<0.000000e+00> : vector<64x128xf32>
    %127 = tpu.matmul %9, %126, %cst_77 {dimension_numbers = #tpu.dot_dimension_numbers<[1], [0], [0], [1], [0, 0, 1, 1], [], []>} : vector<64x128xbf16>, vector<128x128xbf16>, vector<64x128xf32> -> vector<64x128xf32>
    %128 = vector.shape_cast %127 : vector<64x128xf32> to vector<2x32x128xf32>
    %129 = vector.extract_strided_slice %128 {offsets = [0, 0, 0], sizes = [2, 28, 128], strides = [1, 1, 1]} : vector<2x32x128xf32> to vector<2x28x128xf32>
    %130 = arith.addf %124, %129 : vector<2x28x128xf32>
    %c1_78 = arith.constant 1 : index
    %c0_79 = arith.constant 0 : index
    %c0_80 = arith.constant 0 : index
    %131 = vector.load %arg7[%c1_78, %c0_79, %c0_80] : memref<5x128x128xbf16, #tpu.memory_space<vmem>>, vector<1x128x128xbf16>
    %132 = vector.shape_cast %131 : vector<1x128x128xbf16> to vector<128x128xbf16>
    %cst_81 = arith.constant dense<0.000000e+00> : vector<64x128xf32>
    %133 = tpu.matmul %9, %132, %cst_81 {dimension_numbers = #tpu.dot_dimension_numbers<[1], [0], [0], [1], [0, 0, 1, 1], [], []>} : vector<64x128xbf16>, vector<128x128xbf16>, vector<64x128xf32> -> vector<64x128xf32>
    %134 = vector.shape_cast %133 : vector<64x128xf32> to vector<2x32x128xf32>
    %135 = vector.extract_strided_slice %134 {offsets = [0, 1, 0], sizes = [2, 28, 128], strides = [1, 1, 1]} : vector<2x32x128xf32> to vector<2x28x128xf32>
    %136 = arith.addf %130, %135 : vector<2x28x128xf32>
    %c2_82 = arith.constant 2 : index
    %c0_83 = arith.constant 0 : index
    %c0_84 = arith.constant 0 : index
    %137 = vector.load %arg7[%c2_82, %c0_83, %c0_84] : memref<5x128x128xbf16, #tpu.memory_space<vmem>>, vector<1x128x128xbf16>
    %138 = vector.shape_cast %137 : vector<1x128x128xbf16> to vector<128x128xbf16>
    %cst_85 = arith.constant dense<0.000000e+00> : vector<64x128xf32>
    %139 = tpu.matmul %9, %138, %cst_85 {dimension_numbers = #tpu.dot_dimension_numbers<[1], [0], [0], [1], [0, 0, 1, 1], [], []>} : vector<64x128xbf16>, vector<128x128xbf16>, vector<64x128xf32> -> vector<64x128xf32>
    %140 = vector.shape_cast %139 : vector<64x128xf32> to vector<2x32x128xf32>
    %141 = vector.extract_strided_slice %140 {offsets = [0, 2, 0], sizes = [2, 28, 128], strides = [1, 1, 1]} : vector<2x32x128xf32> to vector<2x28x128xf32>
    %142 = arith.addf %136, %141 : vector<2x28x128xf32>
    %c3_86 = arith.constant 3 : index
    %c0_87 = arith.constant 0 : index
    %c0_88 = arith.constant 0 : index
    %143 = vector.load %arg7[%c3_86, %c0_87, %c0_88] : memref<5x128x128xbf16, #tpu.memory_space<vmem>>, vector<1x128x128xbf16>
    %144 = vector.shape_cast %143 : vector<1x128x128xbf16> to vector<128x128xbf16>
    %cst_89 = arith.constant dense<0.000000e+00> : vector<64x128xf32>
    %145 = tpu.matmul %9, %144, %cst_89 {dimension_numbers = #tpu.dot_dimension_numbers<[1], [0], [0], [1], [0, 0, 1, 1], [], []>} : vector<64x128xbf16>, vector<128x128xbf16>, vector<64x128xf32> -> vector<64x128xf32>
    %146 = vector.shape_cast %145 : vector<64x128xf32> to vector<2x32x128xf32>
    %147 = vector.extract_strided_slice %146 {offsets = [0, 3, 0], sizes = [2, 28, 128], strides = [1, 1, 1]} : vector<2x32x128xf32> to vector<2x28x128xf32>
    %148 = arith.addf %142, %147 : vector<2x28x128xf32>
    %c4_90 = arith.constant 4 : index
    %c0_91 = arith.constant 0 : index
    %c0_92 = arith.constant 0 : index
    %149 = vector.load %arg7[%c4_90, %c0_91, %c0_92] : memref<5x128x128xbf16, #tpu.memory_space<vmem>>, vector<1x128x128xbf16>
    %150 = vector.shape_cast %149 : vector<1x128x128xbf16> to vector<128x128xbf16>
    %cst_93 = arith.constant dense<0.000000e+00> : vector<64x128xf32>
    %151 = tpu.matmul %9, %150, %cst_93 {dimension_numbers = #tpu.dot_dimension_numbers<[1], [0], [0], [1], [0, 0, 1, 1], [], []>} : vector<64x128xbf16>, vector<128x128xbf16>, vector<64x128xf32> -> vector<64x128xf32>
    %152 = vector.shape_cast %151 : vector<64x128xf32> to vector<2x32x128xf32>
    %153 = vector.extract_strided_slice %152 {offsets = [0, 4, 0], sizes = [2, 28, 128], strides = [1, 1, 1]} : vector<2x32x128xf32> to vector<2x28x128xf32>
    %154 = arith.addf %148, %153 : vector<2x28x128xf32>
    %cst_94 = arith.constant dense<0xFF800000> : vector<2x128xf32>
    %155 = vector.multi_reduction <maximumf>, %154, %cst_94 [1] : vector<2x28x128xf32> to vector<2x128xf32>
    %c0_95 = arith.constant 0 : index
    %c0_96 = arith.constant 0 : index
    %156 = vector.load %arg8[%c0_95, %c0_96] : memref<1x128xf32, #tpu.memory_space<vmem>>, vector<1x128xf32>
    %157 = vector.broadcast %156 : vector<1x128xf32> to vector<2x128xf32>
    %158 = arith.addf %155, %157 : vector<2x128xf32>
    %c0_97 = arith.constant 0 : index
    %c256 = arith.constant 256 : index
    %159 = vector.load %arg16[%c0_97, %c256] : memref<2x512xf32, #tpu.memory_space<vmem>>, vector<2x128xf32>
    tpu.vector_store %arg16[%c0_97, %c256], %158 {strides = array<i32>} : memref<2x512xf32, #tpu.memory_space<vmem>>, vector<2x128xf32>,
    %cst_98 = arith.constant 0.000000e+00 : f32
    %160 = vector.broadcast %cst_98 : f32 to vector<2x30x128xf32>
    %c0_99 = arith.constant 0 : index
    %c0_100 = arith.constant 0 : index
    %c0_101 = arith.constant 0 : index
    %161 = vector.load %arg9[%c0_99, %c0_100, %c0_101] : memref<3x128x128xbf16, #tpu.memory_space<vmem>>, vector<1x128x128xbf16>
    %162 = vector.shape_cast %161 : vector<1x128x128xbf16> to vector<128x128xbf16>
    %cst_102 = arith.constant dense<0.000000e+00> : vector<64x128xf32>
    %163 = tpu.matmul %9, %162, %cst_102 {dimension_numbers = #tpu.dot_dimension_numbers<[1], [0], [0], [1], [0, 0, 1, 1], [], []>} : vector<64x128xbf16>, vector<128x128xbf16>, vector<64x128xf32> -> vector<64x128xf32>
    %164 = vector.shape_cast %163 : vector<64x128xf32> to vector<2x32x128xf32>
    %165 = vector.extract_strided_slice %164 {offsets = [0, 0, 0], sizes = [2, 30, 128], strides = [1, 1, 1]} : vector<2x32x128xf32> to vector<2x30x128xf32>
    %166 = arith.addf %160, %165 : vector<2x30x128xf32>
    %c1_103 = arith.constant 1 : index
    %c0_104 = arith.constant 0 : index
    %c0_105 = arith.constant 0 : index
    %167 = vector.load %arg9[%c1_103, %c0_104, %c0_105] : memref<3x128x128xbf16, #tpu.memory_space<vmem>>, vector<1x128x128xbf16>
    %168 = vector.shape_cast %167 : vector<1x128x128xbf16> to vector<128x128xbf16>
    %cst_106 = arith.constant dense<0.000000e+00> : vector<64x128xf32>
    %169 = tpu.matmul %9, %168, %cst_106 {dimension_numbers = #tpu.dot_dimension_numbers<[1], [0], [0], [1], [0, 0, 1, 1], [], []>} : vector<64x128xbf16>, vector<128x128xbf16>, vector<64x128xf32> -> vector<64x128xf32>
    %170 = vector.shape_cast %169 : vector<64x128xf32> to vector<2x32x128xf32>
    %171 = vector.extract_strided_slice %170 {offsets = [0, 1, 0], sizes = [2, 30, 128], strides = [1, 1, 1]} : vector<2x32x128xf32> to vector<2x30x128xf32>
    %172 = arith.addf %166, %171 : vector<2x30x128xf32>
    %c2_107 = arith.constant 2 : index
    %c0_108 = arith.constant 0 : index
    %c0_109 = arith.constant 0 : index
    %173 = vector.load %arg9[%c2_107, %c0_108, %c0_109] : memref<3x128x128xbf16, #tpu.memory_space<vmem>>, vector<1x128x128xbf16>
    %174 = vector.shape_cast %173 : vector<1x128x128xbf16> to vector<128x128xbf16>
    %cst_110 = arith.constant dense<0.000000e+00> : vector<64x128xf32>
    %175 = tpu.matmul %9, %174, %cst_110 {dimension_numbers = #tpu.dot_dimension_numbers<[1], [0], [0], [1], [0, 0, 1, 1], [], []>} : vector<64x128xbf16>, vector<128x128xbf16>, vector<64x128xf32> -> vector<64x128xf32>
    %176 = vector.shape_cast %175 : vector<64x128xf32> to vector<2x32x128xf32>
    %177 = vector.extract_strided_slice %176 {offsets = [0, 2, 0], sizes = [2, 30, 128], strides = [1, 1, 1]} : vector<2x32x128xf32> to vector<2x30x128xf32>
    %178 = arith.addf %172, %177 : vector<2x30x128xf32>
    %cst_111 = arith.constant dense<0xFF800000> : vector<2x128xf32>
    %179 = vector.multi_reduction <maximumf>, %178, %cst_111 [1] : vector<2x30x128xf32> to vector<2x128xf32>
    %c0_112 = arith.constant 0 : index
    %c0_113 = arith.constant 0 : index
    %180 = vector.load %arg10[%c0_112, %c0_113] : memref<1x128xf32, #tpu.memory_space<vmem>>, vector<1x128xf32>
    %181 = vector.broadcast %180 : vector<1x128xf32> to vector<2x128xf32>
    %182 = arith.addf %179, %181 : vector<2x128xf32>
    %c0_114 = arith.constant 0 : index
    %c384 = arith.constant 384 : index
    %183 = vector.load %arg16[%c0_114, %c384] : memref<2x512xf32, #tpu.memory_space<vmem>>, vector<2x128xf32>
    tpu.vector_store %arg16[%c0_114, %c384], %182 {strides = array<i32>} : memref<2x512xf32, #tpu.memory_space<vmem>>, vector<2x128xf32>,
    %c0_115 = arith.constant 0 : index
    %c0_116 = arith.constant 0 : index
    %184 = vector.load %arg16[%c0_115, %c0_116] : memref<2x512xf32, #tpu.memory_space<vmem>>, vector<2x512xf32>
    %185 = arith.truncf %184 : vector<2x512xf32> to vector<2x512xbf16>
    %c0_117 = arith.constant 0 : index
    %c0_118 = arith.constant 0 : index
    %186 = vector.load %arg11[%c0_117, %c0_118] : memref<512x384xbf16, #tpu.memory_space<vmem>>, vector<512x384xbf16>
    %cst_119 = arith.constant dense<0.000000e+00> : vector<2x384xf32>
    %187 = tpu.matmul %185, %186, %cst_119 {dimension_numbers = #tpu.dot_dimension_numbers<[1], [0], [0], [1], [0, 0, 1, 1], [], []>} : vector<2x512xbf16>, vector<512x384xbf16>, vector<2x384xf32> -> vector<2x384xf32>
    %c0_120 = arith.constant 0 : index
    %c0_121 = arith.constant 0 : index
    %188 = vector.load %arg12[%c0_120, %c0_121] : memref<1x384xf32, #tpu.memory_space<vmem>>, vector<1x384xf32>
    %189 = vector.broadcast %188 : vector<1x384xf32> to vector<2x384xf32>
    %190 = arith.addf %187, %189 : vector<2x384xf32>
    %cst_122 = arith.constant 0.000000e+00 : f32
    %191 = vector.broadcast %cst_122 : f32 to vector<2x384xf32>
    %192 = arith.maximumf %190, %191 : vector<2x384xf32>
    %193 = arith.truncf %192 : vector<2x384xf32> to vector<2x384xbf16>
    %c0_123 = arith.constant 0 : index
    %c0_124 = arith.constant 0 : index
    %194 = vector.load %arg13[%c0_123, %c0_124] : memref<384x2xbf16, #tpu.memory_space<vmem>>, vector<384x2xbf16>
    %cst_125 = arith.constant dense<0.000000e+00> : vector<2x2xf32>
    %195 = tpu.matmul %193, %194, %cst_125 {dimension_numbers = #tpu.dot_dimension_numbers<[1], [0], [0], [1], [0, 0, 1, 1], [], []>} : vector<2x384xbf16>, vector<384x2xbf16>, vector<2x2xf32> -> vector<2x2xf32>
    %c0_126 = arith.constant 0 : index
    %c0_127 = arith.constant 0 : index
    %196 = vector.load %arg14[%c0_126, %c0_127] : memref<1x2xf32, #tpu.memory_space<vmem>>, vector<1x2xf32>
    %197 = vector.broadcast %196 : vector<1x2xf32> to vector<2x2xf32>
    %198 = arith.addf %195, %197 : vector<2x2xf32>
    %c0_128 = arith.constant 0 : index
    %c0_129 = arith.constant 0 : index
    %199 = vector.load %arg15[%c0_128, %c0_129] : memref<2x2xf32, #tpu.memory_space<vmem>>, vector<2x2xf32>
    tpu.vector_store %arg15[%c0_128, %c0_129], %198 {strides = array<i32>} : memref<2x2xf32, #tpu.memory_space<vmem>>, vector<2x2xf32>,
    return
  }
  func.func @transform_0(%arg0: i32) -> (i32, i32) {
    %c0_i32 = arith.constant 0 : i32
    %c0_i32_0 = arith.constant 0 : i32
    return %arg0, %c0_i32 : i32, i32
  }
  func.func @transform_1(%arg0: i32) -> (i32, i32) {
    %c0_i32 = arith.constant 0 : i32
    %c0_i32_0 = arith.constant 0 : i32
    %c0_i32_1 = arith.constant 0 : i32
    return %c0_i32, %c0_i32_0 : i32, i32
  }
  func.func @transform_2(%arg0: i32) -> (i32, i32, i32) {
    %c0_i32 = arith.constant 0 : i32
    %c0_i32_0 = arith.constant 0 : i32
    %c0_i32_1 = arith.constant 0 : i32
    %c0_i32_2 = arith.constant 0 : i32
    return %c0_i32, %c0_i32_0, %c0_i32_1 : i32, i32, i32
  }
  func.func @transform_3(%arg0: i32) -> (i32, i32) {
    %c0_i32 = arith.constant 0 : i32
    %c0_i32_0 = arith.constant 0 : i32
    %c0_i32_1 = arith.constant 0 : i32
    return %c0_i32, %c0_i32_0 : i32, i32
  }
  func.func @transform_4(%arg0: i32) -> (i32, i32, i32) {
    %c0_i32 = arith.constant 0 : i32
    %c0_i32_0 = arith.constant 0 : i32
    %c0_i32_1 = arith.constant 0 : i32
    %c0_i32_2 = arith.constant 0 : i32
    return %c0_i32, %c0_i32_0, %c0_i32_1 : i32, i32, i32
  }
  func.func @transform_5(%arg0: i32) -> (i32, i32) {
    %c0_i32 = arith.constant 0 : i32
    %c0_i32_0 = arith.constant 0 : i32
    %c0_i32_1 = arith.constant 0 : i32
    return %c0_i32, %c0_i32_0 : i32, i32
  }
  func.func @transform_6(%arg0: i32) -> (i32, i32, i32) {
    %c0_i32 = arith.constant 0 : i32
    %c0_i32_0 = arith.constant 0 : i32
    %c0_i32_1 = arith.constant 0 : i32
    %c0_i32_2 = arith.constant 0 : i32
    return %c0_i32, %c0_i32_0, %c0_i32_1 : i32, i32, i32
  }
  func.func @transform_7(%arg0: i32) -> (i32, i32) {
    %c0_i32 = arith.constant 0 : i32
    %c0_i32_0 = arith.constant 0 : i32
    %c0_i32_1 = arith.constant 0 : i32
    return %c0_i32, %c0_i32_0 : i32, i32
  }
  func.func @transform_8(%arg0: i32) -> (i32, i32, i32) {
    %c0_i32 = arith.constant 0 : i32
    %c0_i32_0 = arith.constant 0 : i32
    %c0_i32_1 = arith.constant 0 : i32
    %c0_i32_2 = arith.constant 0 : i32
    return %c0_i32, %c0_i32_0, %c0_i32_1 : i32, i32, i32
  }
  func.func @transform_9(%arg0: i32) -> (i32, i32) {
    %c0_i32 = arith.constant 0 : i32
    %c0_i32_0 = arith.constant 0 : i32
    %c0_i32_1 = arith.constant 0 : i32
    return %c0_i32, %c0_i32_0 : i32, i32
  }
  func.func @transform_10(%arg0: i32) -> (i32, i32) {
    %c0_i32 = arith.constant 0 : i32
    %c0_i32_0 = arith.constant 0 : i32
    %c0_i32_1 = arith.constant 0 : i32
    return %c0_i32, %c0_i32_0 : i32, i32
  }
  func.func @transform_11(%arg0: i32) -> (i32, i32) {
    %c0_i32 = arith.constant 0 : i32
    %c0_i32_0 = arith.constant 0 : i32
    %c0_i32_1 = arith.constant 0 : i32
    return %c0_i32, %c0_i32_0 : i32, i32
  }
  func.func @transform_12(%arg0: i32) -> (i32, i32) {
    %c0_i32 = arith.constant 0 : i32
    %c0_i32_0 = arith.constant 0 : i32
    %c0_i32_1 = arith.constant 0 : i32
    return %c0_i32, %c0_i32_0 : i32, i32
  }
  func.func @transform_13(%arg0: i32) -> (i32, i32) {
    %c0_i32 = arith.constant 0 : i32
    %c0_i32_0 = arith.constant 0 : i32
    %c0_i32_1 = arith.constant 0 : i32
    return %c0_i32, %c0_i32_0 : i32, i32
  }
  func.func @transform_14(%arg0: i32) -> (i32, i32) {
    %c0_i32 = arith.constant 0 : i32
    %c0_i32_0 = arith.constant 0 : i32
    return %arg0, %c0_i32 : i32, i32
  }
}

</mosaic_0001>

<bundles_post_ra>
// kernel: net_forward.1
= control target key start
LH: loop header
LB: loop body
LE: loop exit
PB: predicated region body
PF: predicated region fallthrough
CT: control target
= control target key end

     0   :  { %19 = vsyncpa [#allocation4], 0  ;;  %s8364_s0 = inlined_call_operand.vmem [shape: s32[64,1], index: 0, kind: input, shape index: {}]   ;;  %s8365_s1 = inlined_call_operand.vmem [shape: bf16[128,128], index: 1, kind: input, shape index: {}]   ;;  %s8366_s2 = inlined_call_operand.hbm [shape: bf16[10,128,128], index: 2, kind: input, shape index: {}]   ;;  %s8367_s3 = inlined_call_operand.vmem [shape: f32[1,128], index: 3, kind: input, shape index: {}]   ;;  %s8368_s4 = inlined_call_operand.hbm [shape: bf16[7,128,128], index: 4, kind: input, shape index: {}]   ;;  %s8369_s5 = inlined_call_operand.vmem [shape: f32[1,128], index: 5, kind: input, shape index: {}]   ;;  %s8370_s6 = inlined_call_operand.hbm [shape: bf16[5,128,128], index: 6, kind: input, shape index: {}]   ;;  %s8371_s7 = inlined_call_operand.vmem [shape: f32[1,128], index: 7, kind: input, shape index: {}]   ;;  %s8372_s8 = inlined_call_operand.vmem [shape: bf16[3,128,128], index: 8, kind: input, shape index: {}]   ;;  %s8373_s9 = inlined_call_operand.vmem [shape: f32[1,128], index: 9, kind: input, shape index: {}]   ;;  %s8374_s10 = inlined_call_operand.hbm [shape: bf16[512,384], index: 10, kind: input, shape index: {}]   ;;  %s8375_s11 = inlined_call_operand.vmem [shape: f32[1,384], index: 11, kind: input, shape index: {}]   ;;  %s8376_s12 = inlined_call_operand.vmem [shape: bf16[384,2], index: 12, kind: input, shape index: {}]   ;;  %s8377_s13 = inlined_call_operand.vmem [shape: f32[1,2], index: 13, kind: input, shape index: {}]   ;;  %s8378_s14 = inlined_call_operand.hbm [shape: f32[2,2], index: 14, kind: output, shape index: {}]  }
   0x1   :  { %20 = vsyncpa [#allocation7], 0 }
   0x2   :  { %21 = vsyncpa [#allocation10], 0 }
   0x3   :  { %22 = vsyncpa [#allocation5], 0  ;;  %s7579_s29 = smov [#allocation6]   ;;  %s7580_s15 = smov [#allocation3]  }
   0x4   :  { %s46_s30 = sshll.u32 %s7579_s29, 4  ;;  %s32_s16 = sshll.u32 %s7580_s15, 4  ;;  %s47_s30 = int_to_ptr.vmem [resolvable:$true] %s46_s30  ;;  %s7668_s16 = int_to_ptr.vmem [resolvable:$true] %s32_s16 }
   0x5   :  { %s7461_s19 = scalar_lea.hbm %s8368_s4, 7168 }
   0x6   :  { %p7462_p0 = scmp.ne.s32.totalorder %s8368_s4, %s7461_s19  ;;  %p7465_p1 = scmp.lt.u32.totalorder %s7461_s19, %s8368_s4 }
   0x8   :  { %p7467_p2 = pnand %p7465_p1, %p7462_p0 }
   0xa   :  { %7470 = shalt.err (!%p7467_p2)
}
   0xb   :  { %s7471_s24 = scalar_lea.vmem %s47_s30, 7168  ;;  %p7476_p4 = scmp.lt.s32.totalorder %s47_s30, %s47_s30 }
   0xc   :  { %p7472_p3 = scmp.ne.s32.totalorder %s47_s30, %s7471_s24  ;;  %p7477_p5 = scmp.lt.s32.totalorder %s7471_s24, %s7471_s24 }
   0xe   :  { %p7478_p6 = por %p7477_p5, %p7476_p4 }
  0x10   :  { %p7479_p7 = pnand %p7478_p6, %p7472_p3 }
  0x12   :  { %7482 = shalt.err (!%p7479_p7)
}
  0x13   :  { %s7581_s25 = smov 64   ;;  %s7582_s26 = smov 4  }
  0x14   :  { %52 = dma.hbm_to_vmem [thread:$0]  %s8368_s4, 7168, %s47_s30, [#allocation7], %s7581_s25, %s7581_s25, %s7582_s26  }
  0x15   :  { %s7483_s17 = scalar_lea.hbm %s8366_s2, 10240 }
  0x16   :  { %p7484_p8 = scmp.ne.s32.totalorder %s8366_s2, %s7483_s17  ;;  %p7487_p9 = scmp.lt.u32.totalorder %s7483_s17, %s8366_s2 }
  0x18   :  { %p7489_p10 = pnand %p7487_p9, %p7484_p8 }
  0x1a   :  { %7492 = shalt.err (!%p7489_p10)
}
  0x1b   :  { %s7493_s22 = scalar_lea.vmem %s7668_s16, 10240  ;;  %p7498_p12 = scmp.lt.s32.totalorder %s7668_s16, %s7668_s16 }
  0x1c   :  { %p7494_p11 = scmp.ne.s32.totalorder %s7668_s16, %s7493_s22  ;;  %p7499_p13 = scmp.lt.s32.totalorder %s7493_s22, %s7493_s22 }
  0x1e   :  { %p7500_p0 = por %p7499_p13, %p7498_p12 }
  0x20   :  { %p7501_p1 = pnand %p7500_p0, %p7494_p11 }
  0x22   :  { %7504 = shalt.err (!%p7501_p1)
}
  0x23   :  { %38 = dma.hbm_to_vmem [thread:$0]  %s8366_s2, 10240, %s7668_s16, [#allocation4], %s7581_s25, %s7581_s25, %s7582_s26  }
  0x24   :  { %s7583_s23 = smov [#allocation8]   ;;  %s7584_s27 = smov [#allocation9]  }
  0x25   :  { %s60_s24 = sshll.u32 %s7583_s23, 4  ;;  %s78_s28 = sshll.u32 %s7584_s27, 4  ;;  %s61_s24 = int_to_ptr.vmem [resolvable:$true] %s60_s24  ;;  %s7705_s28 = int_to_ptr.vmem [resolvable:$true] %s78_s28 }
  0x26   :  { %s7505_s17 = scalar_lea.hbm %s8370_s6, 5120 }
  0x27   :  { %p7506_p2 = scmp.ne.s32.totalorder %s8370_s6, %s7505_s17  ;;  %p7509_p3 = scmp.lt.u32.totalorder %s7505_s17, %s8370_s6 }
  0x29   :  { %p7511_p4 = pnand %p7509_p3, %p7506_p2 }
  0x2b   :  { %7514 = shalt.err (!%p7511_p4)
}
  0x2c   :  { %s7515_s2 = scalar_lea.vmem %s61_s24, 5120  ;;  %p7520_p6 = scmp.lt.s32.totalorder %s61_s24, %s61_s24 }
  0x2d   :  { %p7516_p5 = scmp.ne.s32.totalorder %s61_s24, %s7515_s2  ;;  %p7521_p7 = scmp.lt.s32.totalorder %s7515_s2, %s7515_s2 }
  0x2f   :  { %p7522_p8 = por %p7521_p7, %p7520_p6 }
  0x31   :  { %p7523_p9 = pnand %p7522_p8, %p7516_p5 }
  0x33   :  { %7526 = shalt.err (!%p7523_p9)
}
  0x34   :  { %66 = dma.hbm_to_vmem [thread:$0]  %s8370_s6, 5120, %s61_s24, [#allocation7], %s7581_s25, %s7581_s25, %s7582_s26  }
  0x35   :  { %s7527_s23 = scalar_lea.hbm %s8374_s10, 12288 }
  0x36   :  { %p7528_p10 = scmp.ne.s32.totalorder %s8374_s10, %s7527_s23  ;;  %p7531_p11 = scmp.lt.u32.totalorder %s7527_s23, %s8374_s10 }
  0x38   :  { %p7533_p12 = pnand %p7531_p11, %p7528_p10 }
  0x3a   :  { %7536 = shalt.err (!%p7533_p12)
}
  0x3b   :  { %s7537_s18 = scalar_lea.vmem %s7705_s28, 12288  ;;  %p7542_p0 = scmp.lt.s32.totalorder %s7705_s28, %s7705_s28 }
  0x3c   :  { %p7538_p13 = scmp.ne.s32.totalorder %s7705_s28, %s7537_s18  ;;  %p7543_p1 = scmp.lt.s32.totalorder %s7537_s18, %s7537_s18 }
  0x3e   :  { %p7544_p2 = por %p7543_p1, %p7542_p0 }
  0x40   :  { %p7545_p3 = pnand %p7544_p2, %p7538_p13 }
  0x42   :  { %7548 = shalt.err (!%p7545_p3)
}
  0x43   :  { %s7585_s6 = smov 192   ;;  %s7586_s25 = smov 12  }
  0x44   :  { %84 = dma.hbm_to_vmem [thread:$0]  %s8374_s10, 12288, %s7705_s28, [#allocation10], %s7585_s6, %s7585_s6, %s7586_s25  }
  0x45   :  { %7571 = dma.done.wait [#allocation4], 10240  }
  0x46   :  { %7572 = vsyncadd [#allocation4], 4294957056 }
  0x47   :  { %7573 = dma.done.wait [#allocation7], 12288  }
  0x48   :  { %7574 = vsyncadd [#allocation7], 4294955008 }
  0x49   :  { %7575 = dma.done.wait [#allocation10], 12288  }
  0x4a   :  { %7576 = vsyncadd [#allocation10], 4294955008  ;;  %v7587_v0 = vmov 0   ;;  %v106_v1 = vld [vmem:[%s8364_s0 + $0x10] sm:$0xff]  ;;  %v104_v2 = vld [vmem:[%s8364_s0] sm:$0xff]  ;;  %v112_v20 = vlaneseq  ;;  %vm566_vm12 = vcmask 1046528  }
  0x4b   :  { %7099 = vset.pattern.permute.xlu1 %v7587_v0  ;;  %7098 = vset.pattern.permute.xlu0 %v7587_v0  ;;  %v107_v3 = vld [vmem:[%s8364_s0 + $0x18] sm:$0xff]  ;;  %v105_v4 = vld [vmem:[%s8364_s0 + $0x8] sm:$0xff]  ;;  %v7100_v5 = vld [vmem:[%s8365_s1] sm:$0xff]   ;;  %v7588_v32 = vmov 1.0|1.0   ;;  %vm727_vm13 = vcmask 1045504  }
  0x4c   :  { %121 = vperm.xlu1 %7099, %v106_v1   ;;  %115 = vperm.xlu0 %7098, %v104_v2   ;;  %v7101_v6 = vld [vmem:[%s8365_s1 + $0x8] sm:$0xff]   ;;  %v108_v8 = vld [vmem:[%s8364_s0 + $0x20] sm:$0xff]  ;;  %v111_v9 = vld [vmem:[%s8364_s0 + $0x38] sm:$0xff]  ;;  %v113_v23 = vand.u32 127, %v112_v20  ;;  %vm892_vm14 = vcmask 1044480   ;;  %vm1057_vm15 = vcmask 1043456  }
  0x4d   :  { %v109_v7 = vld [vmem:[%s8364_s0 + $0x28] sm:$0xff]  ;;  %6434 = vmatprep.subr.bf16.mxu0 %v7100_v5  ;;  %v7102_v10 = vld [vmem:[%s8365_s1 + $0x10] sm:$0xff]   ;;  %v7103_v12 = vld [vmem:[%s8365_s1 + $0x18] sm:$0xff]   ;;  %s7592_s6 = smov [#allocation11]  }
  0x4e   :  { %6435 = vmatpush3.bf16.msra.mxu0 %v7100_v5  ;;  %v110_v11 = vld [vmem:[%s8364_s0 + $0x30] sm:$0xff]  ;;  %v7104_v13 = vld [vmem:[%s8365_s1 + $0x20] sm:$0xff]   ;;  %v7108_v14 = vld [vmem:[#allocation3] sm:$0xff]  }
  0x4f   :  { %6436 = vmatprep.subr.bf16.mxu0 %v7101_v6  ;;  %v7110_v15 = vld [vmem:[#allocation3 + $0x8] sm:$0xff]   ;;  %v7105_v16 = vld [vmem:[%s8365_s1 + $0x28] sm:$0xff]   ;;  %6458 = vmatprep.subr.bf16.mxu1 %v7108_v14  ;;  %v7112_v17 = vld [vmem:[#allocation3 + $0x10] sm:$0xff]  }
  0x50   :  { %124 = vperm.xlu1 %7099, %v107_v3   ;;  %118 = vperm.xlu0 %7098, %v105_v4   ;;  %v7106_v18 = vld [vmem:[%s8365_s1 + $0x30] sm:$0xff]   ;;  %v7114_v19 = vld [vmem:[#allocation3 + $0x18] sm:$0xff]   ;;  %v7107_v21 = vld [vmem:[%s8365_s1 + $0x38] sm:$0xff]  }
  0x51   :  { %6459 = vmatpush3.bf16.msra.mxu1 %v7108_v14  ;;  %v7116_v22 = vld [vmem:[#allocation3 + $0x20] sm:$0xff]   ;;  %v7118_v25 = vld [vmem:[#allocation3 + $0x28] sm:$0xff]   ;;  %v7120_v26 = vld [vmem:[#allocation3 + $0x30] sm:$0xff]  }
  0x52   :  { %6437 = vmatpush3.bf16.msra.mxu0 %v7101_v6  ;;  %6460 = vmatprep.subr.bf16.mxu1 %v7110_v15  ;;  %v7109_v24 = vld [vmem:[#allocation3 + $0x40] sm:$0xff]   ;;  %v7111_v31 = vld [vmem:[#allocation3 + $0x48] sm:$0xff]   ;;  %v7113_v35 = vld [vmem:[#allocation3 + $0x50] sm:$0xff]  }
  0x53   :  { %6438 = vmatprep.subr.bf16.mxu0 %v7102_v10  ;;  %v7115_v38 = vld [vmem:[#allocation3 + $0x58] sm:$0xff]   ;;  %v7117_v39 = vld [vmem:[#allocation3 + $0x60] sm:$0xff]   ;;  %v7119_v40 = vld [vmem:[#allocation3 + $0x68] sm:$0xff]  }
  0x54   :  { %130 = vperm.xlu1 %7099, %v109_v7   ;;  %127 = vperm.xlu0 %7098, %v108_v8   ;;  %v7121_v41 = vld [vmem:[#allocation3 + $0x70] sm:$0xff]   ;;  %v7122_v42 = vld [vmem:[#allocation3 + $0x38] sm:$0xff]   ;;  %v7124_v44 = vld [vmem:[#allocation3 + $0x80] sm:$0xff]  }
  0x55   :  { %6461 = vmatpush3.bf16.msra.mxu1 %v7110_v15  ;;  %v7123_v43 = vld [vmem:[#allocation3 + $0x78] sm:$0xff]   ;;  %v7125_v45 = vld [vmem:[#allocation3 + $0xc0] sm:$0xff]   ;;  %v7126_v52 = vld [vmem:[#allocation3 + $0x88] sm:$0xff]  }
  0x56   :  { %6439 = vmatpush3.bf16.msra.mxu0 %v7102_v10  ;;  %6462 = vmatprep.subr.bf16.mxu1 %v7112_v17  ;;  %v7127_v53 = vld [vmem:[#allocation3 + $0xc8] sm:$0xff]   ;;  %v7128_v56 = vld [vmem:[#allocation3 + $0x90] sm:$0xff]   ;;  %v7130_v62 = vld [vmem:[#allocation3 + $0x98] sm:$0xff]  }
  0x57   :  { %6440 = vmatprep.subr.bf16.mxu0 %v7103_v12  ;;  %v7129_v57 = vld [vmem:[#allocation3 + $0xd0] sm:$0xff]   ;;  %v7131_v63 = vld [vmem:[#allocation3 + $0xd8] sm:$0xff]   ;;  %v7132_v0 = vld [vmem:[#allocation3 + $0xa0] sm:$0xff]  }
  0x58   :  { %136 = vperm.xlu1 %7099, %v111_v9   ;;  %133 = vperm.xlu0 %7098, %v110_v11   ;;  %v7133_v1 = vld [vmem:[#allocation3 + $0xe0] sm:$0xff]   ;;  %v7134_v2 = vld [vmem:[#allocation3 + $0xa8] sm:$0xff]   ;;  %v7136_v4 = vld [vmem:[#allocation3 + $0xb0] sm:$0xff]  }
  0x59   :  { %6463 = vmatpush3.bf16.msra.mxu1 %v7112_v17  ;;  %v7135_v3 = vld [vmem:[#allocation3 + $0xe8] sm:$0xff]   ;;  %v7137_v5 = vld [vmem:[#allocation3 + $0xf0] sm:$0xff]   ;;  %v7138_v6 = vld [vmem:[#allocation3 + $0xb8] sm:$0xff]  }
  0x5a   :  { %6441 = vmatpush3.bf16.msra.mxu0 %v7103_v12  ;;  %6464 = vmatprep.subr.bf16.mxu1 %v7114_v19  ;;  %v7139_v7 = vld [vmem:[#allocation3 + $0xf8] sm:$0xff]   ;;  %v7140_v8 = vld [vmem:[#allocation3 + $0x100] sm:$0xff]   ;;  %v7142_v10 = vld [vmem:[#allocation3 + $0x108] sm:$0xff]  }
  0x5b   :  { %6442 = vmatprep.subr.bf16.mxu0 %v7104_v13  ;;  %v7141_v9 = vld [vmem:[#allocation3 + $0x140] sm:$0xff]   ;;  %v7143_v11 = vld [vmem:[#allocation3 + $0x148] sm:$0xff]   ;;  %v7144_v12 = vld [vmem:[#allocation3 + $0x110] sm:$0xff]  }
  0x5c   :  { %v7146_v14 = vld [vmem:[#allocation3 + $0x118] sm:$0xff]   ;;  %v7149_v17 = vld [vmem:[#allocation3 + $0x160] sm:$0xff]  }
  0x5d   :  { %6465 = vmatpush3.bf16.msra.mxu1 %v7114_v19  ;;  %v7147_v15 = vld [vmem:[#allocation3 + $0x158] sm:$0xff]   ;;  %v7151_v19 = vld [vmem:[#allocation3 + $0x168] sm:$0xff]  }
  0x5e   :  { %6443 = vmatpush3.bf16.msra.mxu0 %v7104_v13  ;;  %6466 = vmatprep.subr.bf16.mxu1 %v7116_v22  ;;  %v7145_v13 = vld [vmem:[#allocation3 + $0x150] sm:$0xff]  }
  0x5f   :  { %6444 = vmatprep.subr.bf16.mxu0 %v7105_v16 }
  0x61   :  { %6467 = vmatpush3.bf16.msra.mxu1 %v7116_v22  ;;  %v7153_v22 = vld [vmem:[#allocation3 + $0x170] sm:$0xff]  }
  0x62   :  { %6445 = vmatpush3.bf16.msra.mxu0 %v7105_v16  ;;  %6468 = vmatprep.subr.bf16.mxu1 %v7118_v25  ;;  %v7148_v16 = vld [vmem:[#allocation3 + $0x120] sm:$0xff]  }
  0x63   :  { %6446 = vmatprep.subr.bf16.mxu0 %v7106_v18 }
  0x65   :  { %6469 = vmatpush3.bf16.msra.mxu1 %v7118_v25  ;;  %v7156_v25 = vld [vmem:[#allocation3 + $0x180] sm:$0xff]  }
  0x66   :  { %6447 = vmatpush3.bf16.msra.mxu0 %v7106_v18  ;;  %6470 = vmatprep.subr.bf16.mxu1 %v7120_v26  ;;  %v7150_v18 = vld [vmem:[#allocation3 + $0x128] sm:$0xff]  }
  0x67   :  { %6448 = vmatprep.subr.bf16.mxu0 %v7107_v21 }
  0x69   :  { %6471 = vmatpush3.bf16.msra.mxu1 %v7120_v26  ;;  %v7157_v26 = vld [vmem:[#allocation3 + $0x1c0] sm:$0xff]  }
  0x6a   :  { %6449 = vmatpush3.bf16.msra.mxu0 %v7107_v21  ;;  %6472 = vmatprep.subr.bf16.mxu1 %v7122_v42  ;;  %v7152_v21 = vld [vmem:[#allocation3 + $0x130] sm:$0xff]  }
  0x6b   :  { %6482 = vmatprep.subr.bf16.mxu0 %v7109_v24 }
  0x6d   :  { %6473 = vmatpush3.bf16.msra.mxu1 %v7122_v42  ;;  %v7173_v42 = vld [vmem:[#allocation3 + $0x240] sm:$0xff]  }
  0x6e   :  { %6506 = vmatprep.subr.bf16.mxu1 %v7124_v44 }
  0xcb   :  { %v122_v27 = vpop.permute.xlu1 %121  ;;  %v116_v28 = vpop.permute.xlu0 %115 }
  0xcc   :  { %vm140_vm0 = vcmp.eq.s32.totalorder %v113_v23, %v122_v27  ;;  %vm138_vm3 = vcmp.eq.s32.totalorder %v113_v23, %v116_v28  ;;  %v7158_v27 = vld [vmem:[#allocation3 + $0x188] sm:$0xff]  }
  0xcd   :  { %v7159_v28 = vld [vmem:[#allocation3 + $0x1c8] sm:$0xff]  }
  0xcf   :  { %v125_v29 = vpop.permute.xlu1 %124  ;;  %v119_v30 = vpop.permute.xlu0 %118 }
  0xd0   :  { %vm141_vm1 = vcmp.eq.s32.totalorder %v113_v23, %v125_v29  ;;  %vm139_vm2 = vcmp.eq.s32.totalorder %v113_v23, %v119_v30  ;;  %v7160_v29 = vld [vmem:[#allocation3 + $0x190] sm:$0xff]  }
  0xd1   :  { %vm5684_vm4 = vmpackc.low %vm141_vm1, %vm140_vm0  ;;  %v7161_v30 = vld [vmem:[#allocation3 + $0x1d0] sm:$0xff]   ;;  %vm1222_vm0 = vcmask 1042432   ;;  %vm1387_vm1 = vcmask 1041408  }
  0xd2   :  { %vm5682_vm5 = vmpackc.low %vm139_vm2, %vm138_vm3  ;;  %vm1552_vm2 = vcmask 1040384   ;;  %vm1917_vm3 = vcmask 1041409  }
  0xd3   :  { %6450 = vmatprep.mubr.msk.bf16.mxu0 %vm5682_vm5, %v7588_v32  ;;  %v131_v33 = vpop.permute.xlu1 %130  ;;  %v128_v34 = vpop.permute.xlu0 %127  ;;  %vm1921_vm5 = vcmask 1045509  }
  0xd4   :  { %vm143_vm6 = vcmp.eq.s32.totalorder %v113_v23, %v131_v33  ;;  %6451 = vmatmul.mubr.msk.bf16.vlgmr.msra.gmra.mrb[0].mxu0 %vm5684_vm4, %v7588_v32  ;;  %vm142_vm7 = vcmp.eq.s32.totalorder %v113_v23, %v128_v34  ;;  %v7164_v33 = vld [vmem:[#allocation3 + $0x1a0] sm:$0xff]   ;;  %vm1919_vm4 = vcmask 1043459  }
  0xd5   :  { %vm5686_vm8 = vmpackc.low %vm143_vm6, %vm142_vm7  ;;  %6483 = vmatpush3.bf16.msra.mxu0 %v7109_v24  ;;  %v7155_v24 = vld [vmem:[#allocation3 + $0x178] sm:$0xff]   ;;  %v7165_v34 = vld [vmem:[#allocation3 + $0x1e0] sm:$0xff]   ;;  %vm1923_vm6 = vcmask 1047559   ;;  %vm7591_vm7 = vmmov 0  }
  0xd6   :  { %6454 = vmatprep.mubr.msk.bf16.mxu0 %vm5686_vm8, %v7588_v32  ;;  %6484 = vmatprep.subr.bf16.mxu0 %v7111_v31  ;;  %vm5647_vm8 = vcmask 9216  }
  0xd7   :  { %v137_v36 = vpop.permute.xlu1 %136  ;;  %v134_v37 = vpop.permute.xlu0 %133 }
  0xd8   :  { %vm145_vm9 = vcmp.eq.s32.totalorder %v113_v23, %v137_v36  ;;  %vm144_vm10 = vcmp.eq.s32.totalorder %v113_v23, %v134_v37  ;;  %v7154_v23 = vld [vmem:[#allocation3 + $0x138] sm:$0xff]   ;;  %v7167_v36 = vld [vmem:[#allocation3 + $0x1e8] sm:$0xff]   ;;  %v7168_v37 = vld [vmem:[#allocation3 + $0x1b0] sm:$0xff]  }
  0xd9   :  { %vm5688_vm11 = vmpackc.low %vm145_vm9, %vm144_vm10  ;;  %6485 = vmatpush3.bf16.msra.mxu0 %v7111_v31  ;;  %v7162_v31 = vld [vmem:[#allocation3 + $0x198] sm:$0xff]  }
  0xda   :  { %6486 = vmatprep.subr.bf16.mxu0 %v7113_v35 }
  0xdc   :  { %6455 = vmatmul.mubr.msk.bf16.gmra.mrb[4].mxu0 %vm5688_vm11, %v7588_v32  ;;  %v7163_v32 = vld [vmem:[#allocation3 + $0x1d8] sm:$0xff]  }
  0xdd   :  { %6487 = vmatpush3.bf16.msra.mxu0 %v7113_v35  ;;  %v7166_v35 = vld [vmem:[#allocation3 + $0x1a8] sm:$0xff]  }
  0xde   :  { %6488 = vmatprep.subr.bf16.mxu0 %v7115_v38 }
  0xe1   :  { %6489 = vmatpush3.bf16.msra.mxu0 %v7115_v38  ;;  %v7169_v38 = vld [vmem:[#allocation3 + $0x1f0] sm:$0xff]  }
  0xe2   :  { %6490 = vmatprep.subr.bf16.mxu0 %v7117_v39 }
  0xe5   :  { %6491 = vmatpush3.bf16.msra.mxu0 %v7117_v39  ;;  %v7170_v39 = vld [vmem:[#allocation3 + $0x1b8] sm:$0xff]  }
  0xe6   :  { %6492 = vmatprep.subr.bf16.mxu0 %v7119_v40 }
  0xe9   :  { %6493 = vmatpush3.bf16.msra.mxu0 %v7119_v40  ;;  %v7171_v40 = vld [vmem:[#allocation3 + $0x1f8] sm:$0xff]  }
  0xea   :  { %6494 = vmatprep.subr.bf16.mxu0 %v7121_v41 }
  0xed   :  { %6495 = vmatpush3.bf16.msra.mxu0 %v7121_v41  ;;  %v7172_v41 = vld [vmem:[#allocation3 + $0x200] sm:$0xff]  }
  0xee   :  { %6496 = vmatprep.subr.bf16.mxu0 %v7123_v43 }
  0xf1   :  { %6497 = vmatpush3.bf16.msra.mxu0 %v7123_v43  ;;  %v7174_v43 = vld [vmem:[#allocation3 + $0x208] sm:$0xff]  }
  0xf2   :  { %6530 = vmatprep.subr.bf16.mxu0 %v7125_v45 }
 0x1a7   :  { %v6452_v46 = vpop.f32.mrb[0].mxu0 }
 0x1a8   :  { %v264_v47 = vpop.f32.mrb[1].mxu0 }
 0x1a9   :  { %v6453_v48 = vpop.f32.mrb[2].mxu0 }
 0x1aa   :  { %v7788_v49 = vpack.c.bf16 %v6453_v48, %v6452_v46  ;;  %v267_v50 = vpop.f32.mrb[3].mxu0  ;;  %v7177_v46 = vld [vmem:[#allocation3 + $0x250] sm:$0xff]   ;;  %v7179_v48 = vld [vmem:[#allocation3 + $0x258] sm:$0xff]  }
 0x1ab   :  { %v7790_v51 = vpack.c.bf16 %v267_v50, %v264_v47  ;;  %v7178_v47 = vld [vmem:[#allocation3 + $0x218] sm:$0xff]   ;;  %v7180_v50 = vld [vmem:[#allocation3 + $0x220] sm:$0xff]  }
 0x1ad   :  { %6474 = vmatprep.mubr.bf16.mxu1 %v7790_v51  ;;  %6498 = vmatprep.mubr.bf16.mxu0 %v7790_v51 }
 0x1ae   :  { %6475 = vmatmul.mubr.bf16.vlgmr.msra.gmra.mrb[0].mxu1 %v7788_v49  ;;  %6499 = vmatmul.mubr.bf16.vlgmr.msra.gmra.mrb[8].mxu0 %v7788_v49 }
 0x1af   :  { %6507 = vmatpush3.bf16.msra.mxu1 %v7124_v44  ;;  %6531 = vmatpush3.bf16.msra.mxu0 %v7125_v45  ;;  %v6456_v54 = vpop.f32.mrb[4].mxu0  ;;  %v7175_v44 = vld [vmem:[#allocation3 + $0x248] sm:$0xff]   ;;  %v7176_v45 = vld [vmem:[#allocation3 + $0x210] sm:$0xff]  }
 0x1b0   :  { %v280_v55 = vpop.f32.mrb[5].mxu0  ;;  %6508 = vmatprep.subr.bf16.mxu1 %v7126_v52  ;;  %6532 = vmatprep.subr.bf16.mxu0 %v7127_v53 }
 0x1b1   :  { %v6457_v58 = vpop.f32.mrb[6].mxu0 }
 0x1b2   :  { %v7796_v59 = vpack.c.bf16 %v6457_v58, %v6456_v54  ;;  %v283_v60 = vpop.f32.mrb[7].mxu0  ;;  %v7183_v54 = vld [vmem:[#allocation3 + $0x268] sm:$0xff]   ;;  %v7187_v58 = vld [vmem:[#allocation3 + $0x278] sm:$0xff]  }
 0x1b3   :  { %v7798_v61 = vpack.c.bf16 %v283_v60, %v280_v55  ;;  %6509 = vmatpush3.bf16.msra.mxu1 %v7126_v52  ;;  %6533 = vmatpush3.bf16.msra.mxu0 %v7127_v53  ;;  %v7181_v52 = vld [vmem:[#allocation3 + $0x260] sm:$0xff]   ;;  %v7182_v53 = vld [vmem:[#allocation3 + $0x228] sm:$0xff]   ;;  %v7184_v55 = vld [vmem:[#allocation3 + $0x230] sm:$0xff]  }
 0x1b4   :  { %6510 = vmatprep.subr.bf16.mxu1 %v7128_v56  ;;  %6534 = vmatprep.subr.bf16.mxu0 %v7129_v57  ;;  %v7188_v60 = vld [vmem:[#allocation6] sm:$0xff]  }
 0x1b5   :  { %6478 = vmatprep.mubr.bf16.mxu1 %v7798_v61  ;;  %6502 = vmatprep.mubr.bf16.mxu0 %v7798_v61 }
 0x1b6   :  { %6479 = vmatmul.mubr.bf16.gmra.mrb[4].mxu1 %v7796_v59  ;;  %6503 = vmatmul.mubr.bf16.gmra.mrb[12].mxu0 %v7796_v59 }
 0x1b7   :  { %6511 = vmatpush3.bf16.msra.mxu1 %v7128_v56  ;;  %6535 = vmatpush3.bf16.msra.mxu0 %v7129_v57  ;;  %v7185_v56 = vld [vmem:[#allocation3 + $0x270] sm:$0xff]   ;;  %v7186_v57 = vld [vmem:[#allocation3 + $0x238] sm:$0xff]  }
 0x1b8   :  { %6522 = vmatprep.mubr.bf16.mxu1 %v7790_v51  ;;  %6546 = vmatprep.mubr.bf16.mxu0 %v7790_v51 }
 0x1b9   :  { %6512 = vmatprep.subr.bf16.mxu1 %v7130_v62  ;;  %6536 = vmatprep.subr.bf16.mxu0 %v7131_v63 }
 0x1bb   :  { %6513 = vmatpush3.bf16.msra.mxu1 %v7130_v62  ;;  %6537 = vmatpush3.bf16.msra.mxu0 %v7131_v63  ;;  %v7189_v62 = vld [vmem:[#allocation6 + $0x40] sm:$0xff]   ;;  %v7190_v63 = vld [vmem:[#allocation6 + $0x8] sm:$0xff]  }
 0x1bc   :  { %6514 = vmatprep.subr.bf16.mxu1 %v7132_v0  ;;  %6538 = vmatprep.subr.bf16.mxu0 %v7133_v1 }
 0x1bf   :  { %6515 = vmatpush3.bf16.msra.mxu1 %v7132_v0  ;;  %6539 = vmatpush3.bf16.msra.mxu0 %v7133_v1  ;;  %v7191_v0 = vld [vmem:[#allocation6 + $0x48] sm:$0xff]   ;;  %v7192_v1 = vld [vmem:[#allocation6 + $0x10] sm:$0xff]  }
 0x1c0   :  { %6516 = vmatprep.subr.bf16.mxu1 %v7134_v2  ;;  %6540 = vmatprep.subr.bf16.mxu0 %v7135_v3 }
 0x1c3   :  { %6517 = vmatpush3.bf16.msra.mxu1 %v7134_v2  ;;  %6541 = vmatpush3.bf16.msra.mxu0 %v7135_v3  ;;  %v7193_v2 = vld [vmem:[#allocation6 + $0x50] sm:$0xff]   ;;  %v7194_v3 = vld [vmem:[#allocation6 + $0x18] sm:$0xff]  }
 0x1c4   :  { %6518 = vmatprep.subr.bf16.mxu1 %v7136_v4  ;;  %6542 = vmatprep.subr.bf16.mxu0 %v7137_v5 }
 0x1c7   :  { %6519 = vmatpush3.bf16.msra.mxu1 %v7136_v4  ;;  %6543 = vmatpush3.bf16.msra.mxu0 %v7137_v5  ;;  %v7195_v4 = vld [vmem:[#allocation6 + $0x58] sm:$0xff]   ;;  %v7196_v5 = vld [vmem:[#allocation6 + $0x20] sm:$0xff]  }
 0x1c8   :  { %6520 = vmatprep.subr.bf16.mxu1 %v7138_v6  ;;  %6544 = vmatprep.subr.bf16.mxu0 %v7139_v7 }
 0x1cb   :  { %6521 = vmatpush3.bf16.msra.mxu1 %v7138_v6  ;;  %6545 = vmatpush3.bf16.msra.mxu0 %v7139_v7  ;;  %v7197_v6 = vld [vmem:[#allocation6 + $0x60] sm:$0xff]   ;;  %v7198_v7 = vld [vmem:[#allocation6 + $0x28] sm:$0xff]  }
 0x1cc   :  { %6554 = vmatprep.subr.bf16.mxu1 %v7140_v8  ;;  %6578 = vmatprep.subr.bf16.mxu0 %v7141_v9 }
 0x1ce   :  { %6523 = vmatmul.mubr.bf16.vlgmr.msra.gmra.mrb[8].mxu1 %v7788_v49  ;;  %6547 = vmatmul.mubr.bf16.vlgmr.msra.gmra.mrb[16].mxu0 %v7788_v49 }
 0x1cf   :  { %6526 = vmatprep.mubr.bf16.mxu1 %v7798_v61  ;;  %6550 = vmatprep.mubr.bf16.mxu0 %v7798_v61 }
 0x1d0   :  { %6555 = vmatpush3.bf16.msra.mxu1 %v7140_v8  ;;  %6579 = vmatpush3.bf16.msra.mxu0 %v7141_v9  ;;  %v7199_v8 = vld [vmem:[#allocation6 + $0x68] sm:$0xff]   ;;  %v7200_v9 = vld [vmem:[#allocation6 + $0x30] sm:$0xff]  }
 0x1d1   :  { %6556 = vmatprep.subr.bf16.mxu1 %v7142_v10  ;;  %6580 = vmatprep.subr.bf16.mxu0 %v7143_v11 }
 0x1d4   :  { %6557 = vmatpush3.bf16.msra.mxu1 %v7142_v10  ;;  %6581 = vmatpush3.bf16.msra.mxu0 %v7143_v11  ;;  %v7201_v10 = vld [vmem:[#allocation6 + $0x70] sm:$0xff]   ;;  %v7202_v11 = vld [vmem:[#allocation6 + $0x38] sm:$0xff]  }
 0x1d5   :  { %6558 = vmatprep.subr.bf16.mxu1 %v7144_v12  ;;  %6582 = vmatprep.subr.bf16.mxu0 %v7145_v13 }
 0x1d6   :  { %6527 = vmatmul.mubr.bf16.gmra.mrb[12].mxu1 %v7796_v59  ;;  %6551 = vmatmul.mubr.bf16.gmra.mrb[20].mxu0 %v7796_v59 }
 0x1d7   :  { %6570 = vmatprep.mubr.bf16.mxu1 %v7790_v51  ;;  %6594 = vmatprep.mubr.bf16.mxu0 %v7790_v51 }
 0x1d8   :  { %6559 = vmatpush3.bf16.msra.mxu1 %v7144_v12  ;;  %6583 = vmatpush3.bf16.msra.mxu0 %v7145_v13  ;;  %v7203_v12 = vld [vmem:[#allocation6 + $0x78] sm:$0xff]   ;;  %v7204_v13 = vld [vmem:[#allocation6 + $0x80] sm:$0xff]  }
 0x1d9   :  { %6560 = vmatprep.subr.bf16.mxu1 %v7146_v14  ;;  %6584 = vmatprep.subr.bf16.mxu0 %v7147_v15 }
 0x1dc   :  { %6561 = vmatpush3.bf16.msra.mxu1 %v7146_v14  ;;  %6585 = vmatpush3.bf16.msra.mxu0 %v7147_v15  ;;  %v7205_v14 = vld [vmem:[#allocation6 + $0xc0] sm:$0xff]   ;;  %v7206_v15 = vld [vmem:[#allocation6 + $0x88] sm:$0xff]  }
 0x1dd   :  { %6562 = vmatprep.subr.bf16.mxu1 %v7148_v16  ;;  %6586 = vmatprep.subr.bf16.mxu0 %v7149_v17 }
 0x1e0   :  { %6563 = vmatpush3.bf16.msra.mxu1 %v7148_v16  ;;  %6587 = vmatpush3.bf16.msra.mxu0 %v7149_v17  ;;  %v7207_v16 = vld [vmem:[#allocation6 + $0xc8] sm:$0xff]   ;;  %v7208_v17 = vld [vmem:[#allocation6 + $0x90] sm:$0xff]  }
 0x1e1   :  { %6564 = vmatprep.subr.bf16.mxu1 %v7150_v18  ;;  %6588 = vmatprep.subr.bf16.mxu0 %v7151_v19 }
 0x1e4   :  { %6565 = vmatpush3.bf16.msra.mxu1 %v7150_v18  ;;  %6589 = vmatpush3.bf16.msra.mxu0 %v7151_v19  ;;  %v7209_v18 = vld [vmem:[#allocation6 + $0xd0] sm:$0xff]   ;;  %v7210_v19 = vld [vmem:[#allocation6 + $0x98] sm:$0xff]  }
 0x1e5   :  { %6566 = vmatprep.subr.bf16.mxu1 %v7152_v21  ;;  %6590 = vmatprep.subr.bf16.mxu0 %v7153_v22 }
 0x1e8   :  { %6567 = vmatpush3.bf16.msra.mxu1 %v7152_v21  ;;  %6591 = vmatpush3.bf16.msra.mxu0 %v7153_v22  ;;  %v7211_v21 = vld [vmem:[#allocation6 + $0xd8] sm:$0xff]   ;;  %v7212_v22 = vld [vmem:[#allocation6 + $0xa0] sm:$0xff]  }
 0x1e9   :  { %6568 = vmatprep.subr.bf16.mxu1 %v7154_v23  ;;  %6592 = vmatprep.subr.bf16.mxu0 %v7155_v24 }
 0x1ec   :  { %6569 = vmatpush3.bf16.msra.mxu1 %v7154_v23  ;;  %6593 = vmatpush3.bf16.msra.mxu0 %v7155_v24  ;;  %v7213_v23 = vld [vmem:[#allocation6 + $0xe0] sm:$0xff]   ;;  %v7214_v24 = vld [vmem:[#allocation6 + $0xa8] sm:$0xff]  }
 0x1ed   :  { %6602 = vmatprep.subr.bf16.mxu1 %v7156_v25  ;;  %6626 = vmatprep.subr.bf16.mxu0 %v7157_v26 }
 0x1ef   :  { %6571 = vmatmul.mubr.bf16.vlgmr.msra.gmra.mrb[16].mxu1 %v7788_v49  ;;  %6595 = vmatmul.mubr.bf16.vlgmr.msra.gmra.mrb[24].mxu0 %v7788_v49 }
 0x1f0   :  { %6574 = vmatprep.mubr.bf16.mxu1 %v7798_v61  ;;  %6598 = vmatprep.mubr.bf16.mxu0 %v7798_v61 }
 0x1f1   :  { %6603 = vmatpush3.bf16.msra.mxu1 %v7156_v25  ;;  %6627 = vmatpush3.bf16.msra.mxu0 %v7157_v26  ;;  %v7215_v25 = vld [vmem:[#allocation6 + $0xe8] sm:$0xff]   ;;  %v7216_v26 = vld [vmem:[#allocation6 + $0xb0] sm:$0xff]  }
 0x1f2   :  { %6604 = vmatprep.subr.bf16.mxu1 %v7158_v27  ;;  %6628 = vmatprep.subr.bf16.mxu0 %v7159_v28 }
 0x1f5   :  { %6605 = vmatpush3.bf16.msra.mxu1 %v7158_v27  ;;  %6629 = vmatpush3.bf16.msra.mxu0 %v7159_v28  ;;  %v7217_v27 = vld [vmem:[#allocation6 + $0xf0] sm:$0xff]   ;;  %v7218_v28 = vld [vmem:[#allocation6 + $0xb8] sm:$0xff]  }
 0x1f6   :  { %6606 = vmatprep.subr.bf16.mxu1 %v7160_v29  ;;  %6630 = vmatprep.subr.bf16.mxu0 %v7161_v30 }
 0x1f7   :  { %6575 = vmatmul.mubr.bf16.gmra.mrb[20].mxu1 %v7796_v59  ;;  %6599 = vmatmul.mubr.bf16.gmra.mrb[28].mxu0 %v7796_v59 }
 0x1f8   :  { %6618 = vmatprep.mubr.bf16.mxu1 %v7790_v51  ;;  %6642 = vmatprep.mubr.bf16.mxu0 %v7790_v51 }
 0x1f9   :  { %6607 = vmatpush3.bf16.msra.mxu1 %v7160_v29  ;;  %6631 = vmatpush3.bf16.msra.mxu0 %v7161_v30  ;;  %v7219_v29 = vld [vmem:[#allocation6 + $0xf8] sm:$0xff]   ;;  %v7220_v30 = vld [vmem:[#allocation6 + $0x100] sm:$0xff]  }
 0x1fa   :  { %6608 = vmatprep.subr.bf16.mxu1 %v7162_v31  ;;  %6632 = vmatprep.subr.bf16.mxu0 %v7163_v32 }
 0x1fd   :  { %6609 = vmatpush3.bf16.msra.mxu1 %v7162_v31  ;;  %6633 = vmatpush3.bf16.msra.mxu0 %v7163_v32  ;;  %v7221_v31 = vld [vmem:[#allocation6 + $0x140] sm:$0xff]   ;;  %v7222_v32 = vld [vmem:[#allocation6 + $0x108] sm:$0xff]  }
 0x1fe   :  { %6610 = vmatprep.subr.bf16.mxu1 %v7164_v33  ;;  %6634 = vmatprep.subr.bf16.mxu0 %v7165_v34 }
 0x201   :  { %6611 = vmatpush3.bf16.msra.mxu1 %v7164_v33  ;;  %6635 = vmatpush3.bf16.msra.mxu0 %v7165_v34  ;;  %v7223_v33 = vld [vmem:[#allocation6 + $0x148] sm:$0xff]   ;;  %v7224_v34 = vld [vmem:[#allocation6 + $0x110] sm:$0xff]  }
 0x202   :  { %6612 = vmatprep.subr.bf16.mxu1 %v7166_v35  ;;  %6636 = vmatprep.subr.bf16.mxu0 %v7167_v36 }
 0x205   :  { %6613 = vmatpush3.bf16.msra.mxu1 %v7166_v35  ;;  %6637 = vmatpush3.bf16.msra.mxu0 %v7167_v36  ;;  %v7225_v35 = vld [vmem:[#allocation6 + $0x150] sm:$0xff]   ;;  %v7226_v36 = vld [vmem:[#allocation6 + $0x118] sm:$0xff]  }
 0x206   :  { %6614 = vmatprep.subr.bf16.mxu1 %v7168_v37  ;;  %6638 = vmatprep.subr.bf16.mxu0 %v7169_v38 }
 0x209   :  { %6615 = vmatpush3.bf16.msra.mxu1 %v7168_v37  ;;  %6639 = vmatpush3.bf16.msra.mxu0 %v7169_v38  ;;  %v7227_v37 = vld [vmem:[#allocation6 + $0x158] sm:$0xff]   ;;  %v7228_v38 = vld [vmem:[#allocation6 + $0x120] sm:$0xff]  }
 0x20a   :  { %6616 = vmatprep.subr.bf16.mxu1 %v7170_v39  ;;  %6640 = vmatprep.subr.bf16.mxu0 %v7171_v40 }
 0x20d   :  { %6617 = vmatpush3.bf16.msra.mxu1 %v7170_v39  ;;  %6641 = vmatpush3.bf16.msra.mxu0 %v7171_v40  ;;  %v7229_v39 = vld [vmem:[#allocation6 + $0x160] sm:$0xff]  }
 0x20e   :  { %6650 = vmatprep.subr.bf16.mxu1 %v7172_v41  ;;  %6674 = vmatprep.subr.bf16.mxu0 %v7173_v42 }
 0x210   :  { %6619 = vmatmul.mubr.bf16.vlgmr.msra.gmra.mrb[24].mxu1 %v7788_v49  ;;  %6643 = vmatmul.mubr.bf16.vlgmr.msra.gmra.mrb[32].mxu0 %v7788_v49 }
 0x211   :  { %6622 = vmatprep.mubr.bf16.mxu1 %v7798_v61  ;;  %6646 = vmatprep.mubr.bf16.mxu0 %v7798_v61 }
 0x212   :  { %6651 = vmatpush3.bf16.msra.mxu1 %v7172_v41  ;;  %6675 = vmatpush3.bf16.msra.mxu0 %v7173_v42 }
 0x213   :  { %6652 = vmatprep.subr.bf16.mxu1 %v7174_v43  ;;  %6676 = vmatprep.subr.bf16.mxu0 %v7175_v44 }
 0x216   :  { %6653 = vmatpush3.bf16.msra.mxu1 %v7174_v43  ;;  %6677 = vmatpush3.bf16.msra.mxu0 %v7175_v44  ;;  %v7230_v43 = vld [vmem:[#allocation6 + $0x128] sm:$0xff]  }
 0x217   :  { %6654 = vmatprep.subr.bf16.mxu1 %v7176_v45  ;;  %6678 = vmatprep.subr.bf16.mxu0 %v7177_v46  ;;  %v7231_v44 = vld [vmem:[#allocation6 + $0x168] sm:$0xff]  }
 0x218   :  { %6623 = vmatmul.mubr.bf16.gmra.mrb[28].mxu1 %v7796_v59  ;;  %6647 = vmatmul.mubr.bf16.gmra.mrb[36].mxu0 %v7796_v59 }
 0x219   :  { %6666 = vmatprep.mubr.bf16.mxu1 %v7790_v51  ;;  %6690 = vmatprep.mubr.bf16.mxu0 %v7790_v51 }
 0x21a   :  { %6655 = vmatpush3.bf16.msra.mxu1 %v7176_v45  ;;  %6679 = vmatpush3.bf16.msra.mxu0 %v7177_v46 }
 0x21b   :  { %6656 = vmatprep.subr.bf16.mxu1 %v7178_v47  ;;  %6680 = vmatprep.subr.bf16.mxu0 %v7179_v48 }
 0x21e   :  { %6657 = vmatpush3.bf16.msra.mxu1 %v7178_v47  ;;  %6681 = vmatpush3.bf16.msra.mxu0 %v7179_v48 }
 0x21f   :  { %6658 = vmatprep.subr.bf16.mxu1 %v7180_v50  ;;  %6682 = vmatprep.subr.bf16.mxu0 %v7181_v52 }
 0x222   :  { %6659 = vmatpush3.bf16.msra.mxu1 %v7180_v50  ;;  %6683 = vmatpush3.bf16.msra.mxu0 %v7181_v52 }
 0x223   :  { %6660 = vmatprep.subr.bf16.mxu1 %v7182_v53  ;;  %6684 = vmatprep.subr.bf16.mxu0 %v7183_v54 }
 0x226   :  { %6661 = vmatpush3.bf16.msra.mxu1 %v7182_v53  ;;  %6685 = vmatpush3.bf16.msra.mxu0 %v7183_v54 }
 0x227   :  { %6662 = vmatprep.subr.bf16.mxu1 %v7184_v55  ;;  %6686 = vmatprep.subr.bf16.mxu0 %v7185_v56 }
 0x22a   :  { %6663 = vmatpush3.bf16.msra.mxu1 %v7184_v55  ;;  %6687 = vmatpush3.bf16.msra.mxu0 %v7185_v56  ;;  %v7232_v56 = vld [vmem:[#allocation6 + $0x130] sm:$0xff]  }
 0x22b   :  { %6664 = vmatprep.subr.bf16.mxu1 %v7186_v57  ;;  %6688 = vmatprep.subr.bf16.mxu0 %v7187_v58 }
 0x22e   :  { %6665 = vmatpush3.bf16.msra.mxu1 %v7186_v57  ;;  %6689 = vmatpush3.bf16.msra.mxu0 %v7187_v58  ;;  %v7233_v57 = vld [vmem:[#allocation6 + $0x170] sm:$0xff]  }
 0x22f   :  { %6698 = vmatprep.subr.bf16.mxu1 %v7188_v60  ;;  %6722 = vmatprep.subr.bf16.mxu0 %v7189_v62 }
 0x231   :  { %6667 = vmatmul.mubr.bf16.vlgmr.msra.gmra.mrb[32].mxu1 %v7788_v49  ;;  %6691 = vmatmul.mubr.bf16.vlgmr.msra.gmra.mrb[40].mxu0 %v7788_v49 }
 0x232   :  { %6670 = vmatprep.mubr.bf16.mxu1 %v7798_v61  ;;  %6694 = vmatprep.mubr.bf16.mxu0 %v7798_v61 }
 0x233   :  { %6699 = vmatpush3.bf16.msra.mxu1 %v7188_v60  ;;  %6723 = vmatpush3.bf16.msra.mxu0 %v7189_v62 }
 0x234   :  { %6700 = vmatprep.subr.bf16.mxu1 %v7190_v63  ;;  %6724 = vmatprep.subr.bf16.mxu0 %v7191_v0 }
 0x237   :  { %6701 = vmatpush3.bf16.msra.mxu1 %v7190_v63  ;;  %6725 = vmatpush3.bf16.msra.mxu0 %v7191_v0 }
 0x238   :  { %6702 = vmatprep.subr.bf16.mxu1 %v7192_v1  ;;  %6726 = vmatprep.subr.bf16.mxu0 %v7193_v2 }
 0x239   :  { %6671 = vmatmul.mubr.bf16.gmra.mrb[36].mxu1 %v7796_v59  ;;  %6695 = vmatmul.mubr.bf16.gmra.mrb[44].mxu0 %v7796_v59 }
 0x23a   :  { %6714 = vmatprep.mubr.bf16.mxu1 %v7790_v51  ;;  %6738 = vmatprep.mubr.bf16.mxu0 %v7790_v51 }
 0x23b   :  { %6703 = vmatpush3.bf16.msra.mxu1 %v7192_v1  ;;  %6727 = vmatpush3.bf16.msra.mxu0 %v7193_v2 }
 0x23c   :  { %6704 = vmatprep.subr.bf16.mxu1 %v7194_v3  ;;  %6728 = vmatprep.subr.bf16.mxu0 %v7195_v4 }
 0x23f   :  { %6705 = vmatpush3.bf16.msra.mxu1 %v7194_v3  ;;  %6729 = vmatpush3.bf16.msra.mxu0 %v7195_v4  ;;  %v7234_v3 = vld [vmem:[#allocation6 + $0x138] sm:$0xff]  }
 0x240   :  { %6706 = vmatprep.subr.bf16.mxu1 %v7196_v5  ;;  %6730 = vmatprep.subr.bf16.mxu0 %v7197_v6  ;;  %v7235_v4 = vld [vmem:[#allocation6 + $0x178] sm:$0xff]  }
 0x243   :  { %6707 = vmatpush3.bf16.msra.mxu1 %v7196_v5  ;;  %6731 = vmatpush3.bf16.msra.mxu0 %v7197_v6 }
 0x244   :  { %6708 = vmatprep.subr.bf16.mxu1 %v7198_v7  ;;  %6732 = vmatprep.subr.bf16.mxu0 %v7199_v8 }
 0x247   :  { %6709 = vmatpush3.bf16.msra.mxu1 %v7198_v7  ;;  %6733 = vmatpush3.bf16.msra.mxu0 %v7199_v8 }
 0x248   :  { %6710 = vmatprep.subr.bf16.mxu1 %v7200_v9  ;;  %6734 = vmatprep.subr.bf16.mxu0 %v7201_v10 }
 0x24b   :  { %6711 = vmatpush3.bf16.msra.mxu1 %v7200_v9  ;;  %6735 = vmatpush3.bf16.msra.mxu0 %v7201_v10 }
 0x24c   :  { %6712 = vmatprep.subr.bf16.mxu1 %v7202_v11  ;;  %6736 = vmatprep.subr.bf16.mxu0 %v7203_v12 }
 0x24f   :  { %6713 = vmatpush3.bf16.msra.mxu1 %v7202_v11  ;;  %6737 = vmatpush3.bf16.msra.mxu0 %v7203_v12 }
 0x250   :  { %6746 = vmatprep.subr.bf16.mxu1 %v7204_v13  ;;  %6770 = vmatprep.subr.bf16.mxu0 %v7205_v14 }
 0x252   :  { %6715 = vmatmul.mubr.bf16.vlgmr.msra.gmra.mrb[40].mxu1 %v7788_v49  ;;  %6739 = vmatmul.mubr.bf16.vlgmr.msra.gmra.mrb[48].mxu0 %v7788_v49 }
 0x253   :  { %6718 = vmatprep.mubr.bf16.mxu1 %v7798_v61  ;;  %6742 = vmatprep.mubr.bf16.mxu0 %v7798_v61 }
 0x254   :  { %6747 = vmatpush3.bf16.msra.mxu1 %v7204_v13  ;;  %6771 = vmatpush3.bf16.msra.mxu0 %v7205_v14  ;;  %v7236_v14 = vld [vmem:[#allocation6 + $0x180] sm:$0xff]  }
 0x255   :  { %6748 = vmatprep.subr.bf16.mxu1 %v7206_v15  ;;  %6772 = vmatprep.subr.bf16.mxu0 %v7207_v16 }
 0x258   :  { %6749 = vmatpush3.bf16.msra.mxu1 %v7206_v15  ;;  %6773 = vmatpush3.bf16.msra.mxu0 %v7207_v16  ;;  %v7237_v15 = vld [vmem:[#allocation8] sm:$0xff]  }
 0x259   :  { %6750 = vmatprep.subr.bf16.mxu1 %v7208_v17  ;;  %6774 = vmatprep.subr.bf16.mxu0 %v7209_v18 }
 0x25a   :  { %6719 = vmatmul.mubr.bf16.gmra.mrb[44].mxu1 %v7796_v59  ;;  %6743 = vmatmul.mubr.bf16.gmra.mrb[52].mxu0 %v7796_v59 }
 0x25b   :  { %6762 = vmatprep.mubr.bf16.mxu1 %v7790_v51  ;;  %6786 = vmatprep.mubr.bf16.mxu0 %v7790_v51 }
 0x25c   :  { %6751 = vmatpush3.bf16.msra.mxu1 %v7208_v17  ;;  %6775 = vmatpush3.bf16.msra.mxu0 %v7209_v18 }
 0x25d   :  { %6752 = vmatprep.subr.bf16.mxu1 %v7210_v19  ;;  %6776 = vmatprep.subr.bf16.mxu0 %v7211_v21 }
 0x260   :  { %6753 = vmatpush3.bf16.msra.mxu1 %v7210_v19  ;;  %6777 = vmatpush3.bf16.msra.mxu0 %v7211_v21  ;;  %v7238_v21 = vld [vmem:[#allocation6 + $0x188] sm:$0xff]  }
 0x261   :  { %6754 = vmatprep.subr.bf16.mxu1 %v7212_v22  ;;  %6778 = vmatprep.subr.bf16.mxu0 %v7213_v23 }
 0x264   :  { %6755 = vmatpush3.bf16.msra.mxu1 %v7212_v22  ;;  %6779 = vmatpush3.bf16.msra.mxu0 %v7213_v23  ;;  %v7239_v22 = vld [vmem:[#allocation8 + $0x8] sm:$0xff]   ;;  %v7240_v23 = vld [vmem:[#allocation6 + $0x190] sm:$0xff]  }
 0x265   :  { %6756 = vmatprep.subr.bf16.mxu1 %v7214_v24  ;;  %6780 = vmatprep.subr.bf16.mxu0 %v7215_v25 }
 0x268   :  { %6757 = vmatpush3.bf16.msra.mxu1 %v7214_v24  ;;  %6781 = vmatpush3.bf16.msra.mxu0 %v7215_v25  ;;  %v7241_v24 = vld [vmem:[#allocation8 + $0x10] sm:$0xff]   ;;  %v7242_v25 = vld [vmem:[#allocation6 + $0x198] sm:$0xff]  }
 0x269   :  { %6758 = vmatprep.subr.bf16.mxu1 %v7216_v26  ;;  %6782 = vmatprep.subr.bf16.mxu0 %v7217_v27 }
 0x26c   :  { %6759 = vmatpush3.bf16.msra.mxu1 %v7216_v26  ;;  %6783 = vmatpush3.bf16.msra.mxu0 %v7217_v27  ;;  %v7243_v26 = vld [vmem:[#allocation8 + $0x18] sm:$0xff]   ;;  %v7244_v27 = vld [vmem:[#allocation6 + $0x1a0] sm:$0xff]  }
 0x26d   :  { %6760 = vmatprep.subr.bf16.mxu1 %v7218_v28  ;;  %6784 = vmatprep.subr.bf16.mxu0 %v7219_v29 }
 0x270   :  { %6761 = vmatpush3.bf16.msra.mxu1 %v7218_v28  ;;  %6785 = vmatpush3.bf16.msra.mxu0 %v7219_v29  ;;  %v7245_v28 = vld [vmem:[#allocation8 + $0x20] sm:$0xff]  }
 0x271   :  { %6794 = vmatprep.subr.bf16.mxu1 %v7220_v30  ;;  %6818 = vmatprep.subr.bf16.mxu0 %v7221_v31 }
 0x273   :  { %6763 = vmatmul.mubr.bf16.vlgmr.msra.gmra.mrb[48].mxu1 %v7788_v49  ;;  %6787 = vmatmul.mubr.bf16.vlgmr.msra.gmra.mrb[56].mxu0 %v7788_v49 }
 0x274   :  { %6766 = vmatprep.mubr.bf16.mxu1 %v7798_v61  ;;  %6790 = vmatprep.mubr.bf16.mxu0 %v7798_v61 }
 0x275   :  { %6795 = vmatpush3.bf16.msra.mxu1 %v7220_v30  ;;  %6819 = vmatpush3.bf16.msra.mxu0 %v7221_v31 }
 0x276   :  { %6796 = vmatprep.subr.bf16.mxu1 %v7222_v32  ;;  %6820 = vmatprep.subr.bf16.mxu0 %v7223_v33 }
 0x279   :  { %6797 = vmatpush3.bf16.msra.mxu1 %v7222_v32  ;;  %6821 = vmatpush3.bf16.msra.mxu0 %v7223_v33  ;;  %v7246_v33 = vld [vmem:[#allocation6 + $0x1a8] sm:$0xff]  }
 0x27a   :  { %6798 = vmatprep.subr.bf16.mxu1 %v7224_v34  ;;  %6822 = vmatprep.subr.bf16.mxu0 %v7225_v35 }
 0x27b   :  { %6767 = vmatmul.mubr.bf16.gmra.mrb[52].mxu1 %v7796_v59  ;;  %6791 = vmatmul.mubr.bf16.gmra.mrb[60].mxu0 %v7796_v59 }
 0x27c   :  { %6810 = vmatprep.mubr.bf16.mxu1 %v7790_v51  ;;  %6834 = vmatprep.mubr.bf16.mxu0 %v7790_v51 }
 0x27d   :  { %6799 = vmatpush3.bf16.msra.mxu1 %v7224_v34  ;;  %6823 = vmatpush3.bf16.msra.mxu0 %v7225_v35  ;;  %v7247_v34 = vld [vmem:[#allocation8 + $0x28] sm:$0xff]  }
 0x27e   :  { %6800 = vmatprep.subr.bf16.mxu1 %v7226_v36  ;;  %6824 = vmatprep.subr.bf16.mxu0 %v7227_v37 }
 0x281   :  { %6801 = vmatpush3.bf16.msra.mxu1 %v7226_v36  ;;  %6825 = vmatpush3.bf16.msra.mxu0 %v7227_v37  ;;  %v6476_v40 = vpop.f32.mrb[0].mxu1  ;;  %v6500_v41 = vpop.f32.mrb[8].mxu0 }
 0x282   :  { %6802 = vmatprep.subr.bf16.mxu1 %v7228_v38  ;;  %6826 = vmatprep.subr.bf16.mxu0 %v7229_v39  ;;  %v570_v42 = vrot.slane %v6500_v41, 1  ;;  %v397_v45 = vpop.f32.mrb[1].mxu1  ;;  %v531_v46 = vpop.f32.mrb[9].mxu0 }
 0x283   :  { %v6477_v47 = vpop.f32.mrb[2].mxu1  ;;  %v6501_v48 = vpop.f32.mrb[10].mxu0  ;;  %v567_v54 = vrot.slane %v531_v46, 1 }
 0x284   :  { %v7854_v50 = vadd.f32 %v6476_v40, %v570_v42  ;;  %v400_v52 = vpop.f32.mrb[3].mxu1  ;;  %v534_v53 = vpop.f32.mrb[11].mxu0 }
 0x285   :  { %6803 = vmatpush3.bf16.msra.mxu1 %v7228_v38  ;;  %6827 = vmatpush3.bf16.msra.mxu0 %v7229_v39  ;;  %v568_v55 = vrot.slane %v534_v53, 1 }
 0x286   :  { %6804 = vmatprep.subr.bf16.mxu1 %v7230_v43  ;;  %6828 = vmatprep.subr.bf16.mxu0 %v7231_v44 }
 0x287   :  { %v569_v58 = vsel %vm566_vm12, %v567_v54, %v568_v55  ;;  %v571_v60 = vsel %vm566_vm12, %v568_v55, %v570_v42  ;;  %v7248_v55 = vld [vmem:[#allocation6 + $0x1b0] sm:$0xff]  }
 0x288   :  { %v7858_v62 = vadd.f32 %v569_v58, %v397_v45  ;;  %v7860_v63 = vadd.f32 %v571_v60, %v400_v52 }
 0x289   :  { %6805 = vmatpush3.bf16.msra.mxu1 %v7230_v43  ;;  %6829 = vmatpush3.bf16.msra.mxu0 %v7231_v44  ;;  %v6480_v0 = vpop.f32.mrb[4].mxu1  ;;  %v6504_v1 = vpop.f32.mrb[12].mxu0 }
 0x28a   :  { %6806 = vmatprep.subr.bf16.mxu1 %v7232_v56  ;;  %6830 = vmatprep.subr.bf16.mxu0 %v7233_v57  ;;  %v575_v2 = vrot.slane %v6504_v1, 1  ;;  %v412_v5 = vpop.f32.mrb[5].mxu1  ;;  %v546_v6 = vpop.f32.mrb[13].mxu0 }
 0x28b   :  { %v6481_v7 = vpop.f32.mrb[6].mxu1  ;;  %v6505_v8 = vpop.f32.mrb[14].mxu0  ;;  %v572_v12 = vrot.slane %v546_v6, 1 }
 0x28c   :  { %v7862_v9 = vadd.f32 %v6480_v0, %v575_v2  ;;  %v415_v10 = vpop.f32.mrb[7].mxu1  ;;  %v549_v11 = vpop.f32.mrb[15].mxu0 }
 0x28d   :  { %6807 = vmatpush3.bf16.msra.mxu1 %v7232_v56  ;;  %6831 = vmatpush3.bf16.msra.mxu0 %v7233_v57  ;;  %v573_v13 = vrot.slane %v549_v11, 1  ;;  %v7249_v56 = vld [vmem:[#allocation8 + $0x30] sm:$0xff]  }
 0x28e   :  { %6808 = vmatprep.subr.bf16.mxu1 %v7234_v3  ;;  %6832 = vmatprep.subr.bf16.mxu0 %v7235_v4 }
 0x28f   :  { %v574_v16 = vsel %vm566_vm12, %v572_v12, %v573_v13  ;;  %v576_v17 = vsel %vm566_vm12, %v573_v13, %v575_v2 }
 0x290   :  { %v7866_v18 = vadd.f32 %v574_v16, %v412_v5  ;;  %v7868_v19 = vadd.f32 %v576_v17, %v415_v10 }
 0x291   :  { %6809 = vmatpush3.bf16.msra.mxu1 %v7234_v3  ;;  %6833 = vmatpush3.bf16.msra.mxu0 %v7235_v4 }
 0x292   :  { %6842 = vmatprep.subr.bf16.mxu1 %v7236_v14  ;;  %6866 = vmatprep.subr.bf16.mxu0 %v7237_v15 }
 0x294   :  { %6811 = vmatmul.mubr.bf16.vlgmr.msra.gmra.mrb[56].mxu1 %v7788_v49  ;;  %6835 = vmatmul.mubr.bf16.vlgmr.msra.gmra.mrb[64].mxu0 %v7788_v49 }
 0x295   :  { %6814 = vmatprep.mubr.bf16.mxu1 %v7798_v61  ;;  %6838 = vmatprep.mubr.bf16.mxu0 %v7798_v61 }
 0x296   :  { %6843 = vmatpush3.bf16.msra.mxu1 %v7236_v14  ;;  %6867 = vmatpush3.bf16.msra.mxu0 %v7237_v15 }
 0x297   :  { %6844 = vmatprep.subr.bf16.mxu1 %v7238_v21  ;;  %6868 = vmatprep.subr.bf16.mxu0 %v7239_v22 }
 0x29a   :  { %6845 = vmatpush3.bf16.msra.mxu1 %v7238_v21  ;;  %6869 = vmatpush3.bf16.msra.mxu0 %v7239_v22 }
 0x29b   :  { %6846 = vmatprep.subr.bf16.mxu1 %v7240_v23  ;;  %6870 = vmatprep.subr.bf16.mxu0 %v7241_v24 }
 0x29c   :  { %6815 = vmatmul.mubr.bf16.gmra.mrb[60].mxu1 %v7796_v59  ;;  %6839 = vmatmul.mubr.bf16.gmra.mrb[68].mxu0 %v7796_v59 }
 0x29d   :  { %6858 = vmatprep.mubr.bf16.mxu1 %v7790_v51  ;;  %6882 = vmatprep.mubr.bf16.mxu0 %v7790_v51 }
 0x29e   :  { %6847 = vmatpush3.bf16.msra.mxu1 %v7240_v23  ;;  %6871 = vmatpush3.bf16.msra.mxu0 %v7241_v24 }
 0x29f   :  { %6848 = vmatprep.subr.bf16.mxu1 %v7242_v25  ;;  %6872 = vmatprep.subr.bf16.mxu0 %v7243_v26 }
 0x2a1   :  { %v6524_v29 = vpop.f32.mrb[8].mxu1  ;;  %v6548_v30 = vpop.f32.mrb[16].mxu0 }
 0x2a2   :  { %6849 = vmatpush3.bf16.msra.mxu1 %v7242_v25  ;;  %6873 = vmatpush3.bf16.msra.mxu0 %v7243_v26  ;;  %v688_v31 = vpop.f32.mrb[9].mxu1  ;;  %v853_v32 = vpop.f32.mrb[17].mxu0  ;;  %v731_v37 = vrot.slane %v6524_v29, 2  ;;  %v896_v38 = vrot.slane %v6548_v30, 3  ;;  %v7253_v29 = vld [vmem:[#allocation8 + $0x80] sm:$0xff]  }
 0x2a3   :  { %6850 = vmatprep.subr.bf16.mxu1 %v7244_v27  ;;  %6874 = vmatprep.subr.bf16.mxu0 %v7245_v28  ;;  %v6525_v35 = vpop.f32.mrb[10].mxu1  ;;  %v6549_v36 = vpop.f32.mrb[18].mxu0  ;;  %v728_v43 = vrot.slane %v688_v31, 2  ;;  %v893_v46 = vrot.slane %v853_v32, 3 }
 0x2a4   :  { %v733_v39 = vrot.slane %v6525_v35, 2  ;;  %v898_v40 = vrot.slane %v6549_v36, 3  ;;  %v691_v41 = vpop.f32.mrb[11].mxu1  ;;  %v856_v42 = vpop.f32.mrb[19].mxu0  ;;  %v7254_v36 = vld [vmem:[#allocation8 + $0x48] sm:$0xff]  }
 0x2a5   :  { %v729_v44 = vrot.slane %v691_v41, 2  ;;  %v894_v45 = vrot.slane %v856_v42, 3  ;;  %v7261_v41 = vld [vmem:[#allocation8 + $0xa0] sm:$0xff]  }
 0x2a6   :  { %6851 = vmatpush3.bf16.msra.mxu1 %v7244_v27  ;;  %6875 = vmatpush3.bf16.msra.mxu0 %v7245_v28  ;;  %v734_v47 = vsel %vm727_vm13, %v731_v37, %v733_v39  ;;  %v899_v48 = vsel %vm892_vm14, %v896_v38, %v898_v40  ;;  %v7252_v28 = vld [vmem:[#allocation8 + $0x40] sm:$0xff]   ;;  %v7259_v39 = vld [vmem:[#allocation8 + $0x98] sm:$0xff]  }
 0x2a7   :  { %6852 = vmatprep.subr.bf16.mxu1 %v7246_v33  ;;  %6876 = vmatprep.subr.bf16.mxu0 %v7247_v34  ;;  %v750_v52 = vadd.f32 %v734_v47, %v7854_v50  ;;  %v730_v53 = vsel %vm727_vm13, %v728_v43, %v729_v44  ;;  %v732_v54 = vsel %vm727_vm13, %v729_v44, %v731_v37  ;;  %v7255_v37 = vld [vmem:[#allocation8 + $0x88] sm:$0xff]   ;;  %v7260_v40 = vld [vmem:[#allocation8 + $0x60] sm:$0xff]  }
 0x2a8   :  { %v748_v57 = vadd.f32 %v730_v53, %v7858_v62  ;;  %v749_v58 = vadd.f32 %v732_v54, %v7860_v63  ;;  %v895_v60 = vsel %vm892_vm14, %v893_v46, %v894_v45  ;;  %v897_v0 = vsel %vm892_vm14, %v894_v45, %v896_v38  ;;  %v7250_v62 = vld [vmem:[#allocation6 + $0x1b8] sm:$0xff]   ;;  %v7262_v46 = vld [vmem:[#allocation8 + $0x68] sm:$0xff]  }
 0x2a9   :  { %v7887_v1 = vadd.f32 %v899_v48, %v750_v52  ;;  %v6528_v2 = vpop.f32.mrb[12].mxu1  ;;  %v6552_v3 = vpop.f32.mrb[20].mxu0  ;;  %v7251_v63 = vld [vmem:[#allocation8 + $0x38] sm:$0xff]   ;;  %v7263_v47 = vld [vmem:[#allocation8 + $0xa8] sm:$0xff]  }
 0x2aa   :  { %6853 = vmatpush3.bf16.msra.mxu1 %v7246_v33  ;;  %6877 = vmatpush3.bf16.msra.mxu0 %v7247_v34  ;;  %v7889_v50 = vadd.f32 %v895_v60, %v748_v57  ;;  %v7891_v4 = vadd.f32 %v897_v0, %v749_v58  ;;  %v704_v5 = vpop.f32.mrb[13].mxu1  ;;  %v869_v6 = vpop.f32.mrb[21].mxu0  ;;  %v738_v10 = vrot.slane %v6528_v2, 2  ;;  %v903_v11 = vrot.slane %v6552_v3, 3  ;;  %v7258_v38 = vld [vmem:[#allocation8 + $0x58] sm:$0xff]  }
 0x2ab   :  { %6854 = vmatprep.subr.bf16.mxu1 %v7248_v55  ;;  %6878 = vmatprep.subr.bf16.mxu0 %v7249_v56  ;;  %v6529_v7 = vpop.f32.mrb[14].mxu1  ;;  %v6553_v8 = vpop.f32.mrb[22].mxu0  ;;  %v735_v16 = vrot.slane %v704_v5, 2  ;;  %v900_v22 = vrot.slane %v869_v6, 3 }
 0x2ac   :  { %v740_v12 = vrot.slane %v6529_v7, 2  ;;  %v905_v13 = vrot.slane %v6553_v8, 3  ;;  %v707_v14 = vpop.f32.mrb[15].mxu1  ;;  %v872_v15 = vpop.f32.mrb[23].mxu0  ;;  %v7264_v8 = vld [vmem:[#allocation8 + $0x70] sm:$0xff]  }
 0x2ad   :  { %v736_v17 = vrot.slane %v707_v14, 2  ;;  %v901_v21 = vrot.slane %v872_v15, 3 }
 0x2ae   :  { %6855 = vmatpush3.bf16.msra.mxu1 %v7248_v55  ;;  %6879 = vmatpush3.bf16.msra.mxu0 %v7249_v56  ;;  %v741_v23 = vsel %vm727_vm13, %v738_v10, %v740_v12  ;;  %v906_v24 = vsel %vm892_vm14, %v903_v11, %v905_v13 }
 0x2af   :  { %6856 = vmatprep.subr.bf16.mxu1 %v7250_v62  ;;  %6880 = vmatprep.subr.bf16.mxu0 %v7251_v63  ;;  %v753_v25 = vadd.f32 %v741_v23, %v7862_v9  ;;  %v737_v26 = vsel %vm727_vm13, %v735_v16, %v736_v17  ;;  %v739_v27 = vsel %vm727_vm13, %v736_v17, %v738_v10  ;;  %v7265_v10 = vld [vmem:[#allocation8 + $0xb0] sm:$0xff]  }
 0x2b0   :  { %v751_v30 = vadd.f32 %v737_v26, %v7866_v18  ;;  %v752_v31 = vadd.f32 %v739_v27, %v7868_v19  ;;  %v902_v32 = vsel %vm892_vm14, %v900_v22, %v901_v21  ;;  %v904_v33 = vsel %vm892_vm14, %v901_v21, %v903_v11  ;;  %v7256_v18 = vld [vmem:[#allocation8 + $0x50] sm:$0xff]  }
 0x2b1   :  { %v7902_v34 = vadd.f32 %v906_v24, %v753_v25  ;;  %v7257_v19 = vld [vmem:[#allocation8 + $0x90] sm:$0xff]  }
 0x2b2   :  { %6857 = vmatpush3.bf16.msra.mxu1 %v7250_v62  ;;  %6881 = vmatpush3.bf16.msra.mxu0 %v7251_v63  ;;  %v7904_v35 = vadd.f32 %v902_v32, %v751_v30  ;;  %v7906_v9 = vadd.f32 %v904_v33, %v752_v31 }
 0x2b3   :  { %6890 = vmatprep.subr.bf16.mxu1 %v7252_v28  ;;  %6914 = vmatprep.subr.bf16.mxu0 %v7253_v29 }
 0x2b5   :  { %6859 = vmatmul.mubr.bf16.vlgmr.msra.gmra.mrb[64].mxu1 %v7788_v49  ;;  %6883 = vmatmul.mubr.bf16.vlgmr.msra.gmra.mrb[72].mxu0 %v7788_v49 }
 0x2b6   :  { %6862 = vmatprep.mubr.bf16.mxu1 %v7798_v61  ;;  %6886 = vmatprep.mubr.bf16.mxu0 %v7798_v61 }
 0x2b7   :  { %6891 = vmatpush3.bf16.msra.mxu1 %v7252_v28  ;;  %6915 = vmatpush3.bf16.msra.mxu0 %v7253_v29 }
 0x2b8   :  { %6892 = vmatprep.subr.bf16.mxu1 %v7254_v36  ;;  %6916 = vmatprep.subr.bf16.mxu0 %v7255_v37 }
 0x2bb   :  { %6893 = vmatpush3.bf16.msra.mxu1 %v7254_v36  ;;  %6917 = vmatpush3.bf16.msra.mxu0 %v7255_v37 }
 0x2bc   :  { %6894 = vmatprep.subr.bf16.mxu1 %v7256_v18  ;;  %6918 = vmatprep.subr.bf16.mxu0 %v7257_v19 }
 0x2bd   :  { %6863 = vmatmul.mubr.bf16.gmra.mrb[68].mxu1 %v7796_v59  ;;  %6887 = vmatmul.mubr.bf16.gmra.mrb[76].mxu0 %v7796_v59 }
 0x2be   :  { %6906 = vmatprep.mubr.bf16.mxu1 %v7790_v51  ;;  %6930 = vmatprep.mubr.bf16.mxu0 %v7790_v51 }
 0x2bf   :  { %6895 = vmatpush3.bf16.msra.mxu1 %v7256_v18  ;;  %6919 = vmatpush3.bf16.msra.mxu0 %v7257_v19 }
 0x2c0   :  { %6896 = vmatprep.subr.bf16.mxu1 %v7258_v38  ;;  %6920 = vmatprep.subr.bf16.mxu0 %v7259_v39 }
 0x2c2   :  { %v6572_v42 = vpop.f32.mrb[16].mxu1  ;;  %v6596_v43 = vpop.f32.mrb[24].mxu0 }
 0x2c3   :  { %6897 = vmatpush3.bf16.msra.mxu1 %v7258_v38  ;;  %6921 = vmatpush3.bf16.msra.mxu0 %v7259_v39  ;;  %v1018_v44 = vpop.f32.mrb[17].mxu1  ;;  %v1183_v45 = vpop.f32.mrb[25].mxu0  ;;  %v1061_v53 = vrot.slane %v6572_v42, 4  ;;  %v1226_v54 = vrot.slane %v6596_v43, 5  ;;  %v7269_v42 = vld [vmem:[#allocation8 + $0x100] sm:$0xff]  }
 0x2c4   :  { %6898 = vmatprep.subr.bf16.mxu1 %v7260_v40  ;;  %6922 = vmatprep.subr.bf16.mxu0 %v7261_v41  ;;  %v6573_v48 = vpop.f32.mrb[18].mxu1  ;;  %v6597_v52 = vpop.f32.mrb[26].mxu0  ;;  %v1058_v60 = vrot.slane %v1018_v44, 4  ;;  %v1223_v3 = vrot.slane %v1183_v45, 5 }
 0x2c5   :  { %v1063_v55 = vrot.slane %v6573_v48, 4  ;;  %v1228_v56 = vrot.slane %v6597_v52, 5  ;;  %v1021_v57 = vpop.f32.mrb[19].mxu1  ;;  %v1186_v58 = vpop.f32.mrb[27].mxu0  ;;  %v7270_v52 = vld [vmem:[#allocation8 + $0xc8] sm:$0xff]  }
 0x2c6   :  { %v1059_v0 = vrot.slane %v1021_v57, 4  ;;  %v1224_v2 = vrot.slane %v1186_v58, 5  ;;  %v7277_v57 = vld [vmem:[#allocation8 + $0x120] sm:$0xff]  }
 0x2c7   :  { %6899 = vmatpush3.bf16.msra.mxu1 %v7260_v40  ;;  %6923 = vmatpush3.bf16.msra.mxu0 %v7261_v41  ;;  %v1064_v5 = vsel %vm1057_vm15, %v1061_v53, %v1063_v55  ;;  %v1229_v6 = vsel %vm1222_vm0, %v1226_v54, %v1228_v56  ;;  %v7268_v41 = vld [vmem:[#allocation8 + $0xc0] sm:$0xff]   ;;  %v7275_v55 = vld [vmem:[#allocation8 + $0x118] sm:$0xff]  }
 0x2c8   :  { %6900 = vmatprep.subr.bf16.mxu1 %v7262_v46  ;;  %6924 = vmatprep.subr.bf16.mxu0 %v7263_v47  ;;  %v1080_v62 = vadd.f32 %v1064_v5, %v7887_v1  ;;  %v1060_v63 = vsel %vm1057_vm15, %v1058_v60, %v1059_v0  ;;  %v1062_v7 = vsel %vm1057_vm15, %v1059_v0, %v1061_v53  ;;  %v7271_v53 = vld [vmem:[#allocation8 + $0x108] sm:$0xff]   ;;  %v7276_v56 = vld [vmem:[#allocation8 + $0xe0] sm:$0xff]  }
 0x2c9   :  { %v1078_v11 = vadd.f32 %v1060_v63, %v7889_v50  ;;  %v1079_v12 = vadd.f32 %v1062_v7, %v7891_v4  ;;  %v1225_v13 = vsel %vm1222_vm0, %v1223_v3, %v1224_v2  ;;  %v1227_v14 = vsel %vm1222_vm0, %v1224_v2, %v1226_v54  ;;  %v7266_v50 = vld [vmem:[#allocation8 + $0x78] sm:$0xff]   ;;  %v7278_v3 = vld [vmem:[#allocation8 + $0xe8] sm:$0xff]  }
 0x2ca   :  { %v7925_v15 = vadd.f32 %v1229_v6, %v1080_v62  ;;  %v6576_v16 = vpop.f32.mrb[20].mxu1  ;;  %v6600_v17 = vpop.f32.mrb[28].mxu0  ;;  %v7267_v4 = vld [vmem:[#allocation8 + $0xb8] sm:$0xff]   ;;  %v7279_v5 = vld [vmem:[#allocation8 + $0x128] sm:$0xff]  }
 0x2cb   :  { %6901 = vmatpush3.bf16.msra.mxu1 %v7262_v46  ;;  %6925 = vmatpush3.bf16.msra.mxu0 %v7263_v47  ;;  %v7927_v1 = vadd.f32 %v1225_v13, %v1078_v11  ;;  %v7929_v21 = vadd.f32 %v1227_v14, %v1079_v12  ;;  %v1034_v22 = vpop.f32.mrb[21].mxu1  ;;  %v1199_v23 = vpop.f32.mrb[29].mxu0  ;;  %v1068_v26 = vrot.slane %v6576_v16, 4  ;;  %v1233_v27 = vrot.slane %v6600_v17, 5  ;;  %v7274_v54 = vld [vmem:[#allocation8 + $0xd8] sm:$0xff]  }
 0x2cc   :  { %6902 = vmatprep.subr.bf16.mxu1 %v7264_v8  ;;  %6926 = vmatprep.subr.bf16.mxu0 %v7265_v10  ;;  %v6577_v24 = vpop.f32.mrb[22].mxu1  ;;  %v6601_v25 = vpop.f32.mrb[30].mxu0  ;;  %v1065_v32 = vrot.slane %v1034_v22, 4  ;;  %v1230_v37 = vrot.slane %v1199_v23, 5 }
 0x2cd   :  { %v1070_v28 = vrot.slane %v6577_v24, 4  ;;  %v1235_v29 = vrot.slane %v6601_v25, 5  ;;  %v1037_v30 = vpop.f32.mrb[23].mxu1  ;;  %v1202_v31 = vpop.f32.mrb[31].mxu0  ;;  %v7280_v24 = vld [vmem:[#allocation8 + $0xf0] sm:$0xff]  }
 0x2ce   :  { %v1066_v33 = vrot.slane %v1037_v30, 4  ;;  %v1231_v36 = vrot.slane %v1202_v31, 5  ;;  %v7281_v25 = vld [vmem:[#allocation8 + $0x130] sm:$0xff]  }
 0x2cf   :  { %6903 = vmatpush3.bf16.msra.mxu1 %v7264_v8  ;;  %6927 = vmatpush3.bf16.msra.mxu0 %v7265_v10  ;;  %v1071_v18 = vsel %vm1057_vm15, %v1068_v26, %v1070_v28  ;;  %v1236_v19 = vsel %vm1222_vm0, %v1233_v27, %v1235_v29 }
 0x2d0   :  { %6904 = vmatprep.subr.bf16.mxu1 %v7266_v50  ;;  %6928 = vmatprep.subr.bf16.mxu0 %v7267_v4  ;;  %v1083_v38 = vadd.f32 %v1071_v18, %v7902_v34  ;;  %v1067_v39 = vsel %vm1057_vm15, %v1065_v32, %v1066_v33  ;;  %v1069_v40 = vsel %vm1057_vm15, %v1066_v33, %v1068_v26 }
 0x2d1   :  { %v1081_v43 = vadd.f32 %v1067_v39, %v7904_v35  ;;  %v1082_v44 = vadd.f32 %v1069_v40, %v7906_v9  ;;  %v1232_v45 = vsel %vm1222_vm0, %v1230_v37, %v1231_v36  ;;  %v1234_v46 = vsel %vm1222_vm0, %v1231_v36, %v1233_v27  ;;  %v7272_v35 = vld [vmem:[#allocation8 + $0xd0] sm:$0xff]  }
 0x2d2   :  { %v7940_v47 = vadd.f32 %v1236_v19, %v1083_v38  ;;  %v7273_v9 = vld [vmem:[#allocation8 + $0x110] sm:$0xff]   ;;  %v7282_v19 = vld [vmem:[#allocation8 + $0xf8] sm:$0xff]  }
 0x2d3   :  { %6905 = vmatpush3.bf16.msra.mxu1 %v7266_v50  ;;  %6929 = vmatpush3.bf16.msra.mxu0 %v7267_v4  ;;  %v7942_v48 = vadd.f32 %v1232_v45, %v1081_v43  ;;  %v7944_v34 = vadd.f32 %v1234_v46, %v1082_v44 }
 0x2d4   :  { %6938 = vmatprep.subr.bf16.mxu1 %v7268_v41  ;;  %6962 = vmatprep.subr.bf16.mxu0 %v7269_v42 }
 0x2d6   :  { %6907 = vmatmul.mubr.bf16.vlgmr.msra.gmra.mrb[72].mxu1 %v7788_v49  ;;  %6931 = vmatmul.mubr.bf16.vlgmr.msra.gmra.mrb[80].mxu0 %v7788_v49 }
 0x2d7   :  { %6910 = vmatprep.mubr.bf16.mxu1 %v7798_v61  ;;  %6934 = vmatprep.mubr.bf16.mxu0 %v7798_v61 }
 0x2d8   :  { %6939 = vmatpush3.bf16.msra.mxu1 %v7268_v41  ;;  %6963 = vmatpush3.bf16.msra.mxu0 %v7269_v42 }
 0x2d9   :  { %6940 = vmatprep.subr.bf16.mxu1 %v7270_v52  ;;  %6964 = vmatprep.subr.bf16.mxu0 %v7271_v53 }
 0x2dc   :  { %6941 = vmatpush3.bf16.msra.mxu1 %v7270_v52  ;;  %6965 = vmatpush3.bf16.msra.mxu0 %v7271_v53 }
 0x2dd   :  { %6942 = vmatprep.subr.bf16.mxu1 %v7272_v35  ;;  %6966 = vmatprep.subr.bf16.mxu0 %v7273_v9 }
 0x2de   :  { %6911 = vmatmul.mubr.bf16.gmra.mrb[76].mxu1 %v7796_v59  ;;  %6935 = vmatmul.mubr.bf16.gmra.mrb[84].mxu0 %v7796_v59 }
 0x2df   :  { %6954 = vmatprep.mubr.bf16.mxu1 %v7790_v51  ;;  %6978 = vmatprep.mubr.bf16.mxu0 %v7790_v51 }
 0x2e0   :  { %6943 = vmatpush3.bf16.msra.mxu1 %v7272_v35  ;;  %6967 = vmatpush3.bf16.msra.mxu0 %v7273_v9 }
 0x2e1   :  { %6944 = vmatprep.subr.bf16.mxu1 %v7274_v54  ;;  %6968 = vmatprep.subr.bf16.mxu0 %v7275_v55 }
 0x2e3   :  { %v6620_v58 = vpop.f32.mrb[24].mxu1  ;;  %v6644_v60 = vpop.f32.mrb[32].mxu0 }
 0x2e4   :  { %6945 = vmatpush3.bf16.msra.mxu1 %v7274_v54  ;;  %6969 = vmatpush3.bf16.msra.mxu0 %v7275_v55  ;;  %v1348_v0 = vpop.f32.mrb[25].mxu1  ;;  %v1513_v2 = vpop.f32.mrb[33].mxu0  ;;  %v1391_v63 = vrot.slane %v6620_v58, 6  ;;  %v1556_v7 = vrot.slane %v6644_v60, 7 }
 0x2e5   :  { %6946 = vmatprep.subr.bf16.mxu1 %v7276_v56  ;;  %6970 = vmatprep.subr.bf16.mxu0 %v7277_v57  ;;  %v6621_v6 = vpop.f32.mrb[26].mxu1  ;;  %v6645_v62 = vpop.f32.mrb[34].mxu0  ;;  %v1388_v13 = vrot.slane %v1348_v0, 6  ;;  %v1553_v17 = vrot.slane %v1513_v2, 7 }
 0x2e6   :  { %v1393_v8 = vrot.slane %v6621_v6, 6  ;;  %v1558_v10 = vrot.slane %v6645_v62, 7  ;;  %v1351_v11 = vpop.f32.mrb[27].mxu1  ;;  %v1516_v12 = vpop.f32.mrb[35].mxu0 }
 0x2e7   :  { %v1389_v14 = vrot.slane %v1351_v11, 6  ;;  %v1554_v16 = vrot.slane %v1516_v12, 7  ;;  %v7293_v11 = vld [vmem:[%s8372_s8 + $0x60] sm:$0xff]  }
 0x2e8   :  { %6947 = vmatpush3.bf16.msra.mxu1 %v7276_v56  ;;  %6971 = vmatpush3.bf16.msra.mxu0 %v7277_v57  ;;  %v1394_v22 = vsel %vm1387_vm1, %v1391_v63, %v1393_v8  ;;  %v1559_v23 = vsel %vm1552_vm2, %v1556_v7, %v1558_v10  ;;  %v7284_v56 = vld [vmem:[%s8372_s8] sm:$0xff]   ;;  %v7291_v8 = vld [vmem:[%s8372_s8 + $0x58] sm:$0xff]  }
 0x2e9   :  { %6948 = vmatprep.subr.bf16.mxu1 %v7278_v3  ;;  %6972 = vmatprep.subr.bf16.mxu0 %v7279_v5  ;;  %v1390_v50 = vsel %vm1387_vm1, %v1388_v13, %v1389_v14  ;;  %v1392_v4 = vsel %vm1387_vm1, %v1389_v14, %v1391_v63  ;;  %v1557_v26 = vsel %vm1552_vm2, %v1554_v16, %v1556_v7  ;;  %v7285_v57 = vld [vmem:[%s8372_s8 + $0x40] sm:$0xff]   ;;  %v7289_v63 = vld [vmem:[%s8372_s8 + $0x50] sm:$0xff]   ;;  %v7290_v7 = vld [vmem:[%s8372_s8 + $0x18] sm:$0xff]  }
 0x2ea   :  { %v1409_v27 = vadd.f32 %v1392_v4, %v7929_v21  ;;  %v1410_v28 = vadd.f32 %v1394_v22, %v7925_v15  ;;  %v1408_v29 = vadd.f32 %v1390_v50, %v7927_v1  ;;  %v1555_v30 = vsel %vm1552_vm2, %v1553_v17, %v1554_v16  ;;  %v7283_v21 = vld [vmem:[#allocation8 + $0x138] sm:$0xff]   ;;  %v7294_v22 = vld [vmem:[%s8372_s8 + $0x28] sm:$0xff]  }
 0x2eb   :  { %v6624_v31 = vpop.f32.mrb[28].mxu1  ;;  %v6648_v32 = vpop.f32.mrb[36].mxu0  ;;  %v7292_v10 = vld [vmem:[%s8372_s8 + $0x20] sm:$0xff]  }
 0x2ec   :  { %6949 = vmatpush3.bf16.msra.mxu1 %v7278_v3  ;;  %6973 = vmatpush3.bf16.msra.mxu0 %v7279_v5  ;;  %v1364_v33 = vpop.f32.mrb[29].mxu1  ;;  %v1529_v36 = vpop.f32.mrb[37].mxu0  ;;  %v7963_v37 = vadd.f32 %v1557_v26, %v1409_v27  ;;  %v7965_v18 = vadd.f32 %v1559_v23, %v1410_v28  ;;  %v7967_v39 = vadd.f32 %v1555_v30, %v1408_v29  ;;  %v1398_v1 = vrot.slane %v6624_v31, 6  ;;  %v7295_v23 = vld [vmem:[%s8372_s8 + $0x68] sm:$0xff]  }
 0x2ed   :  { %6950 = vmatprep.subr.bf16.mxu1 %v7280_v24  ;;  %6974 = vmatprep.subr.bf16.mxu0 %v7281_v25  ;;  %v6625_v38 = vpop.f32.mrb[30].mxu1  ;;  %v6649_v15 = vpop.f32.mrb[38].mxu0  ;;  %v1563_v40 = vrot.slane %v6648_v32, 7  ;;  %v1395_v45 = vrot.slane %v1364_v33, 6  ;;  %v1560_v53 = vrot.slane %v1529_v36, 7 }
 0x2ee   :  { %v1400_v41 = vrot.slane %v6625_v38, 6  ;;  %v1565_v42 = vrot.slane %v6649_v15, 7  ;;  %v1367_v43 = vpop.f32.mrb[31].mxu1  ;;  %v1532_v44 = vpop.f32.mrb[39].mxu0 }
 0x2ef   :  { %v1396_v46 = vrot.slane %v1367_v43, 6  ;;  %v1561_v52 = vrot.slane %v1532_v44, 7  ;;  %v7299_v43 = vld [vmem:[%s8372_s8 + $0x78] sm:$0xff]  }
 0x2f0   :  { %6951 = vmatpush3.bf16.msra.mxu1 %v7280_v24  ;;  %6975 = vmatpush3.bf16.msra.mxu0 %v7281_v25  ;;  %v1401_v35 = vsel %vm1387_vm1, %v1398_v1, %v1400_v41  ;;  %v1566_v9 = vsel %vm1552_vm2, %v1563_v40, %v1565_v42  ;;  %v7298_v42 = vld [vmem:[%s8372_s8 + $0x38] sm:$0xff]  }
 0x2f1   :  { %6952 = vmatprep.subr.bf16.mxu1 %v7282_v19  ;;  %6976 = vmatprep.subr.bf16.mxu0 %v7283_v21  ;;  %v1397_v54 = vsel %vm1387_vm1, %v1395_v45, %v1396_v46  ;;  %v1399_v55 = vsel %vm1387_vm1, %v1396_v46, %v1398_v1  ;;  %v1564_v58 = vsel %vm1552_vm2, %v1561_v52, %v1563_v40 }
 0x2f2   :  { %v1412_v60 = vadd.f32 %v1399_v55, %v7944_v34  ;;  %v1413_v0 = vadd.f32 %v1401_v35, %v7940_v47  ;;  %v1411_v2 = vadd.f32 %v1397_v54, %v7942_v48  ;;  %v1562_v3 = vsel %vm1552_vm2, %v1560_v53, %v1561_v52  ;;  %v7286_v34 = vld [vmem:[%s8372_s8 + $0x8] sm:$0xff]   ;;  %v7288_v48 = vld [vmem:[%s8372_s8 + $0x10] sm:$0xff]  }
 0x2f3   :  { %v7287_v47 = vld [vmem:[%s8372_s8 + $0x48] sm:$0xff]  }
 0x2f4   :  { %6953 = vmatpush3.bf16.msra.mxu1 %v7282_v19  ;;  %6977 = vmatpush3.bf16.msra.mxu0 %v7283_v21  ;;  %v7984_v5 = vadd.f32 %v1564_v58, %v1412_v60  ;;  %v7986_v6 = vadd.f32 %v1566_v9, %v1413_v0  ;;  %v7988_v62 = vadd.f32 %v1562_v3, %v1411_v2  ;;  %v7300_v3 = vld [vmem:[%s8372_s8 + $0x80] sm:$0xff]  }
 0x2f5   :  { %6986 = vmatprep.subr.bf16.mxu1 %v7284_v56  ;;  %7010 = vmatprep.subr.bf16.mxu0 %v7285_v57 }
 0x2f7   :  { %6955 = vmatmul.mubr.bf16.vlgmr.msra.gmra.mrb[80].mxu1 %v7788_v49  ;;  %6979 = vmatmul.mubr.bf16.vlgmr.msra.gmra.mrb[88].mxu0 %v7788_v49 }
 0x2f8   :  { %6958 = vmatprep.mubr.bf16.mxu1 %v7798_v61  ;;  %6982 = vmatprep.mubr.bf16.mxu0 %v7798_v61 }
 0x2f9   :  { %6987 = vmatpush3.bf16.msra.mxu1 %v7284_v56  ;;  %7011 = vmatpush3.bf16.msra.mxu0 %v7285_v57 }
 0x2fa   :  { %6988 = vmatprep.subr.bf16.mxu1 %v7286_v34  ;;  %7012 = vmatprep.subr.bf16.mxu0 %v7287_v47 }
 0x2fd   :  { %6989 = vmatpush3.bf16.msra.mxu1 %v7286_v34  ;;  %7013 = vmatpush3.bf16.msra.mxu0 %v7287_v47 }
 0x2fe   :  { %6990 = vmatprep.subr.bf16.mxu1 %v7288_v48  ;;  %7014 = vmatprep.subr.bf16.mxu0 %v7289_v63 }
 0x2ff   :  { %6959 = vmatmul.mubr.bf16.gmra.mrb[84].mxu1 %v7796_v59  ;;  %6983 = vmatmul.mubr.bf16.gmra.mrb[92].mxu0 %v7796_v59 }
 0x300   :  { %7002 = vmatprep.mubr.bf16.mxu1 %v7790_v51  ;;  %7026 = vmatprep.mubr.bf16.mxu0 %v7790_v51 }
 0x301   :  { %6991 = vmatpush3.bf16.msra.mxu1 %v7288_v48  ;;  %7015 = vmatpush3.bf16.msra.mxu0 %v7289_v63  ;;  %v7301_v63 = vld [vmem:[%s8372_s8 + $0x88] sm:$0xff]  }
 0x302   :  { %6992 = vmatprep.subr.bf16.mxu1 %v7290_v7  ;;  %7016 = vmatprep.subr.bf16.mxu0 %v7291_v8 }
 0x304   :  { %v6668_v12 = vpop.f32.mrb[32].mxu1  ;;  %v6692_v13 = vpop.f32.mrb[40].mxu0 }
 0x305   :  { %6993 = vmatpush3.bf16.msra.mxu1 %v7290_v7  ;;  %7017 = vmatpush3.bf16.msra.mxu0 %v7291_v8  ;;  %v1708_v14 = vadd.f32 %v6668_v12, %v7963_v37  ;;  %v1678_v16 = vpop.f32.mrb[33].mxu1  ;;  %v1812_v17 = vpop.f32.mrb[41].mxu0  ;;  %v1848_v24 = vrot.slane %v6692_v13, 1  ;;  %v7296_v37 = vld [vmem:[%s8372_s8 + $0x30] sm:$0xff]   ;;  %v7589_v12 = vmov 1983009808  }
 0x306   :  { %6994 = vmatprep.subr.bf16.mxu1 %v7292_v10  ;;  %7018 = vmatprep.subr.bf16.mxu0 %v7293_v11  ;;  %v6669_v50 = vpop.f32.mrb[34].mxu1  ;;  %v6693_v4 = vpop.f32.mrb[42].mxu0  ;;  %v1899_v13 = vunpack.c.l.s4 %v7589_v12 }
 0x307   :  { %v1709_v25 = vadd.f32 %v6669_v50, %v7965_v18  ;;  %v1850_v26 = vrot.slane %v6693_v4, 1  ;;  %v1680_v27 = vpop.f32.mrb[35].mxu1  ;;  %v1814_v28 = vpop.f32.mrb[43].mxu0  ;;  %v7297_v18 = vld [vmem:[%s8372_s8 + $0x70] sm:$0xff]   ;;  %v8071_v50 = vshrl.u32 %v112_v20, 7 }
 0x308   :  { %v1707_v29 = vadd.f32 %v1680_v27, %v7967_v39  ;;  %v1847_v30 = vrot.slane %v1814_v28, 1  ;;  %v7304_v27 = vld [vmem:[%s8372_s8 + $0xa0] sm:$0xff]  }
 0x309   :  { %6995 = vmatpush3.bf16.msra.mxu1 %v7292_v10  ;;  %7019 = vmatpush3.bf16.msra.mxu0 %v7293_v11  ;;  %v1851_v31 = vsel %vm566_vm12, %v1848_v24, %v1850_v26  ;;  %v1865_v32 = vadd.f32 %v1850_v26, %v1709_v25  ;;  %v7302_v11 = vld [vmem:[%s8372_s8 + $0x90] sm:$0xff]   ;;  %v5770_v25 = vld [vmem:[%s8367_s3] ss:$0 sm:$0xff] }
 0x30a   :  { %6996 = vmatprep.subr.bf16.mxu1 %v7294_v22  ;;  %7020 = vmatprep.subr.bf16.mxu0 %v7295_v23  ;;  %v1864_v33 = vadd.f32 %v1851_v31, %v1708_v14  ;;  %v1849_v36 = vsel %vm566_vm12, %v1847_v30, %v1848_v24 }
 0x30b   :  { %v1869_v19 = vsel %vm566_vm12, %v1865_v32, -inf  ;;  %v1863_v21 = vadd.f32 %v1849_v36, %v1707_v29  ;;  %v7305_v36 = vld [vmem:[%s8372_s8 + $0xa8] sm:$0xff]  }
 0x30c   :  { %v6672_v38 = vpop.f32.mrb[36].mxu1  ;;  %v6696_v15 = vpop.f32.mrb[44].mxu0 }
 0x30d   :  { %6997 = vmatpush3.bf16.msra.mxu1 %v7294_v22  ;;  %7021 = vmatpush3.bf16.msra.mxu0 %v7295_v23  ;;  %v1870_v39 = vmax.f32 %v1863_v21, %v1869_v19  ;;  %v1711_v1 = vadd.f32 %v6672_v38, %v7984_v5  ;;  %v1693_v40 = vpop.f32.mrb[37].mxu1  ;;  %v1827_v41 = vpop.f32.mrb[45].mxu0  ;;  %v1853_v52 = vrot.slane %v6696_v15, 1  ;;  %v7303_v22 = vld [vmem:[%s8372_s8 + $0x98] sm:$0xff]   ;;  %v1900_v23 = vunpack.c.0.s8 %v1899_v13 }
 0x30e   :  { %6998 = vmatprep.subr.bf16.mxu1 %v7296_v37  ;;  %7022 = vmatprep.subr.bf16.mxu0 %v7297_v18  ;;  %v6673_v44 = vpop.f32.mrb[38].mxu1  ;;  %v6697_v45 = vpop.f32.mrb[46].mxu0 }
 0x30f   :  { %v1871_v46 = vmax.f32 %v1870_v39, %v1864_v33  ;;  %v1712_v53 = vadd.f32 %v6673_v44, %v7986_v6  ;;  %v1855_v35 = vrot.slane %v6697_v45, 1  ;;  %v1695_v9 = vpop.f32.mrb[39].mxu1  ;;  %v1829_v54 = vpop.f32.mrb[47].mxu0  ;;  %v8081_v28 = vsub.s32 %v1900_v23, %v8071_v50 }
 0x310   :  { %v1710_v55 = vadd.f32 %v1695_v9, %v7988_v62  ;;  %v1852_v56 = vrot.slane %v1829_v54, 1 }
 0x311   :  { %v1872_v57 = vrot.slane %v1871_v46, 4  ;;  %6999 = vmatpush3.bf16.msra.mxu1 %v7296_v37  ;;  %7023 = vmatpush3.bf16.msra.mxu0 %v7297_v18  ;;  %v1856_v58 = vsel %vm566_vm12, %v1853_v52, %v1855_v35  ;;  %v1868_v60 = vadd.f32 %v1855_v35, %v1712_v53  ;;  %v7306_v53 = vld [vmem:[%s8372_s8 + $0xb0] sm:$0xff]  }
 0x312   :  { %7000 = vmatprep.subr.bf16.mxu1 %v7298_v42  ;;  %7024 = vmatprep.subr.bf16.mxu0 %v7299_v43  ;;  %v1867_v0 = vadd.f32 %v1856_v58, %v1711_v1  ;;  %v1854_v2 = vsel %vm566_vm12, %v1852_v56, %v1853_v52 }
 0x313   :  { %v1873_v5 = vmax.f32 %v1871_v46, %v1872_v57  ;;  %v1878_v6 = vsel %vm566_vm12, %v1868_v60, -inf  ;;  %v1866_v62 = vadd.f32 %v1854_v2, %v1710_v55  ;;  %v7307_v2 = vld [vmem:[%s8372_s8 + $0xb8] sm:$0xff]  }
 0x315   :  { %v1874_v34 = vrot.slane %v1873_v5, 2  ;;  %7001 = vmatpush3.bf16.msra.mxu1 %v7298_v42  ;;  %7025 = vmatpush3.bf16.msra.mxu0 %v7299_v43  ;;  %v1879_v47 = vmax.f32 %v1866_v62, %v1878_v6 }
 0x316   :  { %7034 = vmatprep.subr.bf16.mxu1 %v7300_v3 }
 0x317   :  { %v1880_v48 = vmax.f32 %v1879_v47, %v1867_v0  ;;  %v1875_v7 = vmax.f32 %v1873_v5, %v1874_v34 }
 0x318   :  { %7003 = vmatmul.mubr.bf16.vlgmr.msra.gmra.mrb[88].mxu1 %v7788_v49  ;;  %7027 = vmatmul.mubr.bf16.vlgmr.msra.gmra.mrb[96].mxu0 %v7788_v49 }
 0x319   :  { %v1881_v8 = vrot.slane %v1880_v48, 4  ;;  %7006 = vmatprep.mubr.bf16.mxu1 %v7798_v61  ;;  %7030 = vmatprep.mubr.bf16.mxu0 %v7798_v61  ;;  %v1876_v14 = vrot.slane %v1875_v7, 1 }
 0x31a   :  { %7035 = vmatpush3.bf16.msra.mxu1 %v7300_v3 }
 0x31b   :  { %v1882_v10 = vmax.f32 %v1880_v48, %v1881_v8  ;;  %7036 = vmatprep.subr.bf16.mxu1 %v7301_v63  ;;  %v1877_v4 = vmax.f32 %v1875_v7, %v1876_v14 }
 0x31d   :  { %v1883_v16 = vrot.slane %v1882_v10, 2  ;;  %v1894_v20 = vadd.f32 %v5770_v25, %v1877_v4 }
 0x31e   :  { %7037 = vmatpush3.bf16.msra.mxu1 %v7301_v63 }
 0x31f   :  { %v1884_v17 = vmax.f32 %v1882_v10, %v1883_v16  ;;  %7038 = vmatprep.subr.bf16.mxu1 %v7302_v11  ;;  %v1904_v39 = vrot.slane %v1894_v20, %v8081_v28 }
 0x320   :  { %7007 = vmatmul.mubr.bf16.gmra.mrb[92].mxu1 %v7796_v59  ;;  %7031 = vmatmul.mubr.bf16.gmra.mrb[100].mxu0 %v7796_v59 }
 0x321   :  { %v1885_v24 = vrot.slane %v1884_v17, 1  ;;  %7050 = vmatprep.mubr.bf16.mxu1 %v7790_v51 }
 0x322   :  { %7039 = vmatpush3.bf16.msra.mxu1 %v7302_v11 }
 0x323   :  { %v1886_v26 = vmax.f32 %v1884_v17, %v1885_v24  ;;  %7040 = vmatprep.subr.bf16.mxu1 %v7303_v22 }
 0x325   :  { %v1895_v29 = vadd.f32 %v5770_v25, %v1886_v26  ;;  %v6716_v30 = vpop.f32.mrb[40].mxu1  ;;  %v6740_v31 = vpop.f32.mrb[48].mxu0 }
 0x326   :  { %7041 = vmatpush3.bf16.msra.mxu1 %v7303_v22  ;;  %v2025_v51 = vpop.f32.mrb[41].mxu1  ;;  %v2163_v32 = vpop.f32.mrb[49].mxu0  ;;  %v2205_v19 = vrot.slane %v6740_v31, 1 }
 0x327   :  { %v1911_v33 = vrot.slane %v1895_v29, %v8081_v28  ;;  %7042 = vmatprep.subr.bf16.mxu1 %v7304_v27  ;;  %v6717_v37 = vpop.f32.mrb[42].mxu1  ;;  %v6741_v18 = vpop.f32.mrb[50].mxu0  ;;  %v2202_v40 = vrot.slane %v2163_v32, 1 }
 0x328   :  { %v2207_v21 = vrot.slane %v6741_v18, 1  ;;  %v2028_v38 = vpop.f32.mrb[43].mxu1  ;;  %v2166_v15 = vpop.f32.mrb[51].mxu0 }
 0x329   :  { %v1916_v1 = vrot.slane %v1911_v33, 7  ;;  %v2203_v41 = vrot.slane %v2166_v15, 1 }
 0x32a   :  { %7043 = vmatpush3.bf16.msra.mxu1 %v7304_v27  ;;  %v2208_v42 = vsel %vm566_vm12, %v2205_v19, %v2207_v21  ;;  %v2227_v43 = vadd.f32 %v6717_v37, %v2207_v21 }
 0x32b   :  { %v1918_v44 = vsel %vm1917_vm3, %v1916_v1, %v1904_v39  ;;  %7044 = vmatprep.subr.bf16.mxu1 %v7305_v36  ;;  %v2226_v45 = vadd.f32 %v6716_v30, %v2208_v42  ;;  %v2204_v46 = vsel %vm566_vm12, %v2202_v40, %v2203_v41  ;;  %v2206_v52 = vsel %vm566_vm12, %v2203_v41, %v2205_v19 }
 0x32c   :  { %v1920_v35 = vsel %vm1919_vm4, %v1916_v1, %v1918_v44  ;;  %v2224_v9 = vadd.f32 %v2204_v46, %v2025_v51  ;;  %v2225_v54 = vadd.f32 %v2206_v52, %v2028_v38 }
 0x32d   :  { %v1922_v55 = vsel %vm1921_vm5, %v1916_v1, %v1920_v35  ;;  %v6720_v56 = vpop.f32.mrb[44].mxu1  ;;  %v6744_v57 = vpop.f32.mrb[52].mxu0 }
 0x32e   :  { %v1924_v58 = vsel %vm1923_vm6, %v1916_v1, %v1922_v55  ;;  %7045 = vmatpush3.bf16.msra.mxu1 %v7305_v36  ;;  %v2041_v60 = vpop.f32.mrb[45].mxu1  ;;  %v2179_v0 = vpop.f32.mrb[53].mxu0  ;;  %v2212_v6 = vrot.slane %v6744_v57, 1 }
 0x32f   :  { %1926 = vst [vmem:[#allocation2] sm:$0x3] %v1924_v58  ;;  %7046 = vmatprep.subr.bf16.mxu1 %v7306_v53  ;;  %v6721_v3 = vpop.f32.mrb[46].mxu1  ;;  %v6745_v5 = vpop.f32.mrb[54].mxu0  ;;  %v2209_v48 = vrot.slane %v2179_v0, 1 }
 0x330   :  { %v2214_v62 = vrot.slane %v6745_v5, 1  ;;  %v2044_v34 = vpop.f32.mrb[47].mxu1  ;;  %v2182_v47 = vpop.f32.mrb[55].mxu0 }
 0x331   :  { %v2210_v63 = vrot.slane %v2182_v47, 1 }
 0x332   :  { %7047 = vmatpush3.bf16.msra.mxu1 %v7306_v53  ;;  %v2215_v7 = vsel %vm566_vm12, %v2212_v6, %v2214_v62  ;;  %v2231_v8 = vadd.f32 %v6721_v3, %v2214_v62 }
 0x333   :  { %7048 = vmatprep.subr.bf16.mxu1 %v7307_v2  ;;  %v2230_v10 = vadd.f32 %v6720_v56, %v2215_v7  ;;  %v2211_v11 = vsel %vm566_vm12, %v2209_v48, %v2210_v63  ;;  %v2213_v12 = vsel %vm566_vm12, %v2210_v63, %v2212_v6 }
 0x334   :  { %v2228_v13 = vadd.f32 %v2211_v11, %v2041_v60  ;;  %v2229_v14 = vadd.f32 %v2213_v12, %v2044_v34 }
 0x336   :  { %7049 = vmatpush3.bf16.msra.mxu1 %v7307_v2 }
 0x339   :  { %7051 = vmatmul.mubr.bf16.vlgmr.msra.gmra.mrb[96].mxu1 %v7788_v49 }
 0x33a   :  { %7054 = vmatprep.mubr.bf16.mxu1 %v7798_v61 }
 0x341   :  { %7055 = vmatmul.mubr.bf16.gmra.mrb[100].mxu1 %v7796_v59 }
 0x346   :  { %v6764_v16 = vpop.f32.mrb[48].mxu1  ;;  %v6788_v17 = vpop.f32.mrb[56].mxu0 }
 0x347   :  { %v2331_v22 = vpop.f32.mrb[49].mxu1  ;;  %v2499_v23 = vpop.f32.mrb[57].mxu0  ;;  %v2373_v25 = vrot.slane %v6764_v16, 2  ;;  %v2541_v26 = vrot.slane %v6788_v17, 3 }
 0x348   :  { %v6765_v4 = vpop.f32.mrb[50].mxu1  ;;  %v6789_v24 = vpop.f32.mrb[58].mxu0  ;;  %v2370_v31 = vrot.slane %v2331_v22, 2  ;;  %v2538_v51 = vrot.slane %v2499_v23, 3 }
 0x349   :  { %v2375_v27 = vrot.slane %v6765_v4, 2  ;;  %v2543_v20 = vrot.slane %v6789_v24, 3  ;;  %v2334_v29 = vpop.f32.mrb[51].mxu1  ;;  %v2502_v30 = vpop.f32.mrb[59].mxu0 }
 0x34a   :  { %v2371_v32 = vrot.slane %v2334_v29, 2  ;;  %v2539_v49 = vrot.slane %v2502_v30, 3 }
 0x34b   :  { %v2376_v61 = vsel %vm727_vm13, %v2373_v25, %v2375_v27  ;;  %v2395_v33 = vadd.f32 %v2375_v27, %v2227_v43  ;;  %v2544_v59 = vsel %vm892_vm14, %v2541_v26, %v2543_v20 }
 0x34c   :  { %v2394_v36 = vadd.f32 %v2376_v61, %v2226_v45  ;;  %v2372_v37 = vsel %vm727_vm13, %v2370_v31, %v2371_v32  ;;  %v2374_v18 = vsel %vm727_vm13, %v2371_v32, %v2373_v25  ;;  %v2540_v19 = vsel %vm892_vm14, %v2538_v51, %v2539_v49 }
 0x34d   :  { %v2563_v21 = vadd.f32 %v2543_v20, %v2395_v33  ;;  %v2392_v38 = vadd.f32 %v2372_v37, %v2224_v9  ;;  %v2393_v15 = vadd.f32 %v2374_v18, %v2225_v54  ;;  %v2542_v39 = vsel %vm892_vm14, %v2539_v49, %v2541_v26 }
 0x34e   :  { %v2562_v1 = vadd.f32 %v2544_v59, %v2394_v36  ;;  %v6768_v40 = vpop.f32.mrb[52].mxu1  ;;  %v6792_v41 = vpop.f32.mrb[60].mxu0 }
 0x34f   :  { %v2560_v42 = vadd.f32 %v2540_v19, %v2392_v38  ;;  %v2561_v44 = vadd.f32 %v2542_v39, %v2393_v15  ;;  %v2347_v43 = vpop.f32.mrb[53].mxu1  ;;  %v2515_v46 = vpop.f32.mrb[61].mxu0  ;;  %v2380_v53 = vrot.slane %v6768_v40, 2  ;;  %v2548_v35 = vrot.slane %v6792_v41, 3 }
 0x350   :  { %v6769_v52 = vpop.f32.mrb[54].mxu1  ;;  %v6793_v45 = vpop.f32.mrb[62].mxu0  ;;  %v2377_v60 = vrot.slane %v2347_v43, 2  ;;  %v2545_v9 = vrot.slane %v2515_v46, 3 }
 0x351   :  { %v2382_v55 = vrot.slane %v6769_v52, 2  ;;  %v2550_v56 = vrot.slane %v6793_v45, 3  ;;  %v2350_v57 = vpop.f32.mrb[55].mxu1  ;;  %v2518_v58 = vpop.f32.mrb[63].mxu0 }
 0x352   :  { %v2378_v54 = vrot.slane %v2350_v57, 2  ;;  %v2546_v0 = vrot.slane %v2518_v58, 3 }
 0x353   :  { %v2383_v2 = vsel %vm727_vm13, %v2380_v53, %v2382_v55  ;;  %v2399_v3 = vadd.f32 %v2382_v55, %v2231_v8  ;;  %v2551_v5 = vsel %vm892_vm14, %v2548_v35, %v2550_v56 }
 0x354   :  { %v2398_v6 = vadd.f32 %v2383_v2, %v2230_v10  ;;  %v2379_v62 = vsel %vm727_vm13, %v2377_v60, %v2378_v54  ;;  %v2381_v34 = vsel %vm727_vm13, %v2378_v54, %v2380_v53  ;;  %v2547_v47 = vsel %vm892_vm14, %v2545_v9, %v2546_v0 }
 0x355   :  { %v2567_v48 = vadd.f32 %v2550_v56, %v2399_v3  ;;  %v2396_v63 = vadd.f32 %v2379_v62, %v2228_v13  ;;  %v2397_v7 = vadd.f32 %v2381_v34, %v2229_v14  ;;  %v2549_v11 = vsel %vm892_vm14, %v2546_v0, %v2548_v35 }
 0x356   :  { %v2566_v12 = vadd.f32 %v2551_v5, %v2398_v6 }
 0x357   :  { %v2564_v16 = vadd.f32 %v2547_v47, %v2396_v63  ;;  %v2565_v17 = vadd.f32 %v2549_v11, %v2397_v7 }
 0x367   :  { %v6812_v22 = vpop.f32.mrb[56].mxu1  ;;  %v6836_v23 = vpop.f32.mrb[64].mxu0 }
 0x368   :  { %v2667_v8 = vpop.f32.mrb[57].mxu1  ;;  %v2835_v4 = vpop.f32.mrb[65].mxu0  ;;  %v2709_v25 = vrot.slane %v6812_v22, 4  ;;  %v2877_v26 = vrot.slane %v6836_v23, 5 }
 0x369   :  { %v6813_v24 = vpop.f32.mrb[58].mxu1  ;;  %v6837_v10 = vpop.f32.mrb[66].mxu0  ;;  %v2706_v31 = vrot.slane %v2667_v8, 4  ;;  %v2874_v13 = vrot.slane %v2835_v4, 5  ;;  %v7310_v8 = vld [vmem:[#allocation9 + $0x4] ss:$12 sps:$4 sm:$0xff]  }
 0x36a   :  { %v2711_v27 = vrot.slane %v6813_v24, 4  ;;  %v2879_v20 = vrot.slane %v6837_v10, 5  ;;  %v2670_v29 = vpop.f32.mrb[59].mxu1  ;;  %v2838_v30 = vpop.f32.mrb[67].mxu0  ;;  %5200 = vmatprep.subr.bf16.mxu0 %v7310_v8  ;;  %v7311_v4 = vld [vmem:[#allocation9 + $0x18] ss:$12 sps:$4 sm:$0xff]  }
 0x36b   :  { %v2707_v14 = vrot.slane %v2670_v29, 4  ;;  %v2875_v51 = vrot.slane %v2838_v30, 5 }
 0x36c   :  { %v2712_v32 = vsel %vm1057_vm15, %v2709_v25, %v2711_v27  ;;  %v2731_v49 = vadd.f32 %v2711_v27, %v2563_v21  ;;  %v2880_v61 = vsel %vm1222_vm0, %v2877_v26, %v2879_v20 }
 0x36d   :  { %v2730_v33 = vadd.f32 %v2712_v32, %v2562_v1  ;;  %v2708_v59 = vsel %vm1057_vm15, %v2706_v31, %v2707_v14  ;;  %v2710_v36 = vsel %vm1057_vm15, %v2707_v14, %v2709_v25  ;;  %v2876_v37 = vsel %vm1222_vm0, %v2874_v13, %v2875_v51  ;;  %v7316_v31 = vld [vmem:[#allocation9 + $0x34] ss:$12 sps:$4 sm:$0xff]  }
 0x36e   :  { %v2899_v18 = vadd.f32 %v2879_v20, %v2731_v49  ;;  %v2728_v19 = vadd.f32 %v2708_v59, %v2560_v42  ;;  %v2729_v38 = vadd.f32 %v2710_v36, %v2561_v44  ;;  %v2878_v15 = vsel %vm1222_vm0, %v2875_v51, %v2877_v26  ;;  %v7314_v51 = vld [vmem:[#allocation9 + $0x30] ss:$12 sps:$4 sm:$0xff]  }
 0x36f   :  { %v2898_v39 = vadd.f32 %v2880_v61, %v2730_v33  ;;  %v6816_v40 = vpop.f32.mrb[60].mxu1  ;;  %v6840_v41 = vpop.f32.mrb[68].mxu0 }
 0x370   :  { %v2896_v43 = vadd.f32 %v2876_v37, %v2728_v19  ;;  %v2897_v46 = vadd.f32 %v2878_v15, %v2729_v38  ;;  %v2683_v21 = vpop.f32.mrb[61].mxu1  ;;  %v2851_v52 = vpop.f32.mrb[69].mxu0  ;;  %v2716_v53 = vrot.slane %v6816_v40, 4  ;;  %v2884_v35 = vrot.slane %v6840_v41, 5  ;;  %v7319_v38 = vld [vmem:[#allocation9 + $0x4c] ss:$12 sps:$4 sm:$0xff]  }
 0x371   :  { %v6817_v45 = vpop.f32.mrb[62].mxu1  ;;  %v6841_v1 = vpop.f32.mrb[70].mxu0  ;;  %v2713_v60 = vrot.slane %v2683_v21, 4  ;;  %v2881_v42 = vrot.slane %v2851_v52, 5  ;;  %v7317_v41 = vld [vmem:[#allocation9 + $0x48] ss:$12 sps:$4 sm:$0xff]  }
 0x372   :  { %v2718_v55 = vrot.slane %v6817_v45, 4  ;;  %v2886_v56 = vrot.slane %v6841_v1, 5  ;;  %v2686_v57 = vpop.f32.mrb[63].mxu1  ;;  %v2854_v58 = vpop.f32.mrb[71].mxu0 }
 0x373   :  { %v2714_v44 = vrot.slane %v2686_v57, 4  ;;  %v2882_v9 = vrot.slane %v2854_v58, 5 }
 0x374   :  { %v2719_v54 = vsel %vm1057_vm15, %v2716_v53, %v2718_v55  ;;  %v2735_v0 = vadd.f32 %v2718_v55, %v2567_v48  ;;  %v2887_v2 = vsel %vm1222_vm0, %v2884_v35, %v2886_v56  ;;  %v7308_v48 = vld [vmem:[#allocation9] ss:$12 sps:$4 sm:$0xff]  }
 0x375   :  { %v2734_v3 = vadd.f32 %v2719_v54, %v2566_v12  ;;  %v2715_v5 = vsel %vm1057_vm15, %v2713_v60, %v2714_v44  ;;  %v2717_v6 = vsel %vm1057_vm15, %v2714_v44, %v2716_v53  ;;  %v2883_v62 = vsel %vm1222_vm0, %v2881_v42, %v2882_v9  ;;  %v7313_v12 = vld [vmem:[#allocation9 + $0x1c] ss:$12 sps:$4 sm:$0xff]   ;;  %5201 = vmatpush1.bf16.msra.mxu0 %v7308_v48  ;;  %v7320_v60 = vld [vmem:[#allocation9 + $0x60] ss:$12 sps:$4 sm:$0xff]  }
 0x376   :  { %v8130_v34 = vadd.f32 %v2886_v56, %v2735_v0  ;;  %v2732_v47 = vadd.f32 %v2715_v5, %v2564_v16  ;;  %v2733_v63 = vadd.f32 %v2717_v6, %v2565_v17  ;;  %v2885_v7 = vsel %vm1222_vm0, %v2882_v9, %v2884_v35  ;;  %5202 = vmatprep.subr.bf16.mxu0 %v7313_v12  ;;  %v7322_v56 = vld [vmem:[#allocation9 + $0x64] ss:$12 sps:$4 sm:$0xff]  }
 0x377   :  { %v2902_v11 = vadd.f32 %v2887_v2, %v2734_v3 }
 0x378   :  { %v8133_v22 = vadd.f32 %v2883_v62, %v2732_v47  ;;  %v8135_v23 = vadd.f32 %v2885_v7, %v2733_v63  ;;  %v7325_v47 = vld [vmem:[#allocation9 + $0x7c] ss:$12 sps:$4 sm:$0xff]   ;;  %v7323_v63 = vld [vmem:[#allocation9 + $0x78] ss:$12 sps:$4 sm:$0xff]  }
 0x379   :  { %5203 = vmatpush1.bf16.msra.mxu0 %v7311_v4  ;;  %v7326_v4 = vld [vmem:[#allocation9 + $0x90] ss:$12 sps:$4 sm:$0xff]  }
 0x37a   :  { %5204 = vmatprep.subr.bf16.mxu0 %v7316_v31  ;;  %v7335_v31 = vld [vmem:[#allocation9 + $0xc8] ss:$12 sps:$4 sm:$0xff]  }
 0x37b   :  { %6359 = vmatprep.subr.bf16.mxu1 %v7335_v31 }
 0x37d   :  { %5205 = vmatpush1.bf16.msra.mxu0 %v7314_v51  ;;  %v7336_v51 = vld [vmem:[#allocation9 + $0x8] ss:$12 sps:$4 sm:$0xff]  }
 0x37e   :  { %5206 = vmatprep.subr.bf16.mxu0 %v7319_v38  ;;  %6360 = vmatpush3.bf16.msra.mxu1 %v7336_v51 }
 0x381   :  { %5207 = vmatpush1.bf16.msra.mxu0 %v7317_v41 }
 0x382   :  { %5208 = vmatprep.subr.bf16.mxu0 %v7322_v56 }
 0x385   :  { %5209 = vmatpush1.bf16.msra.mxu0 %v7320_v60 }
 0x386   :  { %5210 = vmatprep.subr.bf16.mxu0 %v7325_v47 }
 0x388   :  { %v6860_v24 = vpop.f32.mrb[64].mxu1  ;;  %v8137_v10 = vpop.f32.mrb[72].mxu0 }
 0x389   :  { %v3003_v16 = vpop.f32.mrb[65].mxu1  ;;  %v8139_v17 = vpop.f32.mrb[73].mxu0  ;;  %v3045_v27 = vrot.slane %v6860_v24, 6  ;;  %5211 = vmatpush1.bf16.msra.mxu0 %v7323_v63  ;;  %v7346_v63 = vld [vmem:[#allocation9 + $0x38] ss:$12 sps:$4 sm:$0xff]  }
 0x38a   :  { %v6861_v25 = vpop.f32.mrb[66].mxu1  ;;  %v8141_v26 = vpop.f32.mrb[74].mxu0  ;;  %v3042_v13 = vrot.slane %v3003_v16, 6 }
 0x38b   :  { %v3047_v20 = vrot.slane %v6861_v25, 6  ;;  %v3006_v29 = vpop.f32.mrb[67].mxu1  ;;  %v8143_v30 = vpop.f32.mrb[75].mxu0  ;;  %v7331_v25 = vld [vmem:[#allocation9 + $0xac] ss:$12 sps:$4 sm:$0xff]  }
 0x38c   :  { %v3043_v14 = vrot.slane %v3006_v29, 6  ;;  %v7334_v29 = vld [vmem:[#allocation9 + $0xc4] ss:$12 sps:$4 sm:$0xff]  }
 0x38d   :  { %v3048_v32 = vsel %vm1387_vm1, %v3045_v27, %v3047_v20  ;;  %v3067_v49 = vadd.f32 %v3047_v20, %v2899_v18 }
 0x38e   :  { %v3066_v61 = vadd.f32 %v3048_v32, %v2898_v39  ;;  %v3044_v33 = vsel %vm1387_vm1, %v3042_v13, %v3043_v14  ;;  %v3046_v59 = vsel %vm1387_vm1, %v3043_v14, %v3045_v27  ;;  %v7332_v14 = vld [vmem:[#allocation9 + $0xc0] ss:$12 sps:$4 sm:$0xff]   ;;  %v5827_v32 = vld [vmem:[%s8369_s5] ss:$0 sm:$0xff] }
 0x38f   :  { %v3073_v36 = vsel %vm1387_vm1, %v3067_v49, -inf  ;;  %v3064_v37 = vadd.f32 %v3044_v33, %v2896_v43  ;;  %v3065_v19 = vadd.f32 %v3046_v59, %v2897_v46  ;;  %v7339_v33 = vld [vmem:[#allocation9 + $0xdc] ss:$12 sps:$4 sm:$0xff]   ;;  %v7340_v59 = vld [vmem:[#allocation9 + $0xe0] ss:$12 sps:$4 sm:$0xff]  }
 0x390   :  { %v6864_v15 = vpop.f32.mrb[68].mxu1  ;;  %v8149_v40 = vpop.f32.mrb[76].mxu0  ;;  %6361 = vmatprep.subr.bf16.mxu1 %v7340_v59 }
 0x391   :  { %v3072_v21 = vmax.f32 %v3064_v37, %v3066_v61  ;;  %v3074_v52 = vmax.f32 %v3065_v19, %v3073_v36  ;;  %v3019_v45 = vpop.f32.mrb[69].mxu1  ;;  %v8151_v18 = vpop.f32.mrb[77].mxu0  ;;  %v3052_v35 = vrot.slane %v6864_v15, 6  ;;  %v7337_v37 = vld [vmem:[#allocation9 + $0xd8] ss:$12 sps:$4 sm:$0xff]  }
 0x392   :  { %v6865_v39 = vpop.f32.mrb[70].mxu1  ;;  %v8153_v1 = vpop.f32.mrb[78].mxu0  ;;  %v3049_v57 = vrot.slane %v3019_v45, 6  ;;  %v7341_v19 = vld [vmem:[#allocation9 + $0x20] ss:$12 sps:$4 sm:$0xff]  }
 0x393   :  { %v3075_v53 = vmax.f32 %v3072_v21, %v3074_v52  ;;  %v3054_v55 = vrot.slane %v6865_v39, 6  ;;  %v3022_v43 = vpop.f32.mrb[71].mxu1  ;;  %v8155_v46 = vpop.f32.mrb[79].mxu0  ;;  %6362 = vmatpush3.bf16.msra.mxu1 %v7341_v19 }
 0x394   :  { %v3050_v58 = vrot.slane %v3022_v43, 6  ;;  %v7344_v43 = vld [vmem:[#allocation9 + $0xf4] ss:$12 sps:$4 sm:$0xff]  }
 0x395   :  { %v3076_v42 = vrot.slane %v3075_v53, 4  ;;  %v3055_v44 = vsel %vm1387_vm1, %v3052_v35, %v3054_v55  ;;  %v3071_v9 = vadd.f32 %v3054_v55, %v8130_v34 }
 0x396   :  { %v3070_v54 = vadd.f32 %v3055_v44, %v2902_v11  ;;  %v3051_v0 = vsel %vm1387_vm1, %v3049_v57, %v3050_v58  ;;  %v3053_v2 = vsel %vm1387_vm1, %v3050_v58, %v3052_v35  ;;  %v7328_v11 = vld [vmem:[#allocation9 + $0x94] ss:$12 sps:$4 sm:$0xff]   ;;  %v7342_v44 = vld [vmem:[#allocation9 + $0xf0] ss:$12 sps:$4 sm:$0xff]  }
 0x397   :  { %v3077_v3 = vmax.f32 %v3075_v53, %v3076_v42  ;;  %v3083_v5 = vsel %vm1387_vm1, %v3071_v9, -inf  ;;  %v3068_v6 = vadd.f32 %v3051_v0, %v8133_v22  ;;  %v3069_v62 = vadd.f32 %v3053_v2, %v8135_v23  ;;  %5212 = vmatprep.subr.bf16.mxu0 %v7328_v11  ;;  %v7329_v22 = vld [vmem:[#allocation9 + $0xa8] ss:$12 sps:$4 sm:$0xff]   ;;  %v7349_v11 = vld [vmem:[#allocation9 + $0x10c] ss:$12 sps:$4 sm:$0xff]  }
 0x398   :  { %5213 = vmatpush1.bf16.msra.mxu0 %v7326_v4 }
 0x399   :  { %v3078_v7 = vrot.slane %v3077_v3, 2  ;;  %v3082_v48 = vmax.f32 %v3068_v6, %v3070_v54  ;;  %v3084_v8 = vmax.f32 %v3069_v62, %v3083_v5  ;;  %5214 = vmatprep.subr.bf16.mxu0 %v7331_v25  ;;  %v7347_v25 = vld [vmem:[#allocation9 + $0x108] ss:$12 sps:$4 sm:$0xff]  }
 0x39b   :  { %v3085_v34 = vmax.f32 %v3082_v48, %v3084_v8  ;;  %v3079_v12 = vmax.f32 %v3077_v3, %v3078_v7  ;;  %v7345_v3 = vld [vmem:[#allocation9 + $0xf8] ss:$12 sps:$4 sm:$0xff]  }
 0x39c   :  { %5215 = vmatpush1.bf16.msra.mxu0 %v7329_v22  ;;  %6363 = vmatprep.subr.bf16.mxu1 %v7345_v3  ;;  %v7361_v3 = vld [vmem:[#allocation9 + $0x80] ss:$12 sps:$4 sm:$0xff]  }
 0x39d   :  { %v3086_v24 = vrot.slane %v3085_v34, 4  ;;  %v3080_v27 = vrot.slane %v3079_v12, 1  ;;  %5216 = vmatprep.subr.bf16.mxu0 %v7334_v29  ;;  %6364 = vmatpush3.bf16.msra.mxu1 %v7346_v63  ;;  %v7369_v63 = vld [vmem:[#allocation9 + $0x16c] ss:$12 sps:$4 sm:$0xff]  }
 0x39f   :  { %v3087_v16 = vmax.f32 %v3085_v34, %v3086_v24  ;;  %v3081_v13 = vmax.f32 %v3079_v12, %v3080_v27  ;;  %v7350_v12 = vld [vmem:[#allocation9 + $0x110] ss:$12 sps:$4 sm:$0xff]  }
 0x3a0   :  { %5217 = vmatpush1.bf16.msra.mxu0 %v7332_v14  ;;  %v7351_v27 = vld [vmem:[#allocation9 + $0x50] ss:$12 sps:$4 sm:$0xff]   ;;  %6365 = vmatprep.subr.bf16.mxu1 %v7350_v12 }
 0x3a1   :  { %v3088_v20 = vrot.slane %v3087_v16, 2  ;;  %v3099_v36 = vadd.f32 %v5827_v32, %v3081_v13  ;;  %5218 = vmatprep.subr.bf16.mxu0 %v7339_v33  ;;  %6366 = vmatpush3.bf16.msra.mxu1 %v7351_v27 }
 0x3a3   :  { %v3089_v23 = vmax.f32 %v3087_v16, %v3088_v20  ;;  %v3109_v56 = vrot.slane %v3099_v36, %v8081_v28 }
 0x3a4   :  { %5219 = vmatpush1.bf16.msra.mxu0 %v7337_v37 }
 0x3a5   :  { %v3090_v49 = vrot.slane %v3089_v23, 1  ;;  %5220 = vmatprep.subr.bf16.mxu0 %v7344_v43  ;;  %v7356_v43 = vld [vmem:[#allocation9 + $0x68] ss:$12 sps:$4 sm:$0xff]  }
 0x3a7   :  { %v3091_v61 = vmax.f32 %v3089_v23, %v3090_v49 }
 0x3a8   :  { %5221 = vmatpush1.bf16.msra.mxu0 %v7342_v44  ;;  %v7360_v44 = vld [vmem:[#allocation9 + $0x140] ss:$12 sps:$4 sm:$0xff]  }
 0x3a9   :  { %v3100_v38 = vadd.f32 %v5827_v32, %v3091_v61  ;;  %v6908_v15 = vpop.f32.mrb[72].mxu1  ;;  %v6932_v41 = vpop.f32.mrb[80].mxu0  ;;  %5222 = vmatprep.subr.bf16.mxu0 %v7349_v11  ;;  %v7375_v11 = vld [vmem:[#allocation9 + $0x248] ss:$12 sps:$4 sm:$0xff]  }
 0x3aa   :  { %v3362_v21 = vpop.f32.mrb[73].mxu1  ;;  %v3530_v52 = vpop.f32.mrb[81].mxu0  ;;  %v3404_v39 = vrot.slane %v6908_v15, 1  ;;  %v3572_v53 = vrot.slane %v6932_v41, 2  ;;  %v7352_v41 = vld [vmem:[#allocation9 + $0x120] ss:$12 sps:$4 sm:$0xff]  }
 0x3ab   :  { %v3116_v45 = vrot.slane %v3100_v38, %v8081_v28  ;;  %v6909_v35 = vpop.f32.mrb[74].mxu1  ;;  %v6933_v55 = vpop.f32.mrb[82].mxu0  ;;  %v3401_v54 = vrot.slane %v3362_v21, 1  ;;  %v3569_v5 = vrot.slane %v3530_v52, 2 }
 0x3ac   :  { %v3406_v57 = vrot.slane %v6909_v35, 1  ;;  %v3574_v58 = vrot.slane %v6933_v55, 2  ;;  %v3365_v60 = vpop.f32.mrb[75].mxu1  ;;  %v3533_v42 = vpop.f32.mrb[83].mxu0  ;;  %5223 = vmatpush1.bf16.msra.mxu0 %v7347_v25 }
 0x3ad   :  { %v3119_v9 = vrot.slane %v3116_v45, 7  ;;  %v3402_v0 = vrot.slane %v3365_v60, 1  ;;  %v3570_v2 = vrot.slane %v3533_v42, 2  ;;  %v7354_v45 = vld [vmem:[#allocation9 + $0x124] ss:$12 sps:$4 sm:$0xff]  }
 0x3ae   :  { %v3407_v6 = vsel %vm566_vm12, %v3404_v39, %v3406_v57  ;;  %v3426_v62 = vadd.f32 %v8141_v26, %v3406_v57  ;;  %v3575_v47 = vsel %vm727_vm13, %v3572_v53, %v3574_v58  ;;  %5224 = vmatprep.subr.bf16.mxu0 %v7354_v45  ;;  %v7359_v42 = vld [vmem:[#allocation9 + $0x13c] ss:$12 sps:$4 sm:$0xff]  }
 0x3af   :  { %v3120_v7 = vsel %vm1917_vm3, %v3119_v9, %v3109_v56  ;;  %v3425_v48 = vadd.f32 %v8137_v10, %v3407_v6  ;;  %v3403_v8 = vsel %vm566_vm12, %v3401_v54, %v3402_v0  ;;  %v3405_v34 = vsel %vm566_vm12, %v3402_v0, %v3404_v39  ;;  %v7355_v39 = vld [vmem:[#allocation9 + $0x128] ss:$12 sps:$4 sm:$0xff]  }
 0x3b0   :  { %v3121_v4 = vsel %vm1919_vm4, %v3119_v9, %v3120_v7  ;;  %v8177_v24 = vadd.f32 %v3574_v58, %v3426_v62  ;;  %v3423_v26 = vadd.f32 %v3403_v8, %v8139_v17  ;;  %v3424_v16 = vadd.f32 %v3405_v34, %v8143_v30  ;;  %6367 = vmatprep.subr.bf16.mxu1 %v7355_v39  ;;  %v7364_v62 = vld [vmem:[#allocation9 + $0x154] ss:$12 sps:$4 sm:$0xff]   ;;  %v7370_v7 = vld [vmem:[#allocation9 + $0x170] ss:$12 sps:$4 sm:$0xff]  }
 0x3b1   :  { %v3122_v10 = vsel %vm1921_vm5, %v3119_v9, %v3121_v4  ;;  %v8182_v22 = vadd.f32 %v3575_v47, %v3425_v48  ;;  %v3571_v20 = vsel %vm727_vm13, %v3569_v5, %v3570_v2  ;;  %v3573_v23 = vsel %vm727_vm13, %v3570_v2, %v3572_v53  ;;  %v6912_v29 = vpop.f32.mrb[76].mxu1  ;;  %v6936_v31 = vpop.f32.mrb[84].mxu0  ;;  %5225 = vmatpush1.bf16.msra.mxu0 %v7352_v41  ;;  %v7365_v47 = vld [vmem:[#allocation9 + $0x158] ss:$12 sps:$4 sm:$0xff]   ;;  %v7367_v48 = vld [vmem:[#allocation9 + $0x168] ss:$12 sps:$4 sm:$0xff]  }
 0x3b2   :  { %v3123_v13 = vsel %vm1923_vm6, %v3119_v9, %v3122_v10  ;;  %v8187_v14 = vadd.f32 %v3571_v20, %v3423_v26  ;;  %v8189_v17 = vadd.f32 %v3573_v23, %v3424_v16  ;;  %v3378_v30 = vpop.f32.mrb[77].mxu1  ;;  %v3546_v51 = vpop.f32.mrb[85].mxu0  ;;  %v3411_v32 = vrot.slane %v6912_v29, 1  ;;  %6368 = vmatpush3.bf16.msra.mxu1 %v7356_v43  ;;  %5226 = vmatprep.subr.bf16.mxu0 %v7359_v42  ;;  %v7371_v8 = vld [vmem:[#allocation9 + $0xb0] ss:$12 sps:$4 sm:$0xff]  }
 0x3b3   :  { %3125 = vst [vmem:[#allocation2 + $0x2] sm:$0x3] %v3123_v13  ;;  %v3579_v49 = vrot.slane %v6936_v31, 2  ;;  %v3408_v61 = vrot.slane %v3378_v30, 1  ;;  %v3576_v33 = vrot.slane %v3546_v51, 2  ;;  %v6913_v59 = vpop.f32.mrb[78].mxu1  ;;  %6369 = vmatprep.subr.bf16.mxu1 %v7360_v44 }
 0x3b4   :  { %v6937_v36 = vpop.f32.mrb[86].mxu0  ;;  %v3413_v37 = vrot.slane %v6913_v59, 1  ;;  %v3381_v38 = vpop.f32.mrb[79].mxu1  ;;  %v7374_v34 = vld [vmem:[#allocation9 + $0x184] ss:$12 sps:$4 sm:$0xff]  }
 0x3b5   :  { %v3581_v19 = vrot.slane %v6937_v36, 2  ;;  %v3549_v15 = vpop.f32.mrb[87].mxu0  ;;  %v3409_v21 = vrot.slane %v3381_v38, 1 }
 0x3b6   :  { %v3577_v52 = vrot.slane %v3549_v15, 2  ;;  %v3414_v53 = vsel %vm566_vm12, %v3411_v32, %v3413_v37  ;;  %v3430_v35 = vadd.f32 %v8153_v1, %v3413_v37  ;;  %6370 = vmatpush3.bf16.msra.mxu1 %v7361_v3 }
 0x3b7   :  { %v3582_v55 = vsel %vm727_vm13, %v3579_v49, %v3581_v19  ;;  %v3429_v56 = vadd.f32 %v8149_v40, %v3414_v53  ;;  %v3410_v57 = vsel %vm566_vm12, %v3408_v61, %v3409_v21  ;;  %v3412_v58 = vsel %vm566_vm12, %v3409_v21, %v3411_v32  ;;  %v7357_v40 = vld [vmem:[#allocation9 + $0x138] ss:$12 sps:$4 sm:$0xff]   ;;  %6371 = vmatprep.subr.bf16.mxu1 %v7365_v47 }
 0x3b8   :  { %v3578_v60 = vsel %vm727_vm13, %v3576_v33, %v3577_v52  ;;  %v8198_v9 = vadd.f32 %v3581_v19, %v3430_v35  ;;  %v3427_v54 = vadd.f32 %v3410_v57, %v8151_v18  ;;  %v3428_v1 = vadd.f32 %v3412_v58, %v8155_v46  ;;  %5227 = vmatpush1.bf16.msra.mxu0 %v7357_v40  ;;  %v7362_v18 = vld [vmem:[#allocation9 + $0x150] ss:$12 sps:$4 sm:$0xff]   ;;  %v7366_v46 = vld [vmem:[#allocation9 + $0x98] ss:$12 sps:$4 sm:$0xff]  }
 0x3b9   :  { %v3580_v0 = vsel %vm727_vm13, %v3577_v52, %v3579_v49  ;;  %v8203_v2 = vadd.f32 %v3582_v55, %v3429_v56  ;;  %5228 = vmatprep.subr.bf16.mxu0 %v7364_v62 }
 0x3ba   :  { %v8205_v5 = vadd.f32 %v3578_v60, %v3427_v54  ;;  %v8207_v6 = vadd.f32 %v3580_v0, %v3428_v1  ;;  %6372 = vmatpush3.bf16.msra.mxu1 %v7366_v46 }
 0x3bb   :  { %6373 = vmatprep.subr.bf16.mxu1 %v7370_v7 }
 0x3bc   :  { %5229 = vmatpush1.bf16.msra.mxu0 %v7362_v18 }
 0x3bd   :  { %5230 = vmatprep.subr.bf16.mxu0 %v7369_v63 }
 0x3be   :  { %6374 = vmatpush3.bf16.msra.mxu1 %v7371_v8 }
 0x3bf   :  { %6381 = vmatprep.subr.bf16.mxu1 %v7375_v11 }
 0x3c0   :  { %5231 = vmatpush1.bf16.msra.mxu0 %v7367_v48 }
 0x3c1   :  { %5241 = vmatprep.subr.bf16.mxu0 %v7374_v34 }
 0x3ca   :  { %v6956_v12 = vpop.f32.mrb[80].mxu1  ;;  %v6980_v4 = vpop.f32.mrb[88].mxu0 }
 0x3cb   :  { %v3698_v26 = vpop.f32.mrb[81].mxu1  ;;  %v3866_v16 = vpop.f32.mrb[89].mxu0  ;;  %v3740_v10 = vrot.slane %v6956_v12, 3  ;;  %v3908_v20 = vrot.slane %v6980_v4, 4 }
 0x3cc   :  { %v6957_v25 = vpop.f32.mrb[82].mxu1  ;;  %v6981_v27 = vpop.f32.mrb[90].mxu0  ;;  %v3737_v30 = vrot.slane %v3698_v26, 3  ;;  %v3905_v51 = vrot.slane %v3866_v16, 4 }
 0x3cd   :  { %v3742_v23 = vrot.slane %v6957_v25, 3  ;;  %v3910_v29 = vrot.slane %v6981_v27, 4  ;;  %v3701_v31 = vpop.f32.mrb[83].mxu1  ;;  %v3869_v13 = vpop.f32.mrb[91].mxu0 }
 0x3ce   :  { %v3738_v32 = vrot.slane %v3701_v31, 3  ;;  %v3906_v49 = vrot.slane %v3869_v13, 4 }
 0x3cf   :  { %v3743_v61 = vsel %vm892_vm14, %v3740_v10, %v3742_v23  ;;  %v3762_v33 = vadd.f32 %v3742_v23, %v8177_v24  ;;  %v3911_v59 = vsel %vm1057_vm15, %v3908_v20, %v3910_v29 }
 0x3d0   :  { %v3761_v36 = vadd.f32 %v3743_v61, %v8182_v22  ;;  %v3739_v37 = vsel %vm892_vm14, %v3737_v30, %v3738_v32  ;;  %v3741_v19 = vsel %vm892_vm14, %v3738_v32, %v3740_v10  ;;  %v3907_v38 = vsel %vm1057_vm15, %v3905_v51, %v3906_v49 }
 0x3d1   :  { %v3930_v15 = vadd.f32 %v3910_v29, %v3762_v33  ;;  %v3759_v41 = vadd.f32 %v3739_v37, %v8187_v14  ;;  %v3760_v21 = vadd.f32 %v3741_v19, %v8189_v17  ;;  %v3909_v52 = vsel %vm1057_vm15, %v3906_v49, %v3908_v20 }
 0x3d2   :  { %v3929_v45 = vadd.f32 %v3911_v59, %v3761_v36  ;;  %v6960_v39 = vpop.f32.mrb[84].mxu1  ;;  %v6984_v24 = vpop.f32.mrb[92].mxu0 }
 0x3d3   :  { %v3936_v53 = vsel %vm1057_vm15, %v3930_v15, -inf  ;;  %v3927_v35 = vadd.f32 %v3907_v38, %v3759_v41  ;;  %v3928_v22 = vadd.f32 %v3909_v52, %v3760_v21  ;;  %v3714_v55 = vpop.f32.mrb[85].mxu1  ;;  %v3882_v43 = vpop.f32.mrb[93].mxu0  ;;  %v3747_v56 = vrot.slane %v6960_v39, 3 }
 0x3d4   :  { %v3915_v57 = vrot.slane %v6984_v24, 4  ;;  %v6961_v58 = vpop.f32.mrb[86].mxu1  ;;  %v6985_v60 = vpop.f32.mrb[94].mxu0  ;;  %v3744_v0 = vrot.slane %v3714_v55, 3  ;;  %v3912_v40 = vrot.slane %v3882_v43, 4 }
 0x3d5   :  { %v3935_v42 = vmax.f32 %v3927_v35, %v3929_v45  ;;  %v3937_v44 = vmax.f32 %v3928_v22, %v3936_v53  ;;  %v3749_v14 = vrot.slane %v6961_v58, 3  ;;  %v3917_v54 = vrot.slane %v6985_v60, 4  ;;  %v3717_v17 = vpop.f32.mrb[87].mxu1  ;;  %v3885_v1 = vpop.f32.mrb[95].mxu0 }
 0x3d6   :  { %v3745_v3 = vrot.slane %v3717_v17, 3  ;;  %v3913_v62 = vrot.slane %v3885_v1, 4 }
 0x3d7   :  { %v3938_v47 = vmax.f32 %v3935_v42, %v3937_v44  ;;  %v3750_v18 = vsel %vm892_vm14, %v3747_v56, %v3749_v14  ;;  %v3766_v46 = vadd.f32 %v3749_v14, %v8198_v9  ;;  %v3918_v63 = vsel %vm1057_vm15, %v3915_v57, %v3917_v54 }
 0x3d8   :  { %v3765_v7 = vadd.f32 %v3750_v18, %v8203_v2  ;;  %v3746_v48 = vsel %vm892_vm14, %v3744_v0, %v3745_v3  ;;  %v3748_v8 = vsel %vm892_vm14, %v3745_v3, %v3747_v56  ;;  %v3914_v34 = vsel %vm1057_vm15, %v3912_v40, %v3913_v62 }
 0x3d9   :  { %v3939_v11 = vrot.slane %v3938_v47, 4  ;;  %v3934_v12 = vadd.f32 %v3917_v54, %v3766_v46  ;;  %v3763_v4 = vadd.f32 %v3746_v48, %v8205_v5  ;;  %v3764_v26 = vadd.f32 %v3748_v8, %v8207_v6  ;;  %v5868_v6 = vld [vmem:[%s8371_s7] ss:$0 sm:$0xff]  ;;  %s5655_s7 = sshll.u32 %s7592_s6, 4  ;;  %s5656_s7 = int_to_ptr.vmem [resolvable:$true] %s5655_s7 }
 0x3da   :  { %v3933_v16 = vadd.f32 %v3918_v63, %v3765_v7  ;;  %v3916_v25 = vsel %vm1057_vm15, %v3913_v62, %v3915_v57  ;;  %p7554_p5 = scmp.lt.s32.totalorder %s5656_s7, %s5656_s7 }
 0x3db   :  { %v3940_v9 = vmax.f32 %v3938_v47, %v3939_v11  ;;  %v3946_v27 = vsel %vm1057_vm15, %v3934_v12, -inf  ;;  %v3931_v10 = vadd.f32 %v3914_v34, %v3763_v4  ;;  %v3932_v2 = vadd.f32 %v3916_v25, %v3764_v26 }
 0x3dd   :  { %v3941_v20 = vrot.slane %v3940_v9, 2  ;;  %v3945_v23 = vmax.f32 %v3931_v10, %v3933_v16  ;;  %v3947_v29 = vmax.f32 %v3932_v2, %v3946_v27 }
 0x3df   :  { %v3948_v31 = vmax.f32 %v3945_v23, %v3947_v29  ;;  %v3942_v13 = vmax.f32 %v3940_v9, %v3941_v20 }
 0x3e1   :  { %v3949_v30 = vrot.slane %v3948_v31, 4  ;;  %v3943_v32 = vrot.slane %v3942_v13, 1 }
 0x3e3   :  { %v3950_v51 = vmax.f32 %v3948_v31, %v3949_v30  ;;  %v3944_v61 = vmax.f32 %v3942_v13, %v3943_v32 }
 0x3e5   :  { %v3951_v49 = vrot.slane %v3950_v51, 2  ;;  %v3962_v19 = vadd.f32 %v5868_v6, %v3944_v61 }
 0x3e7   :  { %v3952_v5 = vmax.f32 %v3950_v51, %v3951_v49  ;;  %v3972_v43 = vrot.slane %v3962_v19, %v8081_v28 }
 0x3e9   :  { %v3953_v33 = vrot.slane %v3952_v5, 1 }
 0x3eb   :  { %v3954_v59 = vmax.f32 %v3952_v5, %v3953_v33  ;;  %v7004_v36 = vpop.f32.mrb[88].mxu1  ;;  %v7028_v37 = vpop.f32.mrb[96].mxu0 }
 0x3ec   :  { %v4087_v38 = vpop.f32.mrb[89].mxu1  ;;  %v4225_v15 = vpop.f32.mrb[97].mxu0  ;;  %v4267_v45 = vrot.slane %v7028_v37, 1 }
 0x3ed   :  { %v3963_v41 = vadd.f32 %v5868_v6, %v3954_v59  ;;  %v7005_v21 = vpop.f32.mrb[90].mxu1  ;;  %v7029_v52 = vpop.f32.mrb[98].mxu0  ;;  %v4264_v22 = vrot.slane %v4225_v15, 1 }
 0x3ee   :  { %v4269_v39 = vrot.slane %v7029_v52, 1  ;;  %v4090_v24 = vpop.f32.mrb[91].mxu1  ;;  %v4228_v53 = vpop.f32.mrb[99].mxu0 }
 0x3ef   :  { %v3979_v35 = vrot.slane %v3963_v41, %v8081_v28  ;;  %v4265_v55 = vrot.slane %v4228_v53, 1 }
 0x3f0   :  { %v4270_v56 = vsel %vm566_vm12, %v4267_v45, %v4269_v39  ;;  %v4289_v57 = vadd.f32 %v7005_v21, %v4269_v39 }
 0x3f1   :  { %v3982_v58 = vrot.slane %v3979_v35, 7  ;;  %v4288_v60 = vadd.f32 %v7004_v36, %v4270_v56  ;;  %v4266_v42 = vsel %vm566_vm12, %v4264_v22, %v4265_v55  ;;  %v4268_v44 = vsel %vm566_vm12, %v4265_v55, %v4267_v45 }
 0x3f2   :  { %v4286_v14 = vadd.f32 %v4266_v42, %v4087_v38  ;;  %v4287_v54 = vadd.f32 %v4268_v44, %v4090_v24 }
 0x3f3   :  { %v3983_v17 = vsel %vm1917_vm3, %v3982_v58, %v3972_v43  ;;  %v7008_v1 = vpop.f32.mrb[92].mxu1  ;;  %v7032_v0 = vpop.f32.mrb[100].mxu0 }
 0x3f4   :  { %v3984_v40 = vsel %vm1919_vm4, %v3982_v58, %v3983_v17  ;;  %v4103_v3 = vpop.f32.mrb[93].mxu1  ;;  %v4241_v62 = vpop.f32.mrb[101].mxu0  ;;  %v4274_v7 = vrot.slane %v7032_v0, 1 }
 0x3f5   :  { %v3985_v47 = vsel %vm1921_vm5, %v3982_v58, %v3984_v40  ;;  %v7009_v18 = vpop.f32.mrb[94].mxu1  ;;  %v7033_v46 = vpop.f32.mrb[102].mxu0  ;;  %v4271_v11 = vrot.slane %v4241_v62, 1 }
 0x3f6   :  { %v3986_v63 = vsel %vm1923_vm6, %v3982_v58, %v3985_v47  ;;  %v4276_v48 = vrot.slane %v7033_v46, 1  ;;  %v4106_v8 = vpop.f32.mrb[95].mxu1  ;;  %v4244_v34 = vpop.f32.mrb[103].mxu0 }
 0x3f7   :  { %3988 = vst [vmem:[#allocation2 + $0x4] sm:$0x3] %v3986_v63  ;;  %v4272_v12 = vrot.slane %v4244_v34, 1 }
 0x3f8   :  { %v4277_v4 = vsel %vm566_vm12, %v4274_v7, %v4276_v48  ;;  %v4293_v26 = vadd.f32 %v7009_v18, %v4276_v48 }
 0x3f9   :  { %v4292_v16 = vadd.f32 %v7008_v1, %v4277_v4  ;;  %v4273_v25 = vsel %vm566_vm12, %v4271_v11, %v4272_v12  ;;  %v4275_v9 = vsel %vm566_vm12, %v4272_v12, %v4274_v7  ;;  %v5925_v7 = vld [vmem:[%s8373_s9] ss:$0 sm:$0xff] }
 0x3fa   :  { %v4290_v27 = vadd.f32 %v4273_v25, %v4103_v3  ;;  %v4291_v10 = vadd.f32 %v4275_v9, %v4106_v8 }
 0x40c   :  { %v7052_v2 = vpop.f32.mrb[96].mxu1 }
 0x40d   :  { %v4393_v20 = vpop.f32.mrb[97].mxu1  ;;  %v4435_v29 = vrot.slane %v7052_v2, 2 }
 0x40e   :  { %v7053_v23 = vpop.f32.mrb[98].mxu1  ;;  %v4432_v30 = vrot.slane %v4393_v20, 2 }
 0x40f   :  { %v4437_v31 = vrot.slane %v7053_v23, 2  ;;  %v4396_v13 = vpop.f32.mrb[99].mxu1 }
 0x410   :  { %v4433_v51 = vrot.slane %v4396_v13, 2  ;;  %v7376_v13 = vld [vmem:[#allocation9 + $0x188] ss:$12 sps:$4 sm:$0xff]  }
 0x411   :  { %v4438_v32 = vsel %vm727_vm13, %v4435_v29, %v4437_v31  ;;  %v4457_v49 = vadd.f32 %v4437_v31, %v4289_v57  ;;  %v7372_v31 = vld [vmem:[#allocation9 + $0x180] ss:$12 sps:$4 sm:$0xff]  }
 0x412   :  { %v4456_v5 = vadd.f32 %v4438_v32, %v4288_v60  ;;  %v4434_v61 = vsel %vm727_vm13, %v4432_v30, %v4433_v51  ;;  %v4436_v6 = vsel %vm727_vm13, %v4433_v51, %v4435_v29 }
 0x413   :  { %v4463_v33 = vsel %vm727_vm13, %v4457_v49, -inf  ;;  %v4454_v59 = vadd.f32 %v4434_v61, %v4286_v14  ;;  %v4455_v36 = vadd.f32 %v4436_v6, %v4287_v54  ;;  %v7380_v49 = vld [vmem:[#allocation9 + $0x19c] ss:$12 sps:$4 sm:$0xff]   ;;  %v7378_v61 = vld [vmem:[#allocation9 + $0x198] ss:$12 sps:$4 sm:$0xff]  }
 0x414   :  { %v7056_v37 = vpop.f32.mrb[100].mxu1  ;;  %v7382_v6 = vld [vmem:[#allocation9 + $0x1a0] ss:$12 sps:$4 sm:$0xff]  }
 0x415   :  { %v4462_v19 = vmax.f32 %v4454_v59, %v4456_v5  ;;  %v4464_v38 = vmax.f32 %v4455_v36, %v4463_v33  ;;  %v4409_v15 = vpop.f32.mrb[101].mxu1  ;;  %v4442_v52 = vrot.slane %v7056_v37, 2  ;;  %v7381_v5 = vld [vmem:[#allocation9 + $0x260] ss:$12 sps:$4 sm:$0xff]   ;;  %v7386_v33 = vld [vmem:[#allocation9 + $0x278] ss:$12 sps:$4 sm:$0xff]  }
 0x416   :  { %v7057_v41 = vpop.f32.mrb[102].mxu1  ;;  %v4439_v24 = vrot.slane %v4409_v15, 2  ;;  %v7383_v59 = vld [vmem:[#allocation9 + $0x1b0] ss:$12 sps:$4 sm:$0xff]   ;;  %v7387_v36 = vld [vmem:[#allocation9 + $0x1b8] ss:$12 sps:$4 sm:$0xff]  }
 0x417   :  { %v4465_v21 = vmax.f32 %v4462_v19, %v4464_v38  ;;  %v4444_v45 = vrot.slane %v7057_v41, 2  ;;  %v4412_v39 = vpop.f32.mrb[103].mxu1  ;;  %v7390_v37 = vld [vmem:[#allocation9 + $0x1cc] ss:$12 sps:$4 sm:$0xff]   ;;  %v7391_v19 = vld [vmem:[#allocation9 + $0x290] ss:$12 sps:$4 sm:$0xff]  }
 0x418   :  { %v4440_v53 = vrot.slane %v4412_v39, 2  ;;  %v7388_v38 = vld [vmem:[#allocation9 + $0x1c8] ss:$12 sps:$4 sm:$0xff]   ;;  %v7392_v15 = vld [vmem:[#allocation9 + $0x1d0] ss:$12 sps:$4 sm:$0xff]  }
 0x419   :  { %v4466_v35 = vrot.slane %v4465_v21, 4  ;;  %v4445_v22 = vsel %vm727_vm13, %v4442_v52, %v4444_v45  ;;  %v4461_v55 = vadd.f32 %v4444_v45, %v4293_v26  ;;  %v7395_v41 = vld [vmem:[#allocation9 + $0x1e4] ss:$12 sps:$4 sm:$0xff]   ;;  %v7397_v45 = vld [vmem:[#allocation9 + $0x1e8] ss:$12 sps:$4 sm:$0xff]  }
 0x41a   :  { %v4460_v43 = vadd.f32 %v4445_v22, %v4292_v16  ;;  %v4441_v56 = vsel %vm727_vm13, %v4439_v24, %v4440_v53  ;;  %v4443_v57 = vsel %vm727_vm13, %v4440_v53, %v4442_v52  ;;  %v7393_v52 = vld [vmem:[#allocation9 + $0x1e0] ss:$12 sps:$4 sm:$0xff]   ;;  %v7400_v39 = vld [vmem:[#allocation9 + $0x1fc] ss:$12 sps:$4 sm:$0xff]   ;;  %v7398_v53 = vld [vmem:[#allocation9 + $0x1f8] ss:$12 sps:$4 sm:$0xff]  }
 0x41b   :  { %v4467_v58 = vmax.f32 %v4465_v21, %v4466_v35  ;;  %v4473_v60 = vsel %vm727_vm13, %v4461_v55, -inf  ;;  %v4458_v42 = vadd.f32 %v4441_v56, %v4290_v27  ;;  %v4459_v44 = vadd.f32 %v4443_v57, %v4291_v10  ;;  %v7396_v21 = vld [vmem:[#allocation9 + $0x2a8] ss:$12 sps:$4 sm:$0xff]   ;;  %v7401_v24 = vld [vmem:[#allocation9 + $0x2c0] ss:$12 sps:$4 sm:$0xff]  }
 0x41c   :  { %v7402_v35 = vld [vmem:[#allocation9 + $0x200] ss:$12 sps:$4 sm:$0xff]   ;;  %v7406_v55 = vld [vmem:[#allocation9 + $0x2d8] ss:$12 sps:$4 sm:$0xff]  }
 0x41d   :  { %v4468_v14 = vrot.slane %v4467_v58, 2  ;;  %v4472_v54 = vmax.f32 %v4458_v42, %v4460_v43  ;;  %v4474_v17 = vmax.f32 %v4459_v44, %v4473_v60  ;;  %v7405_v22 = vld [vmem:[#allocation9 + $0x214] ss:$12 sps:$4 sm:$0xff]   ;;  %v7403_v43 = vld [vmem:[#allocation9 + $0x210] ss:$12 sps:$4 sm:$0xff]  }
 0x41e   :  { %v7407_v56 = vld [vmem:[#allocation9 + $0x218] ss:$12 sps:$4 sm:$0xff]   ;;  %v7408_v60 = vld [vmem:[#allocation9 + $0x228] ss:$12 sps:$4 sm:$0xff]   ;;  %v7412_v42 = vld [vmem:[#allocation9 + $0x230] ss:$12 sps:$4 sm:$0xff]  }
 0x41f   :  { %v4475_v1 = vmax.f32 %v4472_v54, %v4474_v17  ;;  %v4469_v0 = vmax.f32 %v4467_v58, %v4468_v14  ;;  %v7410_v57 = vld [vmem:[#allocation9 + $0x22c] ss:$12 sps:$4 sm:$0xff]   ;;  %v7411_v58 = vld [vmem:[#allocation9 + $0x2f0] ss:$12 sps:$4 sm:$0xff]  }
 0x420   :  { %v7415_v44 = vld [vmem:[#allocation9 + $0x244] ss:$12 sps:$4 sm:$0xff]   ;;  %v7413_v14 = vld [vmem:[#allocation9 + $0x240] ss:$12 sps:$4 sm:$0xff]   ;;  %v7418_v17 = vld [vmem:[#allocation9 + $0x25c] ss:$12 sps:$4 sm:$0xff]  }
 0x421   :  { %v4476_v40 = vrot.slane %v4475_v1, 4  ;;  %v4470_v62 = vrot.slane %v4469_v0, 1 }
 0x423   :  { %v4477_v3 = vmax.f32 %v4475_v1, %v4476_v40  ;;  %v4471_v46 = vmax.f32 %v4469_v0, %v4470_v62  ;;  %v7416_v1 = vld [vmem:[#allocation9 + $0x258] ss:$12 sps:$4 sm:$0xff]   ;;  %v7421_v0 = vld [vmem:[#allocation9 + $0x274] ss:$12 sps:$4 sm:$0xff]   ;;  %v7419_v40 = vld [vmem:[#allocation9 + $0x270] ss:$12 sps:$4 sm:$0xff]  }
 0x424   :  { %v7422_v62 = vld [vmem:[#allocation9 + $0x288] ss:$12 sps:$4 sm:$0xff]  }
 0x425   :  { %v4478_v47 = vrot.slane %v4477_v3, 2  ;;  %v4489_v8 = vadd.f32 %v5925_v7, %v4471_v46  ;;  %v7430_v46 = vld [vmem:[#allocation9 + $0x2bc] ss:$12 sps:$4 sm:$0xff]  }
 0x427   :  { %v4479_v18 = vmax.f32 %v4477_v3, %v4478_v47  ;;  %v4499_v12 = vrot.slane %v4489_v8, %v8081_v28  ;;  %v7424_v3 = vld [vmem:[#allocation9 + $0x28c] ss:$12 sps:$4 sm:$0xff]   ;;  %v7427_v47 = vld [vmem:[#allocation9 + $0x2a4] ss:$12 sps:$4 sm:$0xff]  }
 0x428   :  { %v7436_v8 = vld [vmem:[#allocation9 + $0x2ec] ss:$12 sps:$4 sm:$0xff]  }
 0x429   :  { %v4480_v63 = vrot.slane %v4479_v18, 1 }
 0x42b   :  { %v4481_v48 = vmax.f32 %v4479_v18, %v4480_v63  ;;  %v7425_v18 = vld [vmem:[#allocation9 + $0x2a0] ss:$12 sps:$4 sm:$0xff]   ;;  %v7428_v63 = vld [vmem:[#allocation9 + $0x2b8] ss:$12 sps:$4 sm:$0xff]  }
 0x42d   :  { %v4490_v34 = vadd.f32 %v5925_v7, %v4481_v48  ;;  %v7433_v7 = vld [vmem:[#allocation9 + $0x2d4] ss:$12 sps:$4 sm:$0xff]   ;;  %v7431_v48 = vld [vmem:[#allocation9 + $0x2d0] ss:$12 sps:$4 sm:$0xff]  }
 0x42f   :  { %v4506_v11 = vrot.slane %v4490_v34, %v8081_v28  ;;  %v7434_v34 = vld [vmem:[#allocation9 + $0x2e8] ss:$12 sps:$4 sm:$0xff]  }
 0x431   :  { %v4509_v4 = vrot.slane %v4506_v11, 7  ;;  %v7437_v11 = vld [vmem:[%s8376_s12 + $0x40] sm:$0xff]  }
 0x433   :  { %v4510_v26 = vsel %vm1917_vm3, %v4509_v4, %v4499_v12  ;;  %v7438_v12 = vld [vmem:[%s8376_s12] sm:$0xff]  }
 0x434   :  { %v4511_v16 = vsel %vm1919_vm4, %v4509_v4, %v4510_v26  ;;  %v7440_v26 = vld [vmem:[%s8376_s12 + $0x8] sm:$0xff]  }
 0x435   :  { %v4512_v25 = vsel %vm1921_vm5, %v4509_v4, %v4511_v16  ;;  %v7441_v16 = vld [vmem:[%s8376_s12 + $0x50] sm:$0xff]  }
 0x436   :  { %v4513_v9 = vsel %vm1923_vm6, %v4509_v4, %v4512_v25  ;;  %v7439_v4 = vld [vmem:[%s8376_s12 + $0x48] sm:$0xff]   ;;  %v7442_v25 = vld [vmem:[%s8376_s12 + $0x10] sm:$0xff]  }
 0x437   :  { %4515 = vst [vmem:[#allocation2 + $0x6] sm:$0x3] %v4513_v9  ;;  %v7443_v9 = vld [vmem:[%s8376_s12 + $0x58] sm:$0xff]  }
 0x43e   :  { %v4516_v27 = vld [vmem:[#allocation2] sm:$0xff] }
 0x43f   :  { %v4525_v10 = vrot.slane %v4516_v27, %v8081_v28  ;;  %v4518_v2 = vcombine.high %v4516_v27, %v4516_v27  ;;  %v7444_v27 = vld [vmem:[%s8376_s12 + $0x18] sm:$0xff]  }
 0x441   :  { %v4533_v20 = vcombine.high %v4525_v10, %v4525_v10  ;;  %v8265_v23 = vrot.slane %v4518_v2, %v8081_v28  ;;  %v4539_v51 = vpack.c.bf16 %v4525_v10, %v4525_v10  ;;  %v7385_v28 = vld [vmem:[#allocation9 + $0x1b4] ss:$12 sps:$4 sm:$0xff]   ;;  %v7445_v10 = vld [vmem:[%s8376_s12 + $0x60] sm:$0xff]  }
 0x442   :  { %v7446_v2 = vld [vmem:[%s8376_s12 + $0x20] sm:$0xff]  }
 0x443   :  { %v4540_v29 = vpack.c.bf16 %v4533_v20, %v4533_v20  ;;  %v4534_v30 = vcombine.high %v8265_v23, %v8265_v23  ;;  %v4541_v54 = vpack.c.bf16 %v8265_v23, %v8265_v23  ;;  %v7447_v20 = vld [vmem:[%s8376_s12 + $0x68] sm:$0xff]  }
 0x444   :  { %v7448_v23 = vld [vmem:[%s8376_s12 + $0x28] sm:$0xff]  }
 0x445   :  { %5232 = vmatprep.mubr.bf16.mxu0 %v4540_v29  ;;  %5314 = vmatprep.mubr.bf16.mxu1 %v4540_v29  ;;  %v4542_v32 = vpack.c.bf16 %v4534_v30, %v4534_v30  ;;  %v7449_v29 = vld [vmem:[%s8376_s12 + $0x70] sm:$0xff]   ;;  %v7452_v30 = vld [vmem:[%s8376_s12 + $0x38] sm:$0xff]  }
 0x446   :  { %5233 = vmatmul.mubr.bf16.vlgmr.msra.gmra.mrb[104].mxu0 %v4539_v51  ;;  %5315 = vmatmul.mubr.bf16.vlgmr.msra.gmra.mrb[104].mxu1 %v4539_v51  ;;  %v7590_v51 = vmov 0.0  }
 0x447   :  { %5242 = vmatpush1.bf16.msra.mxu0 %v7372_v31  ;;  %6382 = vmatpush3.bf16.msra.mxu1 %v7376_v13  ;;  %v7450_v31 = vld [vmem:[%s8376_s12 + $0x30] sm:$0xff]   ;;  %v7451_v13 = vld [vmem:[%s8376_s12 + $0x78] sm:$0xff]  }
 0x448   :  { %5273 = vmatprep.mubr.bf16.mxu0 %v4542_v32  ;;  %5354 = vmatprep.mubr.bf16.mxu1 %v4542_v32 }
 0x449   :  { %5243 = vmatprep.subr.bf16.mxu0 %v7380_v49  ;;  %6383 = vmatprep.subr.bf16.mxu1 %v7381_v5 }
 0x44b   :  { %5244 = vmatpush1.bf16.msra.mxu0 %v7378_v61  ;;  %6384 = vmatpush3.bf16.msra.mxu1 %v7382_v6 }
 0x44c   :  { %5245 = vmatprep.subr.bf16.mxu0 %v7385_v28  ;;  %6385 = vmatprep.subr.bf16.mxu1 %v7386_v33  ;;  %v4683_v28 = vsub.s32 2, %v8071_v50  ;;  %v4671_v33 = vld [vmem:[%s8375_s11] sm:$0x7] }
 0x44f   :  { %5246 = vmatpush1.bf16.msra.mxu0 %v7383_v59  ;;  %6386 = vmatpush3.bf16.msra.mxu1 %v7387_v36  ;;  %v4684_v59 = vrot.slane %v4671_v33, %v4683_v28 }
 0x450   :  { %5247 = vmatprep.subr.bf16.mxu0 %v7390_v37  ;;  %6387 = vmatprep.subr.bf16.mxu1 %v7391_v19 }
 0x453   :  { %5248 = vmatpush1.bf16.msra.mxu0 %v7388_v38  ;;  %6388 = vmatpush3.bf16.msra.mxu1 %v7392_v15 }
 0x454   :  { %5249 = vmatprep.subr.bf16.mxu0 %v7395_v41  ;;  %6389 = vmatprep.subr.bf16.mxu1 %v7396_v21 }
 0x457   :  { %5250 = vmatpush1.bf16.msra.mxu0 %v7393_v52  ;;  %6390 = vmatpush3.bf16.msra.mxu1 %v7397_v45  ;;  %v4675_v52 = vsub.s32 0, %v8071_v50  ;;  %v4679_v45 = vsub.s32 1, %v8071_v50  ;;  %v7454_v50 = vld [vmem:[%s8376_s12 + $0x88] sm:$0xff]  }
 0x458   :  { %5251 = vmatprep.subr.bf16.mxu0 %v7400_v39  ;;  %6391 = vmatprep.subr.bf16.mxu1 %v7401_v24 }
 0x459   :  { %v4676_v39 = vrot.slane %v4671_v33, %v4675_v52  ;;  %v4680_v24 = vrot.slane %v4671_v33, %v4679_v45 }
 0x45b   :  { %5252 = vmatpush1.bf16.msra.mxu0 %v7398_v53  ;;  %6392 = vmatpush3.bf16.msra.mxu1 %v7402_v35 }
 0x45c   :  { %5253 = vmatprep.subr.bf16.mxu0 %v7405_v22  ;;  %6393 = vmatprep.subr.bf16.mxu1 %v7406_v55 }
 0x45f   :  { %5254 = vmatpush1.bf16.msra.mxu0 %v7403_v43  ;;  %6394 = vmatpush3.bf16.msra.mxu1 %v7407_v56 }
 0x460   :  { %5255 = vmatprep.subr.bf16.mxu0 %v7410_v57  ;;  %6395 = vmatprep.subr.bf16.mxu1 %v7411_v58 }
 0x463   :  { %5256 = vmatpush1.bf16.msra.mxu0 %v7408_v60  ;;  %6396 = vmatpush3.bf16.msra.mxu1 %v7412_v42  ;;  %v7453_v42 = vld [vmem:[%s8376_s12 + $0x80] sm:$0xff]  }
 0x464   :  { %5257 = vmatprep.subr.bf16.mxu0 %v7415_v44  ;;  %6403 = vmatprep.subr.bf16.mxu1 %v7437_v11 }
 0x466   :  { %5355 = vmatmul.mubr.bf16.vlgmr.msra.gmra.mrb[108].mxu1 %v4541_v54 }
 0x467   :  { %5258 = vmatpush1.bf16.msra.mxu0 %v7413_v14  ;;  %6404 = vmatpush3.bf16.msra.mxu1 %v7438_v12  ;;  %v7455_v14 = vld [vmem:[%s8376_s12 + $0x90] sm:$0xff]  }
 0x468   :  { %5259 = vmatprep.subr.bf16.mxu0 %v7418_v17  ;;  %6405 = vmatprep.subr.bf16.mxu1 %v7439_v4  ;;  %v7457_v17 = vld [vmem:[%s8376_s12 + $0xa0] sm:$0xff]  }
 0x46b   :  { %5260 = vmatpush1.bf16.msra.mxu0 %v7416_v1  ;;  %6406 = vmatpush3.bf16.msra.mxu1 %v7440_v26  ;;  %v7458_v1 = vld [vmem:[%s8376_s12 + $0xa8] sm:$0xff]  }
 0x46c   :  { %5261 = vmatprep.subr.bf16.mxu0 %v7421_v0  ;;  %6407 = vmatprep.subr.bf16.mxu1 %v7441_v16  ;;  %v7459_v0 = vld [vmem:[%s8376_s12 + $0xb0] sm:$0xff]  }
 0x46f   :  { %5262 = vmatpush1.bf16.msra.mxu0 %v7419_v40  ;;  %6408 = vmatpush3.bf16.msra.mxu1 %v7442_v25  ;;  %v7460_v40 = vld [vmem:[%s8376_s12 + $0xb8] sm:$0xff]  }
 0x470   :  { %5263 = vmatprep.subr.bf16.mxu0 %v7424_v3  ;;  %6409 = vmatprep.subr.bf16.mxu1 %v7443_v9 }
 0x473   :  { %5264 = vmatpush1.bf16.msra.mxu0 %v7422_v62  ;;  %6410 = vmatpush3.bf16.msra.mxu1 %v7444_v27 }
 0x474   :  { %5265 = vmatprep.subr.bf16.mxu0 %v7427_v47  ;;  %6411 = vmatprep.subr.bf16.mxu1 %v7445_v10 }
 0x477   :  { %5266 = vmatpush1.bf16.msra.mxu0 %v7425_v18  ;;  %6412 = vmatpush3.bf16.msra.mxu1 %v7446_v2 }
 0x478   :  { %5267 = vmatprep.subr.bf16.mxu0 %v7430_v46  ;;  %6413 = vmatprep.subr.bf16.mxu1 %v7447_v20 }
 0x47b   :  { %5268 = vmatpush1.bf16.msra.mxu0 %v7428_v63  ;;  %6414 = vmatpush3.bf16.msra.mxu1 %v7448_v23 }
 0x47c   :  { %5269 = vmatprep.subr.bf16.mxu0 %v7433_v7  ;;  %6415 = vmatprep.subr.bf16.mxu1 %v7449_v29 }
 0x47f   :  { %5270 = vmatpush1.bf16.msra.mxu0 %v7431_v48  ;;  %6416 = vmatpush3.bf16.msra.mxu1 %v7450_v31  ;;  %v6022_v48 = vld [vmem:[%s8377_s13] ss:$0 sm:$0xff] }
 0x480   :  { %5271 = vmatprep.subr.bf16.mxu0 %v7436_v8  ;;  %6417 = vmatprep.subr.bf16.mxu1 %v7451_v13 }
 0x483   :  { %5272 = vmatpush1.bf16.msra.mxu0 %v7434_v34  ;;  %6418 = vmatpush3.bf16.msra.mxu1 %v7452_v30 }
 0x484   :  { %7058 = vmatprep.subr.bf16.mxu1 %v7590_v51 }
 0x486   :  { %5274 = vmatmul.mubr.bf16.vlgmr.msra.gmra.mrb[104].mxu0 %v4541_v54  ;;  %v7456_v54 = vld [vmem:[%s8376_s12 + $0x98] sm:$0xff]   ;;  %s7549_s12 = scalar_lea.vmem %s5656_s7, 32 }
 0x487   :  { %p7550_p4 = scmp.ne.s32.totalorder %s5656_s7, %s7549_s12  ;;  %p7555_p6 = scmp.lt.s32.totalorder %s7549_s12, %s7549_s12 }
 0x489   :  { %p7556_p7 = por %p7555_p6, %p7554_p5 }
 0x48b   :  { %p7557_p8 = pnand %p7556_p7, %p7550_p4 }
 0x519   :  { %v6375_v32 = vpop.f32.mrb[104].mxu1 }
 0x51a   :  { %v6376_v49 = vpop.f32.mrb[105].mxu1 }
 0x51b   :  { %v6377_v5 = vadd.f32 %v6376_v49, %v6375_v32  ;;  %v6378_v61 = vpop.f32.mrb[106].mxu1 }
 0x51c   :  { %v6379_v6 = vpop.f32.mrb[107].mxu1 }
 0x51d   :  { %v5317_v19 = vadd.f32 %v6377_v5, %v4684_v59 }
 0x539   :  { %v6397_v36 = vpop.f32.mrb[108].mxu1 }
 0x53a   :  { %v6398_v37 = vpop.f32.mrb[109].mxu1 }
 0x53b   :  { %v6399_v38 = vadd.f32 %v6398_v37, %v6397_v36  ;;  %v6400_v15 = vpop.f32.mrb[110].mxu1 }
 0x53c   :  { %v6401_v41 = vpop.f32.mrb[111].mxu1 }
 0x53d   :  { %v5357_v21 = vadd.f32 %v6399_v38, %v5317_v19 }
 0x53f   :  { %v5364_v3 = vmax.f32 %v5357_v21, 0.0 }
 0x541   :  { %v5367_v62 = vpack.c.bf16 %v5364_v3, %v5364_v3 }
 0x559   :  { %v5275_v53 = vpop.f32.mrb[104].mxu0 }
 0x55a   :  { %v7078_v35 = vadd.f32 %v5275_v53, %v4676_v39  ;;  %v5277_v22 = vpop.f32.mrb[105].mxu0 }
 0x55b   :  { %v7079_v55 = vadd.f32 %v5277_v22, %v4680_v24  ;;  %v5279_v43 = vpop.f32.mrb[106].mxu0 }
 0x55c   :  { %v5362_v56 = vmax.f32 %v7078_v35, 0.0  ;;  %v5280_v57 = vpop.f32.mrb[107].mxu0 }
 0x55d   :  { %v5363_v58 = vmax.f32 %v7079_v55, 0.0 }
 0x55e   :  { %v5365_v44 = vpack.c.bf16 %v5362_v56, %v5362_v56 }
 0x55f   :  { %v5366_v60 = vpack.c.bf16 %v5363_v58, %v5363_v58 }
 0x561   :  { %5599 = vmatprep.mubr.bf16.mxu1 %v5366_v60 }
 0x562   :  { %5600 = vmatmul.mubr.bf16.vlgmr.msra.gmra.mrb[112].mxu1 %v5365_v44 }
 0x563   :  { %7059 = vmatpush3.bf16.msra.mxu1 %v7453_v42  ;;  %7074 = vmatprep.mubr.msk.bf16.mxu1 %vm7591_vm7, %v7590_v51 }
 0x564   :  { %7060 = vmatprep.subr.bf16.mxu1 %v7590_v51 }
 0x567   :  { %7061 = vmatpush3.bf16.msra.mxu1 %v7454_v50 }
 0x568   :  { %7062 = vmatprep.subr.bf16.mxu1 %v7590_v51 }
 0x56b   :  { %7063 = vmatpush3.bf16.msra.mxu1 %v7455_v14 }
 0x56c   :  { %7064 = vmatprep.subr.bf16.mxu1 %v7590_v51 }
 0x56f   :  { %7065 = vmatpush3.bf16.msra.mxu1 %v7456_v54 }
 0x570   :  { %7066 = vmatprep.subr.bf16.mxu1 %v7590_v51 }
 0x573   :  { %7067 = vmatpush3.bf16.msra.mxu1 %v7457_v17 }
 0x574   :  { %7068 = vmatprep.subr.bf16.mxu1 %v7590_v51 }
 0x577   :  { %7069 = vmatpush3.bf16.msra.mxu1 %v7458_v1 }
 0x578   :  { %7070 = vmatprep.subr.bf16.mxu1 %v7590_v51 }
 0x57b   :  { %7071 = vmatpush3.bf16.msra.mxu1 %v7459_v0 }
 0x57c   :  { %7072 = vmatprep.subr.bf16.mxu1 %v7590_v51 }
 0x57f   :  { %7073 = vmatpush3.bf16.msra.mxu1 %v7460_v40 }
 0x582   :  { %7075 = vmatmul.mubr.bf16.vlgmr.msra.gmra.mrb[116].mxu1 %v5367_v62 }
 0x635   :  { %v6419_v47 = vpop.f32.mrb[112].mxu1 }
 0x636   :  { %v6420_v18 = vpop.f32.mrb[113].mxu1 }
 0x637   :  { %v6421_v46 = vadd.f32 %v6420_v18, %v6419_v47  ;;  %v6422_v63 = vpop.f32.mrb[114].mxu1 }
 0x638   :  { %v6423_v7 = vpop.f32.mrb[115].mxu1 }
 0x639   :  { %v5602_v8 = vadd.f32 %v6421_v46, %v6022_v48 }
 0x655   :  { %v5641_v34 = vpop.f32.mrb[116].mxu1 }
 0x656   :  { %v5642_v11 = vadd.f32 %v5641_v34, %v5602_v8  ;;  %v7076_v12 = vpop.f32.mrb[117].mxu1 }
 0x657   :  { %v5644_v4 = vpop.f32.mrb[118].mxu1 }
 0x658   :  { %v7077_v26 = vpop.f32.mrb[119].mxu1  ;;  %5648 = vst.msk [vmem:[#allocation11] sm:$0x3] %vm5647_vm8, %v5642_v11 }
 0x659   :  { %7560 = shalt.err (!%p7557_p8)
}
 0x65a   :  { %s7561_s9 = scalar_lea.hbm %s8378_s14, 32 }
 0x65b   :  { %p7562_p9 = scmp.ne.s32.totalorder %s8378_s14, %s7561_s9  ;;  %p7565_p10 = scmp.lt.u32.totalorder %s7561_s9, %s8378_s14 }
 0x65d   :  { %p7567_p11 = pnand %p7565_p10, %p7562_p9 }
 0x65f   :  { %7570 = shalt.err (!%p7567_p11)
}
 0x660   :  { %5658 = dma.vmem_to_hbm [thread:$0]  %s5656_s7, 32, %s8378_s14, [#allocation5]  }
 0x661   :  { %7577 = dma.done.wait [#allocation5], 32  }
 0x662   :  { %7578 = vsyncadd [#allocation5], 4294967264 }
 0x663   :  { %5662 = vsyncpa [#allocation4], 1 }
 0x664   :  { %5663 = vsyncpa [#allocation7], 1 }
 0x665   :  { %5664 = vsyncpa [#allocation10], 1 }
 0x666   :  { %5665 = vsyncpa [#allocation5], 1 }

</bundles_post_ra>
